<compile_context>
chip_gen: v5e
topology: v5e:2x2
jax: 0.10.0
libtpu: 0.0.40
codegen_flags: <defaults>
</compile_context>

<pallas_src>
import functools

import jax
import jax.numpy as jnp
from jax.experimental import pallas as pl
from jax.experimental.pallas import tpu as pltpu


def _round_up(x, m):
    return ((x + m - 1) // m) * m


_COMPILER_PARAMS = pltpu.CompilerParams(
    dimension_semantics=("parallel",),
    vmem_limit_bytes=32 * 1024 * 1024,
)


# ----------------------------- Pallas kernels ------------------------------

def _matmul_bias_kernel(w_ref, x_ref, b_ref, o_ref, *, apply_relu):
    # w_ref: [N, Kp] bf16, x_ref: [Kp, tM] bf16, b_ref: [N, 1] f32,
    # o_ref: [N, tM] f32.  MXU matmul with f32 accumulate, f32 epilogue.
    acc = jnp.dot(w_ref[...], x_ref[...], preferred_element_type=jnp.float32)
    acc = acc + b_ref[...]            # broadcast [N, 1] over lanes
    if apply_relu:
        acc = jnp.maximum(acc, 0.0)
    o_ref[...] = acc.astype(o_ref.dtype)


def _maxpool_kernel(x_ref, o_ref):
    # x_ref: [4, tM]  (the four elements of each 2x2 window, lane-dense M)
    # o_ref: [1, tM]
    a = jnp.maximum(x_ref[0, :], x_ref[1, :])
    b = jnp.maximum(x_ref[2, :], x_ref[3, :])
    o_ref[0, :] = jnp.maximum(a, b)


# ----------------------------- kernel wrappers ------------------------------

def matmul_bias_act(w, x, b, apply_relu):
    """y[N, M] = w[N, K] @ x[K, M] + b[N, 1], optional fused ReLU.

    K is zero-padded to a multiple of 128, M is padded to a multiple of the
    M-tile; operands are cast to bf16 (f32 accumulate).  The grid runs over
    M tiles ("parallel"), keeping the weight / bias blocks resident.
    """
    N, K = w.shape
    _, M = x.shape
    Kp = _round_up(K, 128)
    tm = min(512, _round_up(M, 128))
    Mp = _round_up(M, tm)

    wb = jnp.pad(w, ((0, 0), (0, Kp - K))).astype(jnp.bfloat16)
    xb = jnp.pad(x, ((0, Kp - K), (0, Mp - M))).astype(jnp.bfloat16)
    bb = b.astype(jnp.float32)

    out = pl.pallas_call(
        functools.partial(_matmul_bias_kernel, apply_relu=apply_relu),
        out_shape=jax.ShapeDtypeStruct((N, Mp), jnp.float32),
        grid=(Mp // tm,),
        in_specs=[
            pl.BlockSpec((N, Kp), lambda i: (0, 0)),   # weights: resident
            pl.BlockSpec((Kp, tm), lambda i: (0, i)),  # activations: M-tiled
            pl.BlockSpec((N, 1), lambda i: (0, 0)),    # bias: resident
        ],
        out_specs=pl.BlockSpec((N, tm), lambda i: (0, i)),
        compiler_params=_COMPILER_PARAMS,
    )(wb, xb, bb)
    return out[:, :M]


def conv2d(x, w, b, apply_relu):
    """Valid conv, stride 1, on channel-major activations.

    x: [C, B, H, W], w: [OC, C, KH, KW], b: [OC, 1] -> [OC, B, OH, OW].
    The patch matrix is built directly in the transposed [K, M] layout
    (slices + stack, no axis permutation) so the matmul output is lane-dense
    and already in the next layer's layout.
    """
    C, B, H, W = x.shape
    OC, _, KH, KW = w.shape
    OH, OW = H - KH + 1, W - KW + 1
    K, M = C * KH * KW, B * OH * OW

    slices = [x[:, :, kh:kh + OH, kw:kw + OW]      # each [C, B, OH, OW]
              for kh in range(KH) for kw in range(KW)]
    patches = jnp.stack(slices, axis=1).reshape(K, M)   # K = (c, kh, kw)
    wmat = w.reshape(OC, K)                              # matches K ordering

    y = matmul_bias_act(wmat, patches, b, apply_relu)    # [OC, M]
    return y.reshape(OC, B, OH, OW)


def maxpool2x2(x):
    """2x2 max pool, stride 2, on channel-major [C, B, H, W] activations."""
    C, B, H, W = x.shape
    H2, W2 = H // 2, W // 2
    M = C * B * H2 * W2

    x5 = x.reshape(C * B * H2, 2, W2, 2)
    # Four window elements, each flattened over (c, b, h2, w2) -> lane-dense.
    parts = jnp.stack(
        [x5[:, 0, :, 0], x5[:, 0, :, 1], x5[:, 1, :, 0], x5[:, 1, :, 1]],
        axis=0,
    ).reshape(4, M)

    tm = min(512, _round_up(M, 128))
    Mp = _round_up(M, tm)
    parts = jnp.pad(parts, ((0, 0), (0, Mp - M)))

    out = pl.pallas_call(
        _maxpool_kernel,
        out_shape=jax.ShapeDtypeStruct((1, Mp), x.dtype),
        grid=(Mp // tm,),
        in_specs=[pl.BlockSpec((4, tm), lambda i: (0, i))],
        out_specs=pl.BlockSpec((1, tm), lambda i: (0, i)),
        compiler_params=_COMPILER_PARAMS,
    )(parts)
    return out[0, :M].reshape(C, B, H2, W2)


# ------------------------------- model glue ---------------------------------

def init_params(key):
    ks = jax.random.split(key, 6)

    def uinit(k, shape, fan_in):
        bound = 1.0 / jnp.sqrt(jnp.float32(fan_in))
        return jax.random.uniform(k, shape, jnp.float32, -bound, bound)

    # Biases pre-shaped [N, 1]; fc weight kept [N, K] (kernel orientation).
    return {
        "conv1_w": uinit(ks[0], (16, 3, 5, 5), 3 * 5 * 5),
        "conv1_b": uinit(ks[1], (16, 1), 3 * 5 * 5),
        "conv2_w": uinit(ks[2], (32, 16, 5, 5), 16 * 5 * 5),
        "conv2_b": uinit(ks[3], (32, 1), 16 * 5 * 5),
        "fc_w":    uinit(ks[4], (10, 32 * 5 * 5), 32 * 5 * 5),
        "fc_b":    uinit(ks[5], (10, 1), 32 * 5 * 5),
    }


@jax.jit
def forward(params, x):
    """Matches CNN_for_weight_visualization.forward (save_layer_outputs=False).

    x: NCHW [B, 3, 32, 32] -> logits [B, 10].
    """
    B = x.shape[0]
    xc = jnp.transpose(x, (1, 0, 2, 3))                          # [C, B, H, W]
    xc = conv2d(xc, params["conv1_w"], params["conv1_b"], True)  # conv1+relu1
    xc = maxpool2x2(xc)                                          # maxpool1
    xc = conv2d(xc, params["conv2_w"], params["conv2_b"], True)  # conv2+relu2
    xc = maxpool2x2(xc)                                          # maxpool2
    # PyTorch x.view(B, -1) flattens NCHW in (c, h, w) order per batch element:
    C2, _, Hp, Wp = xc.shape
    xf = jnp.transpose(xc, (0, 2, 3, 1)).reshape(C2 * Hp * Wp, B)  # [K, B]
    y = matmul_bias_act(params["fc_w"], xf, params["fc_b"], False)  # [10, B]
    return y.T                                                      # [B, 10]


def reference_forward(params, x):
    """Pure-JAX f32 reference for a correctness sanity check."""
    def conv_ref(x, w, b):
        y = jax.lax.conv_general_dilated(
            x, w, window_strides=(1, 1), padding="VALID",
            dimension_numbers=("NCHW", "OIHW", "NCHW"))
        return y + b.reshape(1, -1, 1, 1)

    def pool_ref(x):
        return jax.lax.reduce_window(
            x, -jnp.inf, jax.lax.max, (1, 1, 2, 2), (1, 1, 2, 2), "VALID")

    x = jnp.maximum(conv_ref(x, params["conv1_w"], params["conv1_b"]), 0.0)
    x = pool_ref(x)
    x = jnp.maximum(conv_ref(x, params["conv2_w"], params["conv2_b"]), 0.0)
    x = pool_ref(x)
    x_f = x.reshape(x.shape[0], -1)
    return x_f @ params["fc_w"].T + params["fc_b"].reshape(1, -1)


if __name__ == "__main__":
    key = jax.random.PRNGKey(0)
    pkey, xkey = jax.random.split(key)
    params = init_params(pkey)
    # Module implies 3-channel 32x32 inputs (32 -> 28 -> 14 -> 10 -> 5, fc 32*5*5).
    x = jax.random.normal(xkey, (2, 3, 32, 32), jnp.float32)

    y = jax.block_until_ready(forward(params, x))
    y_ref = jax.block_until_ready(reference_forward(params, x))

    assert y.shape == (2, 10), y.shape
    # bf16 MXU operands (f32 accumulate) -> loosened tolerance vs f32 reference.
    assert jnp.allclose(y, y_ref, atol=1e-1, rtol=1e-1), "mismatch vs reference"
    print("KERNEL_OK")
</pallas_src>

<mosaic_0001>
module attributes {stable_mosaic.version = 11 : i64} {
  func.func @_matmul_bias_kernel(%arg0: i32, %arg1: memref<16x128xbf16, #tpu.memory_space<vmem>>, %arg2: memref<128x512xbf16, #tpu.memory_space<vmem>>, %arg3: memref<16x1xf32, #tpu.memory_space<vmem>>, %arg4: memref<16x512xf32, #tpu.memory_space<vmem>>) attributes {dimension_semantics = [#tpu.dimension_semantics<parallel>], iteration_bounds = array<i64: 4>, scalar_prefetch = 0 : i64, scratch_operands = 0 : i64, tpu.core_type = #tpu.core_type<tc>, window_params = [{pipeline_mode = #tpu.pipeline_mode<synchronous>, transform_indices = @transform_0, window_bounds = array<i64: 16, 128>}, {transform_indices = @transform_1, window_bounds = array<i64: 128, 512>}, {pipeline_mode = #tpu.pipeline_mode<synchronous>, transform_indices = @transform_2, window_bounds = array<i64: 16, 1>}, {transform_indices = @transform_3, window_bounds = array<i64: 16, 512>}]} {
    %c0 = arith.constant 0 : index
    %c0_0 = arith.constant 0 : index
    %0 = vector.load %arg1[%c0, %c0_0] : memref<16x128xbf16, #tpu.memory_space<vmem>>, vector<16x128xbf16>
    %c0_1 = arith.constant 0 : index
    %c0_2 = arith.constant 0 : index
    %1 = vector.load %arg2[%c0_1, %c0_2] : memref<128x512xbf16, #tpu.memory_space<vmem>>, vector<128x512xbf16>
    %cst = arith.constant dense<0.000000e+00> : vector<16x512xf32>
    %2 = tpu.matmul %0, %1, %cst {dimension_numbers = #tpu.dot_dimension_numbers<[1], [0], [0], [1], [0, 0, 1, 1], [], []>} : vector<16x128xbf16>, vector<128x512xbf16>, vector<16x512xf32> -> vector<16x512xf32>
    %c0_3 = arith.constant 0 : index
    %c0_4 = arith.constant 0 : index
    %3 = vector.load %arg3[%c0_3, %c0_4] : memref<16x1xf32, #tpu.memory_space<vmem>>, vector<16x1xf32>
    %4 = vector.broadcast %3 : vector<16x1xf32> to vector<16x512xf32>
    %5 = arith.addf %2, %4 : vector<16x512xf32>
    %cst_5 = arith.constant 0.000000e+00 : f32
    %6 = vector.broadcast %cst_5 : f32 to vector<16x512xf32>
    %7 = arith.maximumf %5, %6 : vector<16x512xf32>
    %c0_6 = arith.constant 0 : index
    %c0_7 = arith.constant 0 : index
    %8 = vector.load %arg4[%c0_6, %c0_7] : memref<16x512xf32, #tpu.memory_space<vmem>>, vector<16x512xf32>
    tpu.vector_store %arg4[%c0_6, %c0_7], %7 {strides = array<i32>} : memref<16x512xf32, #tpu.memory_space<vmem>>, vector<16x512xf32>,
    return
  }
  func.func @transform_0(%arg0: i32) -> (i32, i32) {
    %c0_i32 = arith.constant 0 : i32
    %c0_i32_0 = arith.constant 0 : i32
    %c0_i32_1 = arith.constant 0 : i32
    return %c0_i32, %c0_i32_0 : i32, i32
  }
  func.func @transform_1(%arg0: i32) -> (i32, i32) {
    %c0_i32 = arith.constant 0 : i32
    %c0_i32_0 = arith.constant 0 : i32
    return %c0_i32, %arg0 : i32, i32
  }
  func.func @transform_2(%arg0: i32) -> (i32, i32) {
    %c0_i32 = arith.constant 0 : i32
    %c0_i32_0 = arith.constant 0 : i32
    %c0_i32_1 = arith.constant 0 : i32
    return %c0_i32, %c0_i32_0 : i32, i32
  }
  func.func @transform_3(%arg0: i32) -> (i32, i32) {
    %c0_i32 = arith.constant 0 : i32
    %c0_i32_0 = arith.constant 0 : i32
    return %c0_i32, %arg0 : i32, i32
  }
}

module attributes {stable_mosaic.version = 11 : i64} {
  func.func @_maxpool_kernel(%arg0: i32, %arg1: memref<4x512xf32, #tpu.memory_space<vmem>>, %arg2: memref<1x512xf32, #tpu.memory_space<vmem>>) attributes {dimension_semantics = [#tpu.dimension_semantics<parallel>], iteration_bounds = array<i64: 13>, scalar_prefetch = 0 : i64, scratch_operands = 0 : i64, tpu.core_type = #tpu.core_type<tc>, window_params = [{transform_indices = @transform_0, window_bounds = array<i64: 4, 512>}, {transform_indices = @transform_1, window_bounds = array<i64: 1, 512>}]} {
    %c0 = arith.constant 0 : index
    %c0_0 = arith.constant 0 : index
    %0 = vector.load %arg1[%c0, %c0_0] : memref<4x512xf32, #tpu.memory_space<vmem>>, vector<1x512xf32>
    %1 = vector.shape_cast %0 : vector<1x512xf32> to vector<512xf32>
    %c1 = arith.constant 1 : index
    %c0_1 = arith.constant 0 : index
    %2 = vector.load %arg1[%c1, %c0_1] : memref<4x512xf32, #tpu.memory_space<vmem>>, vector<1x512xf32>
    %3 = vector.shape_cast %2 : vector<1x512xf32> to vector<512xf32>
    %4 = arith.maximumf %1, %3 : vector<512xf32>
    %c2 = arith.constant 2 : index
    %c0_2 = arith.constant 0 : index
    %5 = vector.load %arg1[%c2, %c0_2] : memref<4x512xf32, #tpu.memory_space<vmem>>, vector<1x512xf32>
    %6 = vector.shape_cast %5 : vector<1x512xf32> to vector<512xf32>
    %c3 = arith.constant 3 : index
    %c0_3 = arith.constant 0 : index
    %7 = vector.load %arg1[%c3, %c0_3] : memref<4x512xf32, #tpu.memory_space<vmem>>, vector<1x512xf32>
    %8 = vector.shape_cast %7 : vector<1x512xf32> to vector<512xf32>
    %9 = arith.maximumf %6, %8 : vector<512xf32>
    %10 = arith.maximumf %4, %9 : vector<512xf32>
    %c0_4 = arith.constant 0 : index
    %c0_5 = arith.constant 0 : index
    %11 = vector.load %arg2[%c0_4, %c0_5] : memref<1x512xf32, #tpu.memory_space<vmem>>, vector<1x512xf32>
    %12 = vector.shape_cast %11 : vector<1x512xf32> to vector<512xf32>
    %13 = vector.shape_cast %10 : vector<512xf32> to vector<1x512xf32>
    tpu.vector_store %arg2[%c0_4, %c0_5], %13 {strides = array<i32>} : memref<1x512xf32, #tpu.memory_space<vmem>>, vector<1x512xf32>,
    return
  }
  func.func @transform_0(%arg0: i32) -> (i32, i32) {
    %c0_i32 = arith.constant 0 : i32
    %c0_i32_0 = arith.constant 0 : i32
    return %c0_i32, %arg0 : i32, i32
  }
  func.func @transform_1(%arg0: i32) -> (i32, i32) {
    %c0_i32 = arith.constant 0 : i32
    %c0_i32_0 = arith.constant 0 : i32
    return %c0_i32, %arg0 : i32, i32
  }
}

module attributes {stable_mosaic.version = 11 : i64} {
  func.func @_matmul_bias_kernel(%arg0: i32, %arg1: memref<32x512xbf16, #tpu.memory_space<vmem>>, %arg2: memref<512x256xbf16, #tpu.memory_space<vmem>>, %arg3: memref<32x1xf32, #tpu.memory_space<vmem>>, %arg4: memref<32x256xf32, #tpu.memory_space<vmem>>) attributes {dimension_semantics = [#tpu.dimension_semantics<parallel>], iteration_bounds = array<i64: 1>, scalar_prefetch = 0 : i64, scratch_operands = 0 : i64, tpu.core_type = #tpu.core_type<tc>, window_params = [{pipeline_mode = #tpu.pipeline_mode<synchronous>, transform_indices = @transform_0, window_bounds = array<i64: 32, 512>}, {transform_indices = @transform_1, window_bounds = array<i64: 512, 256>}, {pipeline_mode = #tpu.pipeline_mode<synchronous>, transform_indices = @transform_2, window_bounds = array<i64: 32, 1>}, {transform_indices = @transform_3, window_bounds = array<i64: 32, 256>}]} {
    %c0 = arith.constant 0 : index
    %c0_0 = arith.constant 0 : index
    %0 = vector.load %arg1[%c0, %c0_0] : memref<32x512xbf16, #tpu.memory_space<vmem>>, vector<32x512xbf16>
    %c0_1 = arith.constant 0 : index
    %c0_2 = arith.constant 0 : index
    %1 = vector.load %arg2[%c0_1, %c0_2] : memref<512x256xbf16, #tpu.memory_space<vmem>>, vector<512x256xbf16>
    %cst = arith.constant dense<0.000000e+00> : vector<32x256xf32>
    %2 = tpu.matmul %0, %1, %cst {dimension_numbers = #tpu.dot_dimension_numbers<[1], [0], [0], [1], [0, 0, 1, 1], [], []>} : vector<32x512xbf16>, vector<512x256xbf16>, vector<32x256xf32> -> vector<32x256xf32>
    %c0_3 = arith.constant 0 : index
    %c0_4 = arith.constant 0 : index
    %3 = vector.load %arg3[%c0_3, %c0_4] : memref<32x1xf32, #tpu.memory_space<vmem>>, vector<32x1xf32>
    %4 = vector.broadcast %3 : vector<32x1xf32> to vector<32x256xf32>
    %5 = arith.addf %2, %4 : vector<32x256xf32>
    %cst_5 = arith.constant 0.000000e+00 : f32
    %6 = vector.broadcast %cst_5 : f32 to vector<32x256xf32>
    %7 = arith.maximumf %5, %6 : vector<32x256xf32>
    %c0_6 = arith.constant 0 : index
    %c0_7 = arith.constant 0 : index
    %8 = vector.load %arg4[%c0_6, %c0_7] : memref<32x256xf32, #tpu.memory_space<vmem>>, vector<32x256xf32>
    tpu.vector_store %arg4[%c0_6, %c0_7], %7 {strides = array<i32>} : memref<32x256xf32, #tpu.memory_space<vmem>>, vector<32x256xf32>,
    return
  }
  func.func @transform_0(%arg0: i32) -> (i32, i32) {
    %c0_i32 = arith.constant 0 : i32
    %c0_i32_0 = arith.constant 0 : i32
    %c0_i32_1 = arith.constant 0 : i32
    return %c0_i32, %c0_i32_0 : i32, i32
  }
  func.func @transform_1(%arg0: i32) -> (i32, i32) {
    %c0_i32 = arith.constant 0 : i32
    %c0_i32_0 = arith.constant 0 : i32
    return %c0_i32, %arg0 : i32, i32
  }
  func.func @transform_2(%arg0: i32) -> (i32, i32) {
    %c0_i32 = arith.constant 0 : i32
    %c0_i32_0 = arith.constant 0 : i32
    %c0_i32_1 = arith.constant 0 : i32
    return %c0_i32, %c0_i32_0 : i32, i32
  }
  func.func @transform_3(%arg0: i32) -> (i32, i32) {
    %c0_i32 = arith.constant 0 : i32
    %c0_i32_0 = arith.constant 0 : i32
    return %c0_i32, %arg0 : i32, i32
  }
}

module attributes {stable_mosaic.version = 11 : i64} {
  func.func @_maxpool_kernel(%arg0: i32, %arg1: memref<4x512xf32, #tpu.memory_space<vmem>>, %arg2: memref<1x512xf32, #tpu.memory_space<vmem>>) attributes {dimension_semantics = [#tpu.dimension_semantics<parallel>], iteration_bounds = array<i64: 4>, scalar_prefetch = 0 : i64, scratch_operands = 0 : i64, tpu.core_type = #tpu.core_type<tc>, window_params = [{transform_indices = @transform_0, window_bounds = array<i64: 4, 512>}, {transform_indices = @transform_1, window_bounds = array<i64: 1, 512>}]} {
    %c0 = arith.constant 0 : index
    %c0_0 = arith.constant 0 : index
    %0 = vector.load %arg1[%c0, %c0_0] : memref<4x512xf32, #tpu.memory_space<vmem>>, vector<1x512xf32>
    %1 = vector.shape_cast %0 : vector<1x512xf32> to vector<512xf32>
    %c1 = arith.constant 1 : index
    %c0_1 = arith.constant 0 : index
    %2 = vector.load %arg1[%c1, %c0_1] : memref<4x512xf32, #tpu.memory_space<vmem>>, vector<1x512xf32>
    %3 = vector.shape_cast %2 : vector<1x512xf32> to vector<512xf32>
    %4 = arith.maximumf %1, %3 : vector<512xf32>
    %c2 = arith.constant 2 : index
    %c0_2 = arith.constant 0 : index
    %5 = vector.load %arg1[%c2, %c0_2] : memref<4x512xf32, #tpu.memory_space<vmem>>, vector<1x512xf32>
    %6 = vector.shape_cast %5 : vector<1x512xf32> to vector<512xf32>
    %c3 = arith.constant 3 : index
    %c0_3 = arith.constant 0 : index
    %7 = vector.load %arg1[%c3, %c0_3] : memref<4x512xf32, #tpu.memory_space<vmem>>, vector<1x512xf32>
    %8 = vector.shape_cast %7 : vector<1x512xf32> to vector<512xf32>
    %9 = arith.maximumf %6, %8 : vector<512xf32>
    %10 = arith.maximumf %4, %9 : vector<512xf32>
    %c0_4 = arith.constant 0 : index
    %c0_5 = arith.constant 0 : index
    %11 = vector.load %arg2[%c0_4, %c0_5] : memref<1x512xf32, #tpu.memory_space<vmem>>, vector<1x512xf32>
    %12 = vector.shape_cast %11 : vector<1x512xf32> to vector<512xf32>
    %13 = vector.shape_cast %10 : vector<512xf32> to vector<1x512xf32>
    tpu.vector_store %arg2[%c0_4, %c0_5], %13 {strides = array<i32>} : memref<1x512xf32, #tpu.memory_space<vmem>>, vector<1x512xf32>,
    return
  }
  func.func @transform_0(%arg0: i32) -> (i32, i32) {
    %c0_i32 = arith.constant 0 : i32
    %c0_i32_0 = arith.constant 0 : i32
    return %c0_i32, %arg0 : i32, i32
  }
  func.func @transform_1(%arg0: i32) -> (i32, i32) {
    %c0_i32 = arith.constant 0 : i32
    %c0_i32_0 = arith.constant 0 : i32
    return %c0_i32, %arg0 : i32, i32
  }
}

module attributes {stable_mosaic.version = 11 : i64} {
  func.func @_matmul_bias_kernel(%arg0: i32, %arg1: memref<10x896xbf16, #tpu.memory_space<vmem>>, %arg2: memref<896x128xbf16, #tpu.memory_space<vmem>>, %arg3: memref<10x1xf32, #tpu.memory_space<vmem>>, %arg4: memref<10x128xf32, #tpu.memory_space<vmem>>) attributes {dimension_semantics = [#tpu.dimension_semantics<parallel>], iteration_bounds = array<i64: 1>, scalar_prefetch = 0 : i64, scratch_operands = 0 : i64, tpu.core_type = #tpu.core_type<tc>, window_params = [{pipeline_mode = #tpu.pipeline_mode<synchronous>, transform_indices = @transform_0, window_bounds = array<i64: 10, 896>}, {transform_indices = @transform_1, window_bounds = array<i64: 896, 128>}, {pipeline_mode = #tpu.pipeline_mode<synchronous>, transform_indices = @transform_2, window_bounds = array<i64: 10, 1>}, {transform_indices = @transform_3, window_bounds = array<i64: 10, 128>}]} {
    %c0 = arith.constant 0 : index
    %c0_0 = arith.constant 0 : index
    %0 = vector.load %arg1[%c0, %c0_0] : memref<10x896xbf16, #tpu.memory_space<vmem>>, vector<10x896xbf16>
    %c0_1 = arith.constant 0 : index
    %c0_2 = arith.constant 0 : index
    %1 = vector.load %arg2[%c0_1, %c0_2] : memref<896x128xbf16, #tpu.memory_space<vmem>>, vector<896x128xbf16>
    %cst = arith.constant dense<0.000000e+00> : vector<10x128xf32>
    %2 = tpu.matmul %0, %1, %cst {dimension_numbers = #tpu.dot_dimension_numbers<[1], [0], [0], [1], [0, 0, 1, 1], [], []>} : vector<10x896xbf16>, vector<896x128xbf16>, vector<10x128xf32> -> vector<10x128xf32>
    %c0_3 = arith.constant 0 : index
    %c0_4 = arith.constant 0 : index
    %3 = vector.load %arg3[%c0_3, %c0_4] : memref<10x1xf32, #tpu.memory_space<vmem>>, vector<10x1xf32>
    %4 = vector.broadcast %3 : vector<10x1xf32> to vector<10x128xf32>
    %5 = arith.addf %2, %4 : vector<10x128xf32>
    %c0_5 = arith.constant 0 : index
    %c0_6 = arith.constant 0 : index
    %6 = vector.load %arg4[%c0_5, %c0_6] : memref<10x128xf32, #tpu.memory_space<vmem>>, vector<10x128xf32>
    tpu.vector_store %arg4[%c0_5, %c0_6], %5 {strides = array<i32>} : memref<10x128xf32, #tpu.memory_space<vmem>>, vector<10x128xf32>,
    return
  }
  func.func @transform_0(%arg0: i32) -> (i32, i32) {
    %c0_i32 = arith.constant 0 : i32
    %c0_i32_0 = arith.constant 0 : i32
    %c0_i32_1 = arith.constant 0 : i32
    return %c0_i32, %c0_i32_0 : i32, i32
  }
  func.func @transform_1(%arg0: i32) -> (i32, i32) {
    %c0_i32 = arith.constant 0 : i32
    %c0_i32_0 = arith.constant 0 : i32
    return %c0_i32, %arg0 : i32, i32
  }
  func.func @transform_2(%arg0: i32) -> (i32, i32) {
    %c0_i32 = arith.constant 0 : i32
    %c0_i32_0 = arith.constant 0 : i32
    %c0_i32_1 = arith.constant 0 : i32
    return %c0_i32, %c0_i32_0 : i32, i32
  }
  func.func @transform_3(%arg0: i32) -> (i32, i32) {
    %c0_i32 = arith.constant 0 : i32
    %c0_i32_0 = arith.constant 0 : i32
    return %c0_i32, %arg0 : i32, i32
  }
}

</mosaic_0001>

<bundles_post_ra>
// kernel: forward.5
= control target key start
LH: loop header
LB: loop body
LE: loop exit
PB: predicated region body
PF: predicated region fallthrough
CT: control target
= control target key end

     0   :  { %s883_s12 = smov 0   ;;  %s885_s13 = smov 0   ;;  %s1108_s0 = inlined_call_operand.vmem [shape: bf16[16,128], index: 0, kind: input, shape index: {}]   ;;  %s1109_s1 = inlined_call_operand.vmem [shape: bf16[128,2048], index: 1, kind: input, shape index: {}]   ;;  %s1110_s2 = inlined_call_operand.vmem [shape: f32[16,1], index: 2, kind: input, shape index: {}]   ;;  %s1111_s3 = inlined_call_operand.vmem [shape: f32[16,2048], index: 3, kind: output, shape index: {}]  }
   0x1   :  { %s887_s14 = smov 0  }
   0x2 LB: > { %s630_s15 = sadd.s32 4294967295, %s860_s14   ;;  %s900_s16 = sadd.s32 1, %s860_s14   ;;  %s860_s14 = sphi %s887_s14, %s1115_s14   ;;  %s856_s13 = sphi %s885_s13, %s1114_s13   ;;  %s852_s12 = sphi %s883_s12, %s1113_s12  }
   0x3   : > { %s38_s17 = ssub.s32 %s860_s14, %s900_s16  ;;  %s41_s18 = sadd.s32 1, %s856_s13 }
   0x4   : > { %p39_p0 = scmp.eq.s32.totalorder %s38_s17, 0  ;;  %p48_p1 = scmp.ne.s32.totalorder %s856_s13, %s852_s12 }
   0x5   : > { %p49_p2 = scmp.eq.s32.totalorder %s860_s14, 0  ;;  %p99_p3 = scmp.eq.s32.totalorder %s630_s15, 3 }
   0x6   : > { %s911_s19 = scalar_select %p39_p0, %s856_s13, %s41_s18  }
   0x7   : > { %p50_p4 = por %p49_p2, %p48_p1  ;;  %p913_p5 = por %p99_p3, %p48_p1 }
   0x8   : > { %p633_p6 = scmp.ge.s32.totalorder %s860_s14, 4 }
   0xa   : > { %127 = sbr.rel (%p633_p6) target bundleno = 51 (0x33), region = 24 }
   0xf   : > { %130 = sbr.rel (!%p50_p4) target bundleno = 51 (0x33), region = 28  ;;  %s132_s21 = sand.u32 (%p50_p4), 1, %s856_s13  }
  0x10   : > { %s777_s22 = sshll.u32 (%p50_p4), %s860_s14, 4  ;;  %s634_s23 = sshll.u32 (%p50_p4), %s132_s21, 8 }
  0x11   : > { %s923_s26 = scalar_lea.vmem (%p50_p4), %s1109_s1, %s777_s22  ;;  %s928_s27 = scalar_lea.vmem (%p50_p4), [#allocation2], %s634_s23 }
  0x12   : > { %v150_v0 = vld [vmem:[%s923_s26] sm:$0xff] (%p50_p4)  ;;  %v152_v1 = vld [vmem:[%s923_s26 + $0x8] sm:$0xff] (%p50_p4) }
  0x13   : > { %v154_v2 = vld [vmem:[%s923_s26 + $0x40] sm:$0xff] (%p50_p4)  ;;  %151 = vst [vmem:[%s928_s27] sm:$0xff] (%p50_p4), %v150_v0  ;;  %v156_v3 = vld [vmem:[%s923_s26 + $0x48] sm:$0xff] (%p50_p4) }
  0x14   : > { %153 = vst [vmem:[%s928_s27 + $0x8] sm:$0xff] %v152_v1  ;;  %v158_v4 = vld [vmem:[%s923_s26 + $0x80] sm:$0xff]  ;;  %v160_v5 = vld [vmem:[%s923_s26 + $0x88] sm:$0xff] }
  0x15   : > { %155 = vst [vmem:[%s928_s27 + $0x10] sm:$0xff] %v154_v2  ;;  %v162_v6 = vld [vmem:[%s923_s26 + $0xc0] sm:$0xff]  ;;  %v164_v7 = vld [vmem:[%s923_s26 + $0xc8] sm:$0xff] }
  0x16   : > { %157 = vst [vmem:[%s928_s27 + $0x18] sm:$0xff] %v156_v3  ;;  %v166_v8 = vld [vmem:[%s923_s26 + $0x100] sm:$0xff]  ;;  %v168_v9 = vld [vmem:[%s923_s26 + $0x108] sm:$0xff] }
  0x17   : > { %159 = vst [vmem:[%s928_s27 + $0x20] sm:$0xff] %v158_v4  ;;  %v170_v10 = vld [vmem:[%s923_s26 + $0x140] sm:$0xff]  ;;  %v172_v11 = vld [vmem:[%s923_s26 + $0x148] sm:$0xff] }
  0x18   : > { %161 = vst [vmem:[%s928_s27 + $0x28] sm:$0xff] %v160_v5  ;;  %v174_v12 = vld [vmem:[%s923_s26 + $0x180] sm:$0xff]  ;;  %v176_v13 = vld [vmem:[%s923_s26 + $0x188] sm:$0xff] }
  0x19   : > { %163 = vst [vmem:[%s928_s27 + $0x30] sm:$0xff] %v162_v6  ;;  %v178_v14 = vld [vmem:[%s923_s26 + $0x1c0] sm:$0xff]  ;;  %v180_v15 = vld [vmem:[%s923_s26 + $0x1c8] sm:$0xff] }
  0x1a   : > { %165 = vst [vmem:[%s928_s27 + $0x38] sm:$0xff] %v164_v7  ;;  %v182_v16 = vld [vmem:[%s923_s26 + $0x200] sm:$0xff]  ;;  %v184_v17 = vld [vmem:[%s923_s26 + $0x208] sm:$0xff] }
  0x1b   : > { %167 = vst [vmem:[%s928_s27 + $0x40] sm:$0xff] %v166_v8  ;;  %v186_v18 = vld [vmem:[%s923_s26 + $0x240] sm:$0xff]  ;;  %v188_v19 = vld [vmem:[%s923_s26 + $0x248] sm:$0xff] }
  0x1c   : > { %169 = vst [vmem:[%s928_s27 + $0x48] sm:$0xff] %v168_v9  ;;  %v190_v20 = vld [vmem:[%s923_s26 + $0x280] sm:$0xff]  ;;  %v192_v21 = vld [vmem:[%s923_s26 + $0x288] sm:$0xff] }
  0x1d   : > { %171 = vst [vmem:[%s928_s27 + $0x50] sm:$0xff] %v170_v10  ;;  %v194_v22 = vld [vmem:[%s923_s26 + $0x2c0] sm:$0xff]  ;;  %v196_v23 = vld [vmem:[%s923_s26 + $0x2c8] sm:$0xff] }
  0x1e   : > { %173 = vst [vmem:[%s928_s27 + $0x58] sm:$0xff] %v172_v11  ;;  %v198_v24 = vld [vmem:[%s923_s26 + $0x300] sm:$0xff]  ;;  %v200_v25 = vld [vmem:[%s923_s26 + $0x308] sm:$0xff] }
  0x1f   : > { %175 = vst [vmem:[%s928_s27 + $0x60] sm:$0xff] %v174_v12  ;;  %v202_v26 = vld [vmem:[%s923_s26 + $0x340] sm:$0xff]  ;;  %v204_v27 = vld [vmem:[%s923_s26 + $0x348] sm:$0xff] }
  0x20   : > { %177 = vst [vmem:[%s928_s27 + $0x68] sm:$0xff] %v176_v13  ;;  %v206_v28 = vld [vmem:[%s923_s26 + $0x380] sm:$0xff]  ;;  %v208_v29 = vld [vmem:[%s923_s26 + $0x388] sm:$0xff] }
  0x21   : > { %179 = vst [vmem:[%s928_s27 + $0x70] sm:$0xff] %v178_v14  ;;  %v210_v30 = vld [vmem:[%s923_s26 + $0x3c0] sm:$0xff]  ;;  %v212_v31 = vld [vmem:[%s923_s26 + $0x3c8] sm:$0xff] }
  0x22   : > { %181 = vst [vmem:[%s928_s27 + $0x78] sm:$0xff] %v180_v15 }
  0x23   : > { %183 = vst [vmem:[%s928_s27 + $0x80] sm:$0xff] %v182_v16 }
  0x24   : > { %185 = vst [vmem:[%s928_s27 + $0x88] sm:$0xff] %v184_v17 }
  0x25   : > { %187 = vst [vmem:[%s928_s27 + $0x90] sm:$0xff] %v186_v18 }
  0x26   : > { %189 = vst [vmem:[%s928_s27 + $0x98] sm:$0xff] %v188_v19 }
  0x27   : > { %191 = vst [vmem:[%s928_s27 + $0xa0] sm:$0xff] %v190_v20 }
  0x28   : > { %193 = vst [vmem:[%s928_s27 + $0xa8] sm:$0xff] %v192_v21 }
  0x29   : > { %195 = vst [vmem:[%s928_s27 + $0xb0] sm:$0xff] %v194_v22 }
  0x2a   : > { %197 = vst [vmem:[%s928_s27 + $0xb8] sm:$0xff] %v196_v23 }
  0x2b   : > { %199 = vst [vmem:[%s928_s27 + $0xc0] sm:$0xff] %v198_v24 }
  0x2c   : > { %201 = vst [vmem:[%s928_s27 + $0xc8] sm:$0xff] %v200_v25 }
  0x2d   : > { %203 = vst [vmem:[%s928_s27 + $0xd0] sm:$0xff] %v202_v26 }
  0x2e   : > { %205 = vst [vmem:[%s928_s27 + $0xd8] sm:$0xff] %v204_v27 }
  0x2f   : > { %207 = vst [vmem:[%s928_s27 + $0xe0] sm:$0xff] %v206_v28 }
  0x30   : > { %209 = vst [vmem:[%s928_s27 + $0xe8] sm:$0xff] %v208_v29 }
  0x31   : > { %211 = vst [vmem:[%s928_s27 + $0xf0] sm:$0xff] %v210_v30 }
  0x32   : > { %213 = vst [vmem:[%s928_s27 + $0xf8] sm:$0xff] %v212_v31 }
  0x33 PF: > { %p637_p7 = scmp.ge.s32.totalorder %s860_s14, 1  ;;  %p218_p8 = scmp.lt.s32.totalorder %s860_s14, 5 }
  0x35   : > { %p219_p9 = pnand %p637_p7, %p218_p8 }
  0x36   : > { %s225_s28 = sand.u32 (!%p219_p9), 1, %s852_s12  }
  0x37   : > { %222 = sbr.rel (%p219_p9) target bundleno = 249 (0xf9), region = 51  ;;  %s638_s29 = sshll.u32 (!%p219_p9), %s225_s28, 8 }
  0x38   : > { %s996_s30 = scalar_lea.vmem (!%p219_p9), [#allocation2], %s638_s29  ;;  %s639_s10 = sshll.u32 (!%p219_p9), %s225_s28, 6 }
  0x39   : > { %s1073_s11 = scalar_lea.vmem (!%p219_p9), [#allocation3], %s639_s10 }
  0x3c   : > { %v758_v32 = vld [vmem:[%s996_s30 + $0xe0] sm:$0xf]  ;;  %v809_v33 = vld [vmem:[%s996_s30 + $0xec] sm:$0xf0]  ;;  %v807_v34 = vld [vmem:[%s996_s30 + $0xe4] sm:$0xf] }
  0x3d   : > { %v759_v35 = vor.u32 %v809_v33, %v758_v32  ;;  %v760_v36 = vld [vmem:[%s996_s30 + $0xf0] sm:$0xf0]  ;;  %v766_v37 = vld [vmem:[%s996_s30 + $0xe8] sm:$0xf]  ;;  %v810_v38 = vld [vmem:[%s996_s30 + $0xf4] sm:$0xf0] }
  0x3e   : > { %v763_v39 = vor.u32 %v807_v34, %v760_v36  ;;  %v767_v40 = vor.u32 %v810_v38, %v766_v37  ;;  %v808_v41 = vld [vmem:[%s996_s30 + $0xec] sm:$0xf]  ;;  %v768_v42 = vld [vmem:[%s996_s30 + $0xf8] sm:$0xf0]  ;;  %v742_v43 = vld [vmem:[%s996_s30 + $0xc0] sm:$0xf] }
  0x3f   : > { %461 = vmatpush.bf16.msra.mxu0 %v759_v35  ;;  %v771_v44 = vor.u32 %v808_v41, %v768_v42  ;;  %v805_v45 = vld [vmem:[%s996_s30 + $0xcc] sm:$0xf0]  ;;  %v803_v46 = vld [vmem:[%s996_s30 + $0xc4] sm:$0xf]  ;;  %v744_v47 = vld [vmem:[%s996_s30 + $0xd0] sm:$0xf0] }
  0x40   : > { %475 = vmatpush.bf16.msra.mxu1 %v763_v39  ;;  %489 = vmatpush.bf16.msra.mxu2 %v767_v40  ;;  %v743_v48 = vor.u32 %v805_v45, %v742_v43  ;;  %v747_v49 = vor.u32 %v803_v46, %v744_v47  ;;  %v750_v50 = vld [vmem:[%s996_s30 + $0xc8] sm:$0xf]  ;;  %v806_v51 = vld [vmem:[%s996_s30 + $0xd4] sm:$0xf0]  ;;  %v804_v52 = vld [vmem:[%s996_s30 + $0xcc] sm:$0xf] }
  0x41   : > { %503 = vmatpush.bf16.msra.mxu3 %v771_v44  ;;  %v751_v53 = vor.u32 %v806_v51, %v750_v50  ;;  %v752_v54 = vld [vmem:[%s996_s30 + $0xd8] sm:$0xf0]  ;;  %v726_v55 = vld [vmem:[%s996_s30 + $0xa0] sm:$0xf]  ;;  %v801_v56 = vld [vmem:[%s996_s30 + $0xac] sm:$0xf0] }
  0x42   : > { %v755_v57 = vor.u32 %v804_v52, %v752_v54  ;;  %v799_v58 = vld [vmem:[%s996_s30 + $0xa4] sm:$0xf]  ;;  %v728_v59 = vld [vmem:[%s996_s30 + $0xb0] sm:$0xf0]  ;;  %v734_v60 = vld [vmem:[%s996_s30 + $0xa8] sm:$0xf]  ;;  %v727_v61 = vor.u32 %v801_v56, %v726_v55 }
  0x43   : > { %462 = vmatpush.bf16.msra.mxu0 %v743_v48  ;;  %v802_v62 = vld [vmem:[%s996_s30 + $0xb4] sm:$0xf0]  ;;  %v800_v63 = vld [vmem:[%s996_s30 + $0xac] sm:$0xf]  ;;  %v736_v0 = vld [vmem:[%s996_s30 + $0xb8] sm:$0xf0]  ;;  %v731_v1 = vor.u32 %v799_v58, %v728_v59 }
  0x44   : > { %476 = vmatpush.bf16.msra.mxu1 %v747_v49  ;;  %490 = vmatpush.bf16.msra.mxu2 %v751_v53  ;;  %v735_v2 = vor.u32 %v802_v62, %v734_v60  ;;  %v710_v3 = vld [vmem:[%s996_s30 + $0x80] sm:$0xf]  ;;  %v797_v4 = vld [vmem:[%s996_s30 + $0x8c] sm:$0xf0]  ;;  %v795_v5 = vld [vmem:[%s996_s30 + $0x84] sm:$0xf]  ;;  %v739_v6 = vor.u32 %v800_v63, %v736_v0 }
  0x45   : > { %504 = vmatpush.bf16.msra.mxu3 %v755_v57  ;;  %v712_v7 = vld [vmem:[%s996_s30 + $0x90] sm:$0xf0]  ;;  %v718_v8 = vld [vmem:[%s996_s30 + $0x88] sm:$0xf]  ;;  %v798_v9 = vld [vmem:[%s996_s30 + $0x94] sm:$0xf0]  ;;  %v711_v12 = vor.u32 %v797_v4, %v710_v3 }
  0x46   : > { %v796_v10 = vld [vmem:[%s996_s30 + $0x8c] sm:$0xf]  ;;  %v720_v11 = vld [vmem:[%s996_s30 + $0x98] sm:$0xf0]  ;;  %v715_v13 = vor.u32 %v795_v5, %v712_v7  ;;  %v719_v14 = vor.u32 %v798_v9, %v718_v8  ;;  %v694_v15 = vld [vmem:[%s996_s30 + $0x60] sm:$0xf] }
  0x47   : > { %463 = vmatpush.bf16.msra.mxu0 %v727_v61  ;;  %v793_v16 = vld [vmem:[%s996_s30 + $0x6c] sm:$0xf0]  ;;  %v791_v17 = vld [vmem:[%s996_s30 + $0x64] sm:$0xf]  ;;  %v723_v18 = vor.u32 %v796_v10, %v720_v11  ;;  %v696_v19 = vld [vmem:[%s996_s30 + $0x70] sm:$0xf0] }
  0x48   : > { %477 = vmatpush.bf16.msra.mxu1 %v731_v1  ;;  %491 = vmatpush.bf16.msra.mxu2 %v735_v2  ;;  %v702_v20 = vld [vmem:[%s996_s30 + $0x68] sm:$0xf]  ;;  %v794_v21 = vld [vmem:[%s996_s30 + $0x74] sm:$0xf0]  ;;  %v792_v22 = vld [vmem:[%s996_s30 + $0x6c] sm:$0xf]  ;;  %v695_v24 = vor.u32 %v793_v16, %v694_v15  ;;  %v699_v25 = vor.u32 %v791_v17, %v696_v19 }
  0x49   : > { %505 = vmatpush.bf16.msra.mxu3 %v739_v6  ;;  %v704_v23 = vld [vmem:[%s996_s30 + $0x78] sm:$0xf0]  ;;  %v703_v26 = vor.u32 %v794_v21, %v702_v20  ;;  %v678_v27 = vld [vmem:[%s996_s30 + $0x40] sm:$0xf]  ;;  %v789_v28 = vld [vmem:[%s996_s30 + $0x4c] sm:$0xf0] }
  0x4a   : > { %v787_v29 = vld [vmem:[%s996_s30 + $0x44] sm:$0xf]  ;;  %v707_v30 = vor.u32 %v792_v22, %v704_v23  ;;  %v680_v31 = vld [vmem:[%s996_s30 + $0x50] sm:$0xf0]  ;;  %v686_v32 = vld [vmem:[%s996_s30 + $0x48] sm:$0xf]  ;;  %v679_v36 = vor.u32 %v789_v28, %v678_v27 }
  0x4b   : > { %464 = vmatpush.bf16.msra.mxu0 %v711_v12  ;;  %v790_v33 = vld [vmem:[%s996_s30 + $0x54] sm:$0xf0]  ;;  %v788_v34 = vld [vmem:[%s996_s30 + $0x4c] sm:$0xf]  ;;  %v688_v35 = vld [vmem:[%s996_s30 + $0x58] sm:$0xf0]  ;;  %v683_v38 = vor.u32 %v787_v29, %v680_v31 }
  0x4c   : > { %478 = vmatpush.bf16.msra.mxu1 %v715_v13  ;;  %492 = vmatpush.bf16.msra.mxu2 %v719_v14  ;;  %v662_v37 = vld [vmem:[%s996_s30 + $0x20] sm:$0xf]  ;;  %v687_v39 = vor.u32 %v790_v33, %v686_v32  ;;  %v785_v40 = vld [vmem:[%s996_s30 + $0x2c] sm:$0xf0]  ;;  %v783_v41 = vld [vmem:[%s996_s30 + $0x24] sm:$0xf]  ;;  %v691_v43 = vor.u32 %v788_v34, %v688_v35 }
  0x4d   : > { %506 = vmatpush.bf16.msra.mxu3 %v723_v18  ;;  %v664_v42 = vld [vmem:[%s996_s30 + $0x30] sm:$0xf0]  ;;  %v670_v44 = vld [vmem:[%s996_s30 + $0x28] sm:$0xf]  ;;  %v786_v45 = vld [vmem:[%s996_s30 + $0x34] sm:$0xf0]  ;;  %v663_v50 = vor.u32 %v785_v40, %v662_v37 }
  0x4e   : > { %v283_v46 = vld [vmem:[%s1110_s2] sm:$0xff]  ;;  %v784_v47 = vld [vmem:[%s996_s30 + $0x2c] sm:$0xf]  ;;  %v672_v48 = vld [vmem:[%s996_s30 + $0x38] sm:$0xf0]  ;;  %v862_v49 = vmov 0   ;;  %v667_v51 = vor.u32 %v783_v41, %v664_v42  ;;  %v671_v52 = vor.u32 %v786_v45, %v670_v44 }
  0x4f   : > { %465 = vmatpush.bf16.msra.mxu0 %v695_v24  ;;  %837 = vset.pattern.permute.xlu0 %v862_v49  ;;  %v646_v53 = vld [vmem:[%s996_s30] sm:$0xf]  ;;  %v781_v54 = vld [vmem:[%s996_s30 + $0xc] sm:$0xf0]  ;;  %v779_v55 = vld [vmem:[%s996_s30 + $0x4] sm:$0xf]  ;;  %v675_v56 = vor.u32 %v784_v47, %v672_v48 }
  0x50   : > { %479 = vmatpush.bf16.msra.mxu1 %v699_v25  ;;  %493 = vmatpush.bf16.msra.mxu2 %v703_v26  ;;  %v648_v57 = vld [vmem:[%s996_s30 + $0x10] sm:$0xf0]  ;;  %v654_v58 = vld [vmem:[%s996_s30 + $0x8] sm:$0xf]  ;;  %v782_v59 = vld [vmem:[%s996_s30 + $0x14] sm:$0xf0]  ;;  %v647_v62 = vor.u32 %v781_v54, %v646_v53 }
  0x51   : > { %507 = vmatpush.bf16.msra.mxu3 %v707_v30  ;;  %287 = vperm.xlu0 %837, %v283_v46   ;;  %v780_v60 = vld [vmem:[%s996_s30 + $0xc] sm:$0xf]  ;;  %v656_v61 = vld [vmem:[%s996_s30 + $0x18] sm:$0xf0]  ;;  %v651_v63 = vor.u32 %v779_v55, %v648_v57  ;;  %v655_v0 = vor.u32 %v782_v59, %v654_v58  ;;  %v778_v3 = vld [vmem:[%s1108_s0] sm:$0xff]  ;;  %s811_s12 = sshll.u32 (%p913_p5), %s630_s15, 5 }
  0x52   : > { %v284_v1 = vld [vmem:[%s1110_s2 + $0x8] sm:$0xff]  ;;  %v659_v2 = vor.u32 %v780_v60, %v656_v61  ;;  %s542_s21 = scalar_lea.vmem (%p913_p5), %s1111_s3, %s811_s12 }
  0x53   : > { %466 = vmatpush.bf16.msra.mxu0 %v679_v36 }
  0x54   : > { %480 = vmatpush.bf16.msra.mxu1 %v683_v38  ;;  %494 = vmatpush.bf16.msra.mxu2 %v687_v39 }
  0x55   : > { %508 = vmatpush.bf16.msra.mxu3 %v691_v43 }
  0x57   : > { %467 = vmatpush.bf16.msra.mxu0 %v663_v50 }
  0x58   : > { %481 = vmatpush.bf16.msra.mxu1 %v667_v51  ;;  %495 = vmatpush.bf16.msra.mxu2 %v671_v52 }
  0x59   : > { %509 = vmatpush.bf16.msra.mxu3 %v675_v56  ;;  %292 = vperm.xlu0 %837, %v284_v1  }
  0x5b   : > { %468 = vmatpush.bf16.msra.mxu0 %v647_v62 }
  0x5c   : > { %482 = vmatpush.bf16.msra.mxu1 %v651_v63  ;;  %496 = vmatpush.bf16.msra.mxu2 %v655_v0 }
  0x5d   : > { %510 = vmatpush.bf16.msra.mxu3 %v659_v2 }
  0x5e   : > { %469 = vmatmul.bf16.vlgmr.msra.gmra.mxu0 %v778_v3 }
  0x5f   : > { %483 = vmatmul.bf16.vlgmr.msra.gmra.mxu1 %v778_v3  ;;  %497 = vmatmul.bf16.vlgmr.msra.gmra.mxu2 %v778_v3 }
  0x60   : > { %511 = vmatmul.bf16.vlgmr.msra.gmra.mxu3 %v778_v3 }
  0xc3   : > { %v288_v4 = vpop.permute.xlu0 %287 }
  0xcb   : > { %v293_v11 = vpop.permute.xlu0 %292 }
  0xdb   : > { %v470_v5 = vpop.f32.mrf.mxu0 }
  0xdc   : > { %v471_v6 = vadd.f32 %v470_v5, %v288_v4  ;;  %v484_v7 = vpop.f32.mrf.mxu1 }
  0xdd   : > { %v485_v8 = vadd.f32 %v484_v7, %v288_v4 }
  0xde   : > { %v517_v9 = vmax.f32 %v471_v6, 0.0 }
  0xdf   : > { %v518_v10 = vmax.f32 %v485_v8, 0.0 }
  0xe0   : > { %525 = vst [vmem:[%s1073_s11] sm:$0xff] %v517_v9 }
  0xe1   : > { %526 = vst [vmem:[%s1073_s11 + $0x8] sm:$0xff] %v518_v10 }
  0xe2   : > { %v498_v12 = vpop.f32.mrf.mxu2 }
  0xe3   : > { %v499_v13 = vadd.f32 %v498_v12, %v288_v4  ;;  %v512_v14 = vpop.f32.mrf.mxu3  ;;  %v472_v15 = vpop.f32.mrf.mxu0 }
  0xe4   : > { %v513_v16 = vadd.f32 %v512_v14, %v288_v4  ;;  %v473_v17 = vadd.f32 %v472_v15, %v293_v11  ;;  %v486_v18 = vpop.f32.mrf.mxu1 }
  0xe5   : > { %v519_v19 = vmax.f32 %v499_v13, 0.0  ;;  %v487_v20 = vadd.f32 %v486_v18, %v293_v11 }
  0xe6   : > { %v520_v21 = vmax.f32 %v513_v16, 0.0  ;;  %v521_v22 = vmax.f32 %v473_v17, 0.0 }
  0xe7   : > { %527 = vst [vmem:[%s1073_s11 + $0x10] sm:$0xff] %v519_v19  ;;  %v522_v23 = vmax.f32 %v487_v20, 0.0  ;;  %v555_v30 = vld [vmem:[%s1073_s11] sm:$0xff] (%p913_p5) }
  0xe8   : > { %528 = vst [vmem:[%s1073_s11 + $0x18] sm:$0xff] %v520_v21  ;;  %v557_v31 = vld [vmem:[%s1073_s11 + $0x8] sm:$0xff] (%p913_p5) }
  0xe9   : > { %529 = vst [vmem:[%s1073_s11 + $0x20] sm:$0xff] %v521_v22 }
  0xea   : > { %530 = vst [vmem:[%s1073_s11 + $0x28] sm:$0xff] %v522_v23  ;;  %v500_v24 = vpop.f32.mrf.mxu2 }
  0xeb   : > { %v501_v25 = vadd.f32 %v500_v24, %v293_v11  ;;  %v514_v26 = vpop.f32.mrf.mxu3  ;;  %556 = vst [vmem:[%s542_s21] sm:$0xff] (%p913_p5), %v555_v30 }
  0xec   : > { %v515_v27 = vadd.f32 %v514_v26, %v293_v11  ;;  %539 = sbr.rel (!%p913_p5) target bundleno = 249 (0xf9), region = 59  ;;  %558 = vst [vmem:[%s542_s21 + $0x8] sm:$0xff] (%p913_p5), %v557_v31 }
  0xed   : > { %v523_v28 = vmax.f32 %v501_v25, 0.0 }
  0xee   : > { %v524_v29 = vmax.f32 %v515_v27, 0.0  ;;  %v559_v32 = vld [vmem:[%s1073_s11 + $0x10] sm:$0xff] (%p913_p5) }
  0xef   : > { %531 = vst [vmem:[%s1073_s11 + $0x30] sm:$0xff] %v523_v28  ;;  %v561_v33 = vld [vmem:[%s1073_s11 + $0x18] sm:$0xff] (%p913_p5) }
  0xf0   : > { %532 = vst [vmem:[%s1073_s11 + $0x38] sm:$0xff] %v524_v29  ;;  %v563_v34 = vld [vmem:[%s1073_s11 + $0x20] sm:$0xff] (%p913_p5) }
  0xf1   : > { %560 = vst [vmem:[%s542_s21 + $0x10] sm:$0xff] %v559_v32  ;;  %v565_v35 = vld [vmem:[%s1073_s11 + $0x28] sm:$0xff] }
  0xf2   : > { %562 = vst [vmem:[%s542_s21 + $0x18] sm:$0xff] %v561_v33 }
  0xf3   : > { %564 = vst [vmem:[%s542_s21 + $0x80] sm:$0xff] %v563_v34 }
  0xf4   : > { %566 = vst [vmem:[%s542_s21 + $0x88] sm:$0xff] %v565_v35 }
  0xf6   : > { %v567_v36 = vld [vmem:[%s1073_s11 + $0x30] sm:$0xff] }
  0xf7   : > { %v569_v37 = vld [vmem:[%s1073_s11 + $0x38] sm:$0xff]  ;;  %568 = vst [vmem:[%s542_s21 + $0x90] sm:$0xff] %v567_v36 }
  0xf8   : > { %570 = vst [vmem:[%s542_s21 + $0x98] sm:$0xff] %v569_v37 }
  0xf9 PF: > { %p10_p10 = scmp.ge.s32.totalorder %s900_s16, 6   ;;  %s1113_s12 = smov %s856_s13 }
  0xfa   : > { %s1114_s13 = smov %s911_s19  ;;  %s1115_s14 = smov %s900_s16 }
  0xfb   :  { %12 = sbr.rel (!%p10_p10) target bundleno = 2 (0x2), region = 113 }

// kernel: forward.6
= control target key start
LH: loop header
LB: loop body
LE: loop exit
PB: predicated region body
PF: predicated region fallthrough
CT: control target
= control target key end

     0   :  { %s208_s6 = smov 0   ;;  %s228_s0 = inlined_call_operand.vmem [shape: f32[4,6656], index: 0, kind: input, shape index: {}]   ;;  %s229_s1 = inlined_call_operand.vmem [shape: f32[1,6656], index: 1, kind: output, shape index: {}]  }
   0x1 LB: > { %s183_s7 = sadd.s32 4294967295, %s210_s6   ;;  %p187_p0 = scmp.ge.s32.totalorder %s210_s6, 1  ;;  %s210_s6 = sphi %s208_s6, %s11_s6  }
   0x2   : > { %p88_p1 = scmp.lt.s32.totalorder %s210_s6, 14 }
   0x4   : > { %p89_p2 = pnand %p187_p0, %p88_p1 }
   0x5   : > { %s188_s8 = sshll.u32 (!%p89_p2), %s183_s7, 2 }
   0x6   : > { %92 = sbr.rel (%p89_p2) target bundleno = 21 (0x15), region = 24  ;;  %p108_p3 = scmp.lt.s32.totalorder (!%p89_p2), %s188_s8, 51 }
   0xb   : > { %s231_s8 = smov (!%p108_p3, %s188_s8), 51  ;;  %v128_v0 = vlaneseq }
   0xc   : > { %s189_s9 = sshll.u32 %s231_s8, 2  ;;  %s116_s15 = scalar_lea.vmem %s229_s1, %s231_s8 }
   0xd   : > { %s111_s12 = scalar_lea.vmem %s228_s0, %s189_s9  ;;  %vm130_vm0 = vcmp.lt.s32.totalorder %v128_v0, 512 }
   0xe   : > { %v118_v1 = vld [vmem:[%s111_s12] ss:$4 sm:$0xf]  ;;  %v191_v2 = vld [vmem:[%s111_s12 + $0x1] ss:$4 sm:$0xf] }
   0xf   : > { %v121_v3 = vmax.f32 %v118_v1, %v191_v2  ;;  %v192_v4 = vld [vmem:[%s111_s12 + $0x2] ss:$4 sm:$0xf]  ;;  %v193_v5 = vld [vmem:[%s111_s12 + $0x3] ss:$4 sm:$0xf] }
  0x10   : > { %v126_v6 = vmax.f32 %v192_v4, %v193_v5 }
  0x12   : > { %v127_v7 = vmax.f32 %v121_v3, %v126_v6 }
  0x14   : > { %132 = vst.msk [vmem:[%s116_s15] sm:$0xf] %vm130_vm0, %v127_v7 }
  0x15 PF: > { %s11_s6 = sadd.s32 1, %s210_s6  }
  0x16   : > { %p8_p4 = scmp.ge.s32.totalorder %s11_s6, 15  }
  0x18   :  { %10 = sbr.rel (!%p8_p4) target bundleno = 1 (0x1), region = 57 }

// kernel: forward.7
= control target key start
LH: loop header
LB: loop body
LE: loop exit
PB: predicated region body
PF: predicated region fallthrough
CT: control target
= control target key end

     0   :  { %s1526_s1 = inlined_call_operand.vmem [shape: bf16[512,256], index: 1, kind: input, shape index: {}]   ;;  %s1527_s0 = inlined_call_operand.vmem [shape: bf16[32,512], index: 0, kind: input, shape index: {}]   ;;  %s1528_s2 = inlined_call_operand.vmem [shape: f32[32,1], index: 2, kind: input, shape index: {}]   ;;  %s1529_s3 = inlined_call_operand.vmem [shape: f32[32,256], index: 3, kind: output, shape index: {}]  }
   0x1   :  { %v732_v0 = vld [vmem:[%s1526_s1 + $0x70] sm:$0xf]  ;;  %v953_v1 = vld [vmem:[%s1526_s1 + $0x74] sm:$0xf0]  ;;  %v724_v11 = vld [vmem:[%s1526_s1 + $0x60] sm:$0xf] }
   0x2   :  { %v796_v2 = vld [vmem:[%s1526_s1 + $0xf0] sm:$0xf]  ;;  %v733_v3 = vor.u32 %v953_v1, %v732_v0  ;;  %v969_v4 = vld [vmem:[%s1526_s1 + $0xf4] sm:$0xf0]  ;;  %v951_v13 = vld [vmem:[%s1526_s1 + $0x64] sm:$0xf0] }
   0x3   :  { %v860_v5 = vld [vmem:[%s1526_s1 + $0x170] sm:$0xf]  ;;  %v985_v6 = vld [vmem:[%s1526_s1 + $0x174] sm:$0xf0]  ;;  %v797_v7 = vor.u32 %v969_v4, %v796_v2  ;;  %v788_v14 = vld [vmem:[%s1526_s1 + $0xe0] sm:$0xf]  ;;  %v725_v16 = vor.u32 %v951_v13, %v724_v11 }
   0x4   :  { %v861_v8 = vor.u32 %v985_v6, %v860_v5  ;;  %v924_v9 = vld [vmem:[%s1526_s1 + $0x1f0] sm:$0xf]  ;;  %v1001_v10 = vld [vmem:[%s1526_s1 + $0x1f4] sm:$0xf0]  ;;  %470 = vmatpush.bf16.msra.mxu0 %v733_v3  ;;  %v967_v15 = vld [vmem:[%s1526_s1 + $0xe4] sm:$0xf0] }
   0x5   :  { %v925_v12 = vor.u32 %v1001_v10, %v924_v9  ;;  %489 = vmatpush.bf16.msra.mxu1 %v797_v7  ;;  %v789_v17 = vor.u32 %v967_v15, %v788_v14  ;;  %v852_v18 = vld [vmem:[%s1526_s1 + $0x160] sm:$0xf]  ;;  %v983_v19 = vld [vmem:[%s1526_s1 + $0x164] sm:$0xf0]  ;;  %v716_v23 = vld [vmem:[%s1526_s1 + $0x50] sm:$0xf] }
   0x6   :  { %508 = vmatpush.bf16.msra.mxu2 %v861_v8  ;;  %v916_v20 = vld [vmem:[%s1526_s1 + $0x1e0] sm:$0xf]  ;;  %v853_v21 = vor.u32 %v983_v19, %v852_v18  ;;  %v999_v22 = vld [vmem:[%s1526_s1 + $0x1e4] sm:$0xf0]  ;;  %v949_v24 = vld [vmem:[%s1526_s1 + $0x54] sm:$0xf0] }
   0x7   :  { %527 = vmatpush.bf16.msra.mxu3 %v925_v12  ;;  %v917_v25 = vor.u32 %v999_v22, %v916_v20  ;;  %v780_v26 = vld [vmem:[%s1526_s1 + $0xd0] sm:$0xf]  ;;  %v965_v27 = vld [vmem:[%s1526_s1 + $0xd4] sm:$0xf0]  ;;  %v717_v29 = vor.u32 %v949_v24, %v716_v23  ;;  %v708_v35 = vld [vmem:[%s1526_s1 + $0x40] sm:$0xf] }
   0x8   :  { %v844_v28 = vld [vmem:[%s1526_s1 + $0x150] sm:$0xf]  ;;  %471 = vmatpush.bf16.msra.mxu0 %v725_v16  ;;  %v981_v30 = vld [vmem:[%s1526_s1 + $0x154] sm:$0xf0]  ;;  %v781_v33 = vor.u32 %v965_v27, %v780_v26  ;;  %v947_v36 = vld [vmem:[%s1526_s1 + $0x44] sm:$0xf0] }
   0x9   :  { %v908_v31 = vld [vmem:[%s1526_s1 + $0x1d0] sm:$0xf]  ;;  %v997_v32 = vld [vmem:[%s1526_s1 + $0x1d4] sm:$0xf0]  ;;  %490 = vmatpush.bf16.msra.mxu1 %v789_v17  ;;  %v845_v34 = vor.u32 %v981_v30, %v844_v28  ;;  %v772_v37 = vld [vmem:[%s1526_s1 + $0xc0] sm:$0xf]  ;;  %v709_v44 = vor.u32 %v947_v36, %v708_v35 }
   0xa   :  { %509 = vmatpush.bf16.msra.mxu2 %v853_v21  ;;  %v909_v38 = vor.u32 %v997_v32, %v908_v31  ;;  %v963_v39 = vld [vmem:[%s1526_s1 + $0xc4] sm:$0xf0]  ;;  %v836_v40 = vld [vmem:[%s1526_s1 + $0x140] sm:$0xf]  ;;  %v700_v47 = vld [vmem:[%s1526_s1 + $0x30] sm:$0xf] }
   0xb   :  { %528 = vmatpush.bf16.msra.mxu3 %v917_v25  ;;  %v979_v41 = vld [vmem:[%s1526_s1 + $0x144] sm:$0xf0]  ;;  %v900_v42 = vld [vmem:[%s1526_s1 + $0x1c0] sm:$0xf]  ;;  %v773_v45 = vor.u32 %v963_v39, %v772_v37  ;;  %v945_v48 = vld [vmem:[%s1526_s1 + $0x34] sm:$0xf0] }
   0xc   :  { %v995_v43 = vld [vmem:[%s1526_s1 + $0x1c4] sm:$0xf0]  ;;  %472 = vmatpush.bf16.msra.mxu0 %v717_v29  ;;  %v837_v46 = vor.u32 %v979_v41, %v836_v40  ;;  %v764_v49 = vld [vmem:[%s1526_s1 + $0xb0] sm:$0xf]  ;;  %v961_v51 = vld [vmem:[%s1526_s1 + $0xb4] sm:$0xf0]  ;;  %v701_v56 = vor.u32 %v945_v48, %v700_v47 }
   0xd   :  { %491 = vmatpush.bf16.msra.mxu1 %v781_v33  ;;  %v901_v50 = vor.u32 %v995_v43, %v900_v42  ;;  %v828_v52 = vld [vmem:[%s1526_s1 + $0x130] sm:$0xf]  ;;  %v977_v53 = vld [vmem:[%s1526_s1 + $0x134] sm:$0xf0]  ;;  %v765_v57 = vor.u32 %v961_v51, %v764_v49  ;;  %v692_v59 = vld [vmem:[%s1526_s1 + $0x20] sm:$0xf] }
   0xe   :  { %510 = vmatpush.bf16.msra.mxu2 %v845_v34  ;;  %v892_v54 = vld [vmem:[%s1526_s1 + $0x1b0] sm:$0xf]  ;;  %v993_v55 = vld [vmem:[%s1526_s1 + $0x1b4] sm:$0xf0]  ;;  %v829_v58 = vor.u32 %v977_v53, %v828_v52  ;;  %v943_v60 = vld [vmem:[%s1526_s1 + $0x24] sm:$0xf0] }
   0xf   :  { %529 = vmatpush.bf16.msra.mxu3 %v909_v38  ;;  %v756_v61 = vld [vmem:[%s1526_s1 + $0xa0] sm:$0xf]  ;;  %v893_v62 = vor.u32 %v993_v55, %v892_v54  ;;  %v959_v63 = vld [vmem:[%s1526_s1 + $0xa4] sm:$0xf0]  ;;  %v693_v4 = vor.u32 %v943_v60, %v692_v59  ;;  %v684_v7 = vld [vmem:[%s1526_s1 + $0x10] sm:$0xf] }
  0x10   :  { %473 = vmatpush.bf16.msra.mxu0 %v709_v44  ;;  %v820_v0 = vld [vmem:[%s1526_s1 + $0x120] sm:$0xf]  ;;  %v975_v1 = vld [vmem:[%s1526_s1 + $0x124] sm:$0xf0]  ;;  %v757_v5 = vor.u32 %v959_v63, %v756_v61  ;;  %v941_v8 = vld [vmem:[%s1526_s1 + $0x14] sm:$0xf0] }
  0x11   :  { %492 = vmatpush.bf16.msra.mxu1 %v773_v45  ;;  %v884_v2 = vld [vmem:[%s1526_s1 + $0x1a0] sm:$0xf]  ;;  %v991_v3 = vld [vmem:[%s1526_s1 + $0x1a4] sm:$0xf0]  ;;  %v821_v6 = vor.u32 %v975_v1, %v820_v0  ;;  %v748_v9 = vld [vmem:[%s1526_s1 + $0x90] sm:$0xf]  ;;  %v685_v17 = vor.u32 %v941_v8, %v684_v7 }
  0x12   :  { %511 = vmatpush.bf16.msra.mxu2 %v837_v46  ;;  %v885_v10 = vor.u32 %v991_v3, %v884_v2  ;;  %v957_v11 = vld [vmem:[%s1526_s1 + $0x94] sm:$0xf0]  ;;  %v812_v12 = vld [vmem:[%s1526_s1 + $0x110] sm:$0xf]  ;;  %v676_v16 = vld [vmem:[%s1526_s1] sm:$0xf] }
  0x13   :  { %530 = vmatpush.bf16.msra.mxu3 %v901_v50  ;;  %v973_v13 = vld [vmem:[%s1526_s1 + $0x114] sm:$0xf0]  ;;  %v876_v14 = vld [vmem:[%s1526_s1 + $0x190] sm:$0xf]  ;;  %v939_v18 = vld [vmem:[%s1526_s1 + $0x4] sm:$0xf0]  ;;  %v749_v21 = vor.u32 %v957_v11, %v748_v9 }
  0x14   :  { %474 = vmatpush.bf16.msra.mxu0 %v701_v56  ;;  %v989_v15 = vld [vmem:[%s1526_s1 + $0x194] sm:$0xf0]  ;;  %v740_v19 = vld [vmem:[%s1526_s1 + $0x80] sm:$0xf]  ;;  %v955_v20 = vld [vmem:[%s1526_s1 + $0x84] sm:$0xf0]  ;;  %v813_v22 = vor.u32 %v973_v13, %v812_v12  ;;  %v677_v34 = vor.u32 %v939_v18, %v676_v16 }
  0x15   :  { %493 = vmatpush.bf16.msra.mxu1 %v765_v57  ;;  %v804_v23 = vld [vmem:[%s1526_s1 + $0x100] sm:$0xf]  ;;  %v971_v24 = vld [vmem:[%s1526_s1 + $0x104] sm:$0xf0]  ;;  %v877_v26 = vor.u32 %v989_v15, %v876_v14  ;;  %v932_v29 = vld [vmem:[%s1527_s0 + $0xc] sm:$0xf0]  ;;  %v741_v38 = vor.u32 %v955_v20, %v740_v19 }
  0x16   :  { %512 = vmatpush.bf16.msra.mxu2 %v829_v58  ;;  %v868_v25 = vld [vmem:[%s1526_s1 + $0x180] sm:$0xf]  ;;  %v987_v27 = vld [vmem:[%s1526_s1 + $0x184] sm:$0xf0]  ;;  %v930_v30 = vld [vmem:[%s1527_s0 + $0x4] sm:$0xf]  ;;  %v805_v39 = vor.u32 %v971_v24, %v804_v23 }
  0x17   :  { %531 = vmatpush.bf16.msra.mxu3 %v893_v62  ;;  %v644_v28 = vld [vmem:[%s1527_s0] sm:$0xf]  ;;  %v646_v31 = vld [vmem:[%s1527_s0 + $0x10] sm:$0xf0]  ;;  %v862_v33 = vld [vmem:[%s1526_s1 + $0x178] sm:$0xf0]  ;;  %v869_v43 = vor.u32 %v987_v27, %v868_v25 }
  0x18   :  { %475 = vmatpush.bf16.msra.mxu0 %v693_v4  ;;  %v984_v32 = vld [vmem:[%s1526_s1 + $0x174] sm:$0xf]  ;;  %v652_v35 = vld [vmem:[%s1527_s0 + $0x8] sm:$0xf]  ;;  %v798_v37 = vld [vmem:[%s1526_s1 + $0xf8] sm:$0xf0]  ;;  %v1263_v48 = vor.u32 %v932_v29, %v644_v28  ;;  %v1274_v53 = vor.u32 %v930_v30, %v646_v31 }
  0x19   :  { %494 = vmatpush.bf16.msra.mxu1 %v757_v5  ;;  %v968_v36 = vld [vmem:[%s1526_s1 + $0xf4] sm:$0xf]  ;;  %v933_v40 = vld [vmem:[%s1527_s0 + $0x14] sm:$0xf0]  ;;  %v931_v41 = vld [vmem:[%s1527_s0 + $0xc] sm:$0xf]  ;;  %v865_v44 = vor.u32 %v984_v32, %v862_v33 }
  0x1a   :  { %513 = vmatpush.bf16.msra.mxu2 %v821_v6  ;;  %v654_v42 = vld [vmem:[%s1527_s0 + $0x18] sm:$0xf0]  ;;  %v952_v45 = vld [vmem:[%s1526_s1 + $0x74] sm:$0xf]  ;;  %v801_v49 = vor.u32 %v968_v36, %v798_v37  ;;  %v982_v51 = vld [vmem:[%s1526_s1 + $0x164] sm:$0xf]  ;;  %v1276_v54 = vor.u32 %v933_v40, %v652_v35 }
  0x1b   :  { %532 = vmatpush.bf16.msra.mxu3 %v885_v10  ;;  %v734_v46 = vld [vmem:[%s1526_s1 + $0x78] sm:$0xf0]  ;;  %v1000_v47 = vld [vmem:[%s1526_s1 + $0x1f4] sm:$0xf]  ;;  %v854_v52 = vld [vmem:[%s1526_s1 + $0x168] sm:$0xf0]  ;;  %v1284_v57 = vor.u32 %v931_v41, %v654_v42 }
  0x1c   :  { %476 = vmatpush.bf16.msra.mxu0 %v685_v17  ;;  %v926_v50 = vld [vmem:[%s1526_s1 + $0x1f8] sm:$0xf0]  ;;  %v966_v55 = vld [vmem:[%s1526_s1 + $0xe4] sm:$0xf]  ;;  %v790_v56 = vld [vmem:[%s1526_s1 + $0xe8] sm:$0xf0]  ;;  %v737_v58 = vor.u32 %v952_v45, %v734_v46  ;;  %v857_v60 = vor.u32 %v982_v51, %v854_v52 }
  0x1d   :  { %495 = vmatpush.bf16.msra.mxu1 %v749_v21  ;;  %v929_v59 = vor.u32 %v1000_v47, %v926_v50  ;;  %v950_v61 = vld [vmem:[%s1526_s1 + $0x64] sm:$0xf]  ;;  %v726_v62 = vld [vmem:[%s1526_s1 + $0x68] sm:$0xf0]  ;;  %v793_v0 = vor.u32 %v966_v55, %v790_v56  ;;  %v980_v2 = vld [vmem:[%s1526_s1 + $0x154] sm:$0xf] }
  0x1e   :  { %514 = vmatpush.bf16.msra.mxu2 %v813_v22  ;;  %v998_v63 = vld [vmem:[%s1526_s1 + $0x1e4] sm:$0xf]  ;;  %v918_v1 = vld [vmem:[%s1526_s1 + $0x1e8] sm:$0xf0]  ;;  %v846_v3 = vld [vmem:[%s1526_s1 + $0x158] sm:$0xf0]  ;;  %v729_v6 = vor.u32 %v950_v61, %v726_v62 }
  0x1f   :  { %533 = vmatpush.bf16.msra.mxu3 %v877_v26  ;;  %v964_v4 = vld [vmem:[%s1526_s1 + $0xd4] sm:$0xf]  ;;  %v782_v5 = vld [vmem:[%s1526_s1 + $0xd8] sm:$0xf0]  ;;  %v86_v7 = vld [vmem:[%s1528_s2] sm:$0xff]  ;;  %v921_v8 = vor.u32 %v998_v63, %v918_v1  ;;  %v849_v9 = vor.u32 %v980_v2, %v846_v3  ;;  %v1005_v15 = vmov 0  }
  0x20   :  { %477 = vmatpush.bf16.msra.mxu0 %v677_v34  ;;  %v948_v10 = vld [vmem:[%s1526_s1 + $0x54] sm:$0xf]  ;;  %v718_v11 = vld [vmem:[%s1526_s1 + $0x58] sm:$0xf0]  ;;  %v785_v13 = vor.u32 %v964_v4, %v782_v5  ;;  %1003 = vset.pattern.permute.xlu0 %v1005_v15  ;;  %v978_v16 = vld [vmem:[%s1526_s1 + $0x144] sm:$0xf] }
  0x21   :  { %496 = vmatpush.bf16.msra.mxu1 %v741_v38  ;;  %v996_v12 = vld [vmem:[%s1526_s1 + $0x1d4] sm:$0xf]  ;;  %v910_v14 = vld [vmem:[%s1526_s1 + $0x1d8] sm:$0xf0]  ;;  %v838_v17 = vld [vmem:[%s1526_s1 + $0x148] sm:$0xf0]  ;;  %92 = vperm.xlu0 %1003, %v86_v7   ;;  %v721_v20 = vor.u32 %v948_v10, %v718_v11 }
  0x22   :  { %515 = vmatpush.bf16.msra.mxu2 %v805_v39  ;;  %v962_v18 = vld [vmem:[%s1526_s1 + $0xc4] sm:$0xf]  ;;  %v774_v19 = vld [vmem:[%s1526_s1 + $0xc8] sm:$0xf0]  ;;  %1004 = vset.pattern.permute.xlu1 %v1005_v15  ;;  %v913_v24 = vor.u32 %v996_v12, %v910_v14  ;;  %v841_v25 = vor.u32 %v978_v16, %v838_v17  ;;  %v660_v27 = vld [vmem:[%s1527_s0 + $0x20] sm:$0xf] }
  0x23   :  { %534 = vmatpush.bf16.msra.mxu3 %v869_v43  ;;  %478 = vmatmul.bf16.vlgmr.msra.gmra.mxu0 %v1263_v48  ;;  %v946_v21 = vld [vmem:[%s1526_s1 + $0x44] sm:$0xf]  ;;  %v710_v22 = vld [vmem:[%s1526_s1 + $0x48] sm:$0xf0]  ;;  %v936_v28 = vld [vmem:[%s1527_s0 + $0x2c] sm:$0xf0]  ;;  %v777_v29 = vor.u32 %v962_v18, %v774_v19 }
  0x24   :  { %497 = vmatmul.bf16.vlgmr.msra.gmra.mxu1 %v1274_v53  ;;  %546 = vmatpush.bf16.msrb.mxu0 %v737_v58  ;;  %v994_v23 = vld [vmem:[%s1526_s1 + $0x1c4] sm:$0xf]  ;;  %v902_v26 = vld [vmem:[%s1526_s1 + $0x1c8] sm:$0xf0]  ;;  %v662_v31 = vld [vmem:[%s1527_s0 + $0x30] sm:$0xf0]  ;;  %v713_v39 = vor.u32 %v946_v21, %v710_v22 }
  0x25   :  { %565 = vmatpush.bf16.msrb.mxu1 %v801_v49  ;;  %516 = vmatmul.bf16.vlgmr.msra.gmra.mxu2 %v1276_v54  ;;  %v934_v30 = vld [vmem:[%s1527_s0 + $0x24] sm:$0xf]  ;;  %v668_v32 = vld [vmem:[%s1527_s0 + $0x28] sm:$0xf]  ;;  %v937_v33 = vld [vmem:[%s1527_s0 + $0x34] sm:$0xf0]  ;;  %v905_v43 = vor.u32 %v994_v23, %v902_v26  ;;  %v1404_v49 = vor.u32 %v936_v28, %v660_v27 }
  0x26   :  { %584 = vmatpush.bf16.msrb.mxu2 %v865_v44  ;;  %535 = vmatmul.bf16.vlgmr.msra.gmra.mxu3 %v1284_v57  ;;  %v976_v34 = vld [vmem:[%s1526_s1 + $0x134] sm:$0xf]  ;;  %v830_v35 = vld [vmem:[%s1526_s1 + $0x138] sm:$0xf0]  ;;  %v935_v36 = vld [vmem:[%s1527_s0 + $0x2c] sm:$0xf]  ;;  %v1415_v56 = vor.u32 %v934_v30, %v662_v31  ;;  %v1417_v58 = vor.u32 %v937_v33, %v668_v32 }
  0x27   :  { %603 = vmatpush.bf16.msrb.mxu3 %v929_v59  ;;  %v960_v37 = vld [vmem:[%s1526_s1 + $0xb4] sm:$0xf]  ;;  %v766_v38 = vld [vmem:[%s1526_s1 + $0xb8] sm:$0xf0]  ;;  %v87_v42 = vld [vmem:[%s1528_s2 + $0x8] sm:$0xff]  ;;  %v833_v44 = vor.u32 %v976_v34, %v830_v35 }
  0x28   :  { %547 = vmatpush.bf16.msrb.mxu0 %v729_v6  ;;  %v670_v40 = vld [vmem:[%s1527_s0 + $0x38] sm:$0xf0]  ;;  %v944_v41 = vld [vmem:[%s1526_s1 + $0x34] sm:$0xf]  ;;  %v769_v50 = vor.u32 %v960_v37, %v766_v38  ;;  %v974_v51 = vld [vmem:[%s1526_s1 + $0x124] sm:$0xf] }
  0x29   :  { %566 = vmatpush.bf16.msrb.mxu1 %v793_v0  ;;  %v702_v45 = vld [vmem:[%s1526_s1 + $0x38] sm:$0xf0]  ;;  %v992_v46 = vld [vmem:[%s1526_s1 + $0x1b4] sm:$0xf]  ;;  %v822_v52 = vld [vmem:[%s1526_s1 + $0x128] sm:$0xf0]  ;;  %97 = vperm.xlu0 %1003, %v87_v42   ;;  %v1425_v61 = vor.u32 %v935_v36, %v670_v40 }
  0x2a   :  { %585 = vmatpush.bf16.msrb.mxu2 %v857_v60  ;;  %v894_v47 = vld [vmem:[%s1526_s1 + $0x1b8] sm:$0xf0]  ;;  %v88_v55 = vld [vmem:[%s1528_s2 + $0x10] sm:$0xff]  ;;  %v958_v59 = vld [vmem:[%s1526_s1 + $0xa4] sm:$0xf]  ;;  %v705_v62 = vor.u32 %v944_v41, %v702_v45  ;;  %v825_v0 = vor.u32 %v974_v51, %v822_v52 }
  0x2b   :  { %604 = vmatpush.bf16.msrb.mxu3 %v921_v8  ;;  %v758_v60 = vld [vmem:[%s1526_s1 + $0xa8] sm:$0xf0]  ;;  %102 = vperm.xlu1 %1004, %v88_v55   ;;  %v897_v63 = vor.u32 %v992_v46, %v894_v47  ;;  %v942_v1 = vld [vmem:[%s1526_s1 + $0x24] sm:$0xf]  ;;  %v972_v6 = vld [vmem:[%s1526_s1 + $0x114] sm:$0xf] }
  0x2c   :  { %548 = vmatpush.bf16.msrb.mxu0 %v721_v20  ;;  %v694_v2 = vld [vmem:[%s1526_s1 + $0x28] sm:$0xf0]  ;;  %v990_v3 = vld [vmem:[%s1526_s1 + $0x1a4] sm:$0xf]  ;;  %v761_v4 = vor.u32 %v958_v59, %v758_v60  ;;  %v814_v7 = vld [vmem:[%s1526_s1 + $0x118] sm:$0xf0] }
  0x2d   :  { %567 = vmatpush.bf16.msrb.mxu1 %v785_v13  ;;  %v886_v5 = vld [vmem:[%s1526_s1 + $0x1a8] sm:$0xf0]  ;;  %v956_v8 = vld [vmem:[%s1526_s1 + $0x94] sm:$0xf]  ;;  %v697_v10 = vor.u32 %v942_v1, %v694_v2  ;;  %v89_v11 = vld [vmem:[%s1528_s2 + $0x18] sm:$0xff]  ;;  %v817_v13 = vor.u32 %v972_v6, %v814_v7 }
  0x2e   :  { %586 = vmatpush.bf16.msrb.mxu2 %v849_v9  ;;  %v750_v9 = vld [vmem:[%s1526_s1 + $0x98] sm:$0xf0]  ;;  %v889_v12 = vor.u32 %v990_v3, %v886_v5  ;;  %v940_v14 = vld [vmem:[%s1526_s1 + $0x14] sm:$0xf]  ;;  %v970_v19 = vld [vmem:[%s1526_s1 + $0x104] sm:$0xf] }
  0x2f   :  { %605 = vmatpush.bf16.msrb.mxu3 %v913_v24  ;;  %v686_v15 = vld [vmem:[%s1526_s1 + $0x18] sm:$0xf0]  ;;  %v988_v16 = vld [vmem:[%s1526_s1 + $0x194] sm:$0xf]  ;;  %v753_v17 = vor.u32 %v956_v8, %v750_v9  ;;  %v806_v20 = vld [vmem:[%s1526_s1 + $0x108] sm:$0xf0] }
  0x30   :  { %549 = vmatpush.bf16.msrb.mxu0 %v713_v39  ;;  %v878_v18 = vld [vmem:[%s1526_s1 + $0x198] sm:$0xf0]  ;;  %v954_v21 = vld [vmem:[%s1526_s1 + $0x84] sm:$0xf]  ;;  %v742_v22 = vld [vmem:[%s1526_s1 + $0x88] sm:$0xf0]  ;;  %v689_v23 = vor.u32 %v940_v14, %v686_v15 }
  0x31   :  { %568 = vmatpush.bf16.msrb.mxu1 %v777_v29  ;;  %v881_v24 = vor.u32 %v988_v16, %v878_v18  ;;  %v938_v26 = vld [vmem:[%s1526_s1 + $0x4] sm:$0xf]  ;;  %v678_v27 = vld [vmem:[%s1526_s1 + $0x8] sm:$0xf0]  ;;  %v745_v28 = vor.u32 %v954_v21, %v742_v22 }
  0x32   :  { %587 = vmatpush.bf16.msrb.mxu2 %v841_v25  ;;  %v809_v25 = vor.u32 %v970_v19, %v806_v20  ;;  %v986_v29 = vld [vmem:[%s1526_s1 + $0x184] sm:$0xf]  ;;  %v870_v30 = vld [vmem:[%s1526_s1 + $0x188] sm:$0xf0]  ;;  %v681_v31 = vor.u32 %v938_v26, %v678_v27 }
  0x33   :  { %606 = vmatpush.bf16.msrb.mxu3 %v905_v43  ;;  %483 = vmatmul.bf16.gmra.mxu0 %v1404_v49  ;;  %v873_v32 = vor.u32 %v986_v29, %v870_v30 }
  0x34   :  { %502 = vmatmul.bf16.gmra.mxu1 %v1415_v56  ;;  %550 = vmatpush.bf16.msrb.mxu0 %v705_v62 }
  0x35   :  { %569 = vmatpush.bf16.msrb.mxu1 %v769_v50  ;;  %521 = vmatmul.bf16.gmra.mxu2 %v1417_v58 }
  0x36   :  { %588 = vmatpush.bf16.msrb.mxu2 %v833_v44  ;;  %540 = vmatmul.bf16.gmra.mxu3 %v1425_v61 }
  0x37   :  { %607 = vmatpush.bf16.msrb.mxu3 %v897_v63  ;;  %107 = vperm.xlu1 %1004, %v89_v11  }
  0x38   :  { %551 = vmatpush.bf16.msrb.mxu0 %v697_v10 }
  0x39   :  { %570 = vmatpush.bf16.msrb.mxu1 %v761_v4 }
  0x3a   :  { %589 = vmatpush.bf16.msrb.mxu2 %v825_v0 }
  0x3b   :  { %608 = vmatpush.bf16.msrb.mxu3 %v889_v12 }
  0x3c   :  { %552 = vmatpush.bf16.msrb.mxu0 %v689_v23 }
  0x3d   :  { %571 = vmatpush.bf16.msrb.mxu1 %v753_v17 }
  0x3e   :  { %590 = vmatpush.bf16.msrb.mxu2 %v817_v13 }
  0x3f   :  { %609 = vmatpush.bf16.msrb.mxu3 %v881_v24 }
  0x40   :  { %553 = vmatpush.bf16.msrb.mxu0 %v681_v31 }
  0x41   :  { %572 = vmatpush.bf16.msrb.mxu1 %v745_v28 }
  0x42   :  { %591 = vmatpush.bf16.msrb.mxu2 %v809_v25 }
  0x43   :  { %610 = vmatpush.bf16.msrb.mxu3 %v873_v32  ;;  %554 = vmatmul.bf16.vlgmr.msrb.gmra.mxu0 %v1263_v48 }
  0x44   :  { %573 = vmatmul.bf16.vlgmr.msrb.gmra.mxu1 %v1274_v53 }
  0x45   :  { %592 = vmatmul.bf16.vlgmr.msrb.gmra.mxu2 %v1276_v54 }
  0x46   :  { %611 = vmatmul.bf16.vlgmr.msrb.gmra.mxu3 %v1284_v57 }
  0x53   :  { %559 = vmatmul.bf16.gmra.mxu0 %v1404_v49 }
  0x54   :  { %578 = vmatmul.bf16.gmra.mxu1 %v1415_v56 }
  0x55   :  { %597 = vmatmul.bf16.gmra.mxu2 %v1417_v58 }
  0x56   :  { %616 = vmatmul.bf16.gmra.mxu3 %v1425_v61 }
  0x93   :  { %v93_v33 = vpop.permute.xlu0 %92 }
  0x9b   :  { %v98_v38 = vpop.permute.xlu0 %97 }
  0x9d   :  { %v103_v43 = vpop.permute.xlu1 %102 }
  0xa0   :  { %v479_v34 = vpop.f32.mrf.mxu0 }
  0xa1   :  { %v480_v35 = vadd.f32 %v479_v34, %v93_v33  ;;  %v498_v36 = vpop.f32.mrf.mxu1 }
  0xa3   :  { %v499_v37 = vadd.f32 %v498_v36, %v480_v35 }
  0xa8   :  { %v517_v48 = vpop.f32.mrf.mxu2  ;;  %v481_v54 = vpop.f32.mrf.mxu0 }
  0xa9   :  { %v518_v53 = vadd.f32 %v517_v48, %v499_v37  ;;  %v536_v39 = vpop.f32.mrf.mxu3  ;;  %v500_v40 = vpop.f32.mrf.mxu1  ;;  %v482_v41 = vadd.f32 %v481_v54, %v98_v38 }
  0xaa   :  { %v108_v59 = vpop.permute.xlu1 %107 }
  0xab   :  { %v537_v57 = vadd.f32 %v536_v39, %v518_v53  ;;  %v501_v44 = vadd.f32 %v500_v40, %v482_v41 }
  0xad   :  { %v622_v42 = vmax.f32 %v537_v57, 0.0 }
  0xaf   :  { %630 = vst [vmem:[%s1529_s3] sm:$0xff] %v622_v42 }
  0xb0   :  { %v519_v45 = vpop.f32.mrf.mxu2  ;;  %v484_v49 = vpop.f32.mrf.mxu0 }
  0xb1   :  { %v520_v46 = vadd.f32 %v519_v45, %v501_v44  ;;  %v538_v47 = vpop.f32.mrf.mxu3  ;;  %v485_v50 = vadd.f32 %v484_v49, %v103_v43  ;;  %v503_v51 = vpop.f32.mrf.mxu1 }
  0xb3   :  { %v539_v52 = vadd.f32 %v538_v47, %v520_v46  ;;  %v504_v56 = vadd.f32 %v503_v51, %v485_v50 }
  0xb5   :  { %v624_v55 = vmax.f32 %v539_v52, 0.0 }
  0xb7   :  { %632 = vst [vmem:[%s1529_s3 + $0x10] sm:$0xff] %v624_v55 }
  0xb8   :  { %v522_v58 = vpop.f32.mrf.mxu2  ;;  %v486_v62 = vpop.f32.mrf.mxu0 }
  0xb9   :  { %v523_v60 = vadd.f32 %v522_v58, %v504_v56  ;;  %v541_v61 = vpop.f32.mrf.mxu3  ;;  %v505_v63 = vpop.f32.mrf.mxu1  ;;  %v487_v1 = vadd.f32 %v486_v62, %v108_v59 }
  0xbb   :  { %v542_v0 = vadd.f32 %v541_v61, %v523_v60  ;;  %v506_v3 = vadd.f32 %v505_v63, %v487_v1 }
  0xbd   :  { %v626_v2 = vmax.f32 %v542_v0, 0.0 }
  0xbf   :  { %634 = vst [vmem:[%s1529_s3 + $0x20] sm:$0xff] %v626_v2 }
  0xc0   :  { %v524_v4 = vpop.f32.mrf.mxu2  ;;  %v555_v7 = vpop.f32.mrf.mxu0 }
  0xc1   :  { %v525_v5 = vadd.f32 %v524_v4, %v506_v3  ;;  %v543_v6 = vpop.f32.mrf.mxu3  ;;  %v574_v8 = vpop.f32.mrf.mxu1  ;;  %v556_v10 = vadd.f32 %v555_v7, %v93_v33 }
  0xc3   :  { %v544_v9 = vadd.f32 %v543_v6, %v525_v5  ;;  %v575_v12 = vadd.f32 %v574_v8, %v556_v10 }
  0xc5   :  { %v628_v11 = vmax.f32 %v544_v9, 0.0 }
  0xc7   :  { %636 = vst [vmem:[%s1529_s3 + $0x30] sm:$0xff] %v628_v11 }
  0xc8   :  { %v593_v13 = vpop.f32.mrf.mxu2  ;;  %v557_v16 = vpop.f32.mrf.mxu0 }
  0xc9   :  { %v612_v14 = vpop.f32.mrf.mxu3  ;;  %v594_v15 = vadd.f32 %v593_v13, %v575_v12  ;;  %v576_v17 = vpop.f32.mrf.mxu1  ;;  %v558_v19 = vadd.f32 %v557_v16, %v98_v38 }
  0xcb   :  { %v613_v18 = vadd.f32 %v612_v14, %v594_v15  ;;  %v577_v21 = vadd.f32 %v576_v17, %v558_v19 }
  0xcd   :  { %v623_v20 = vmax.f32 %v613_v18, 0.0 }
  0xcf   :  { %631 = vst [vmem:[%s1529_s3 + $0x8] sm:$0xff] %v623_v20 }
  0xd0   :  { %v595_v22 = vpop.f32.mrf.mxu2  ;;  %v560_v25 = vpop.f32.mrf.mxu0 }
  0xd1   :  { %v614_v23 = vpop.f32.mrf.mxu3  ;;  %v596_v24 = vadd.f32 %v595_v22, %v577_v21  ;;  %v561_v26 = vadd.f32 %v560_v25, %v103_v43  ;;  %v579_v28 = vpop.f32.mrf.mxu1 }
  0xd3   :  { %v615_v27 = vadd.f32 %v614_v23, %v596_v24  ;;  %v580_v30 = vadd.f32 %v579_v28, %v561_v26 }
  0xd5   :  { %v625_v29 = vmax.f32 %v615_v27, 0.0 }
  0xd7   :  { %633 = vst [vmem:[%s1529_s3 + $0x18] sm:$0xff] %v625_v29 }
  0xd8   :  { %v598_v31 = vpop.f32.mrf.mxu2  ;;  %v562_v34 = vpop.f32.mrf.mxu0 }
  0xd9   :  { %v617_v32 = vpop.f32.mrf.mxu3  ;;  %v599_v33 = vadd.f32 %v598_v31, %v580_v30  ;;  %v563_v36 = vadd.f32 %v562_v34, %v108_v59  ;;  %v581_v48 = vpop.f32.mrf.mxu1 }
  0xdb   :  { %v618_v35 = vadd.f32 %v617_v32, %v599_v33  ;;  %v582_v38 = vadd.f32 %v581_v48, %v563_v36 }
  0xdd   :  { %v627_v37 = vmax.f32 %v618_v35, 0.0 }
  0xdf   :  { %635 = vst [vmem:[%s1529_s3 + $0x28] sm:$0xff] %v627_v37 }
  0xe0   :  { %v600_v53 = vpop.f32.mrf.mxu2 }
  0xe1   :  { %v601_v39 = vadd.f32 %v600_v53, %v582_v38  ;;  %v619_v54 = vpop.f32.mrf.mxu3 }
  0xe3   :  { %v620_v40 = vadd.f32 %v619_v54, %v601_v39 }
  0xe5   :  { %v629_v57 = vmax.f32 %v620_v40, 0.0 }
  0xe7   :  { %637 = vst [vmem:[%s1529_s3 + $0x38] sm:$0xff] %v629_v57 }

// kernel: forward.8
= control target key start
LH: loop header
LB: loop body
LE: loop exit
PB: predicated region body
PF: predicated region fallthrough
CT: control target
= control target key end

     0   :  { %s208_s6 = smov 0   ;;  %s228_s0 = inlined_call_operand.vmem [shape: f32[4,2048], index: 0, kind: input, shape index: {}]   ;;  %s229_s1 = inlined_call_operand.vmem [shape: f32[1,2048], index: 1, kind: output, shape index: {}]  }
   0x1 LB: > { %s183_s7 = sadd.s32 4294967295, %s210_s6   ;;  %p187_p0 = scmp.ge.s32.totalorder %s210_s6, 1  ;;  %s210_s6 = sphi %s208_s6, %s11_s6  }
   0x2   : > { %p88_p1 = scmp.lt.s32.totalorder %s210_s6, 5 }
   0x4   : > { %p89_p2 = pnand %p187_p0, %p88_p1 }
   0x5   : > { %s188_s8 = sshll.u32 (!%p89_p2), %s183_s7, 2 }
   0x6   : > { %92 = sbr.rel (%p89_p2) target bundleno = 21 (0x15), region = 24  ;;  %p108_p3 = scmp.lt.s32.totalorder (!%p89_p2), %s188_s8, 15 }
   0xb   : > { %s231_s8 = smov (!%p108_p3, %s188_s8), 15  ;;  %v128_v0 = vlaneseq }
   0xc   : > { %s189_s9 = sshll.u32 %s231_s8, 2  ;;  %s116_s15 = scalar_lea.vmem %s229_s1, %s231_s8 }
   0xd   : > { %s111_s12 = scalar_lea.vmem %s228_s0, %s189_s9  ;;  %vm130_vm0 = vcmp.lt.s32.totalorder %v128_v0, 512 }
   0xe   : > { %v118_v1 = vld [vmem:[%s111_s12] ss:$4 sm:$0xf]  ;;  %v191_v2 = vld [vmem:[%s111_s12 + $0x1] ss:$4 sm:$0xf] }
   0xf   : > { %v121_v3 = vmax.f32 %v118_v1, %v191_v2  ;;  %v192_v4 = vld [vmem:[%s111_s12 + $0x2] ss:$4 sm:$0xf]  ;;  %v193_v5 = vld [vmem:[%s111_s12 + $0x3] ss:$4 sm:$0xf] }
  0x10   : > { %v126_v6 = vmax.f32 %v192_v4, %v193_v5 }
  0x12   : > { %v127_v7 = vmax.f32 %v121_v3, %v126_v6 }
  0x14   : > { %132 = vst.msk [vmem:[%s116_s15] sm:$0xf] %vm130_vm0, %v127_v7 }
  0x15 PF: > { %s11_s6 = sadd.s32 1, %s210_s6  }
  0x16   : > { %p8_p4 = scmp.ge.s32.totalorder %s11_s6, 6  }
  0x18   :  { %10 = sbr.rel (!%p8_p4) target bundleno = 1 (0x1), region = 57 }

// kernel: squeeze.0
= control target key start
LH: loop header
LB: loop body
LE: loop exit
PB: predicated region body
PF: predicated region fallthrough
CT: control target
= control target key end

     0   :  { %s38_s8 = smov 3  ;;  %s1959_s9 = smov 123   ;;  %vm33_vm0 = vcmask 39936   ;;  %vm1097_vm1 = vcmask 1031168   ;;  %vm1077_vm2 = vcmask 1022976   ;;  %vm1064_vm3 = vcmask 1014784   ;;  %s2446_s0 = inlined_call_operand.vmem [shape: bf16[1600], index: 0, kind: input, shape index: {}]   ;;  %s2447_s1 = inlined_call_operand.vmem [shape: bf16[32,2,5,5], index: 1, kind: output, shape index: {}]  }
   0x1   :  { %v1638_v0 = vld [vmem:[%s2446_s0] sm:$0xff]   ;;  %s55_s0 = smov 3  ;;  %s1960_s10 = smov 125   ;;  %vm1111_vm4 = vcmask 1039360   ;;  %vm1101_vm5 = vcmask 15360   ;;  %vm1104_vm6 = vcmask 39952  }
   0x2   :  { %v1639_v1 = vunpack.c.l.bf16 %v1638_v0  ;;  %v1640_v2 = vunpack.c.h.bf16 %v1638_v0  ;;  %s1961_s11 = smov 127   ;;  %s80_s12 = smov 3  ;;  %vm1081_vm7 = vcmask 23552   ;;  %vm1086_vm8 = vcmask 39960  }
   0x3   :  { %s1962_s13 = smov 122   ;;  %s1963_s14 = smov 124   ;;  %vm1068_vm9 = vcmask 31744   ;;  %vm1071_vm10 = vcmask 39968   ;;  %vm1115_vm11 = vcmask 7168   ;;  %vm1120_vm12 = vcmask 39944  }
   0x4   :  { %18 = vst [vmem:[#allocation1 + $0x8] sm:$0xff] %v1640_v2  ;;  %s1964_s15 = smov 126   ;;  %s97_s16 = smov 3 }
   0x5   :  { %31 = vst [vmem:[#allocation1] sm:$0xff] %v1639_v1  ;;  %s1965_s17 = smov 119   ;;  %s1966_s18 = smov 120  }
   0x6   :  { %s1967_s19 = smov 121   ;;  %s122_s20 = smov 3 }
   0x7   :  { %s1968_s21 = smov 116   ;;  %s1969_s22 = smov 117  }
   0x8   :  { %s1970_s23 = smov 118   ;;  %s139_s24 = smov 3 }
   0x9   :  { %s1971_s25 = smov 113   ;;  %s1972_s26 = smov 114  }
   0xa   :  { %s1973_s27 = smov 115   ;;  %s181_s28 = smov 3 }
   0xb   :  { %s164_s29 = smov 3  ;;  %s1974_s30 = smov 110  }
   0xc   :  { %v71_v3 = vld [vmem:[#allocation1] ss:$5 sm:$0x7]   ;;  %v56_v4 = vld [vmem:[#allocation1 + $0x4] ss:$5 sm:%s55_s0]   ;;  %s1975_s2 = smov 111  }
   0xd   :  { %72 = vrot.lane.b32.xlu2 %v71_v3, %s1959_s9  ;;  %57 = vrot.lane.b32.xlu1 %v56_v4, %s1960_s10  ;;  %v39_v5 = vld [vmem:[#allocation1 + $0x8] ss:$-5 sm:%s38_s8]   ;;  %v2099_v7 = vld.sshfl [vmem:[#allocation1 + $0x2] sm:$0xff pattern:$0xa5]   ;;  %s1976_s3 = smov 112  }
   0xe   :  { %40 = vrot.lane.b32.xlu0 %v39_v5, %s1961_s11  ;;  %v81_v6 = vld [vmem:[#allocation1 + $0x8] ss:$-5 sm:%s80_s12]   ;;  %v2101_v8 = vld.sshfl [vmem:[#allocation1 + $0x1] sm:$0xff pattern:$0x5555550a]   ;;  %s206_s4 = smov 3 }
   0xf   :  { %v98_v9 = vld [vmem:[#allocation1 + $0x4] ss:$5 sm:%s97_s16]   ;;  %v123_v10 = vld [vmem:[#allocation1 + $0x8] ss:$-5 sm:%s122_s20]   ;;  %s1977_s5 = smov 107   ;;  %s1978_s6 = smov 108  }
  0x10   :  { %v113_v11 = vld [vmem:[#allocation1] ss:$5 sm:$0x7]   ;;  %v140_v13 = vld [vmem:[#allocation1 + $0x4] ss:$5 sm:%s139_s24]   ;;  %s1979_s7 = smov 109  }
  0x11   :  { %v155_v12 = vld [vmem:[#allocation1] ss:$5 sm:$0x7]   ;;  %v182_v14 = vld [vmem:[#allocation1 + $0x4] ss:$5 sm:%s181_s28]   ;;  %s223_s0 = smov 3 }
  0x12   :  { %v165_v15 = vld [vmem:[#allocation1 + $0x3] ss:$5 sm:%s164_s29]   ;;  %v2110_v17 = vld.sshfl [vmem:[#allocation1] sm:$0xff pattern:$0x5555550a]   ;;  %s1980_s8 = smov 104  }
  0x13   :  { %v207_v16 = vld [vmem:[#allocation1 + $0x3] ss:$5 sm:%s206_s4]   ;;  %v224_v18 = vld [vmem:[#allocation1 + $0x4] ss:$5 sm:%s223_s0]   ;;  %s1981_s9 = smov 105   ;;  %s1982_s10 = smov 106  }
  0x14   :  { %s248_s11 = smov 3  ;;  %s1983_s12 = smov 101   ;;  %v2120_v22 = vld.sshfl [vmem:[#allocation1 + $0x1] sm:$0xff pattern:$0xa5]  }
  0x15   :  { %82 = vrot.lane.b32.xlu2 %v81_v6, %s1962_s13  ;;  %64 = vrot.lane.b32.xlu1 %v2099_v7, %s1963_s14  ;;  %v249_v19 = vld [vmem:[#allocation1 + $0x3] ss:$5 sm:%s248_s11]   ;;  %s1984_s13 = smov 102   ;;  %s1985_s14 = smov 103  }
  0x16   :  { %47 = vrot.lane.b32.xlu0 %v2101_v8, %s1964_s15  ;;  %s265_s15 = smov 3  ;;  %s1986_s16 = smov 98   ;;  %v399_v30 = vld [vmem:[#allocation1 + $0x2] ss:$5 sm:$0x7]  }
  0x17   :  { %v266_v20 = vld [vmem:[#allocation1 + $0x4] ss:$5 sm:%s265_s15]   ;;  %s290_s20 = smov 3  ;;  %s332_s24 = smov 3 }
  0x18   :  { %v291_v23 = vld [vmem:[#allocation1 + $0x3] ss:$5 sm:%s290_s20]   ;;  %s349_s28 = smov 3  ;;  %s1995_s29 = smov 89  }
  0x19   :  { %v333_v24 = vld [vmem:[#allocation1 + $0x3] ss:$5 sm:%s332_s24]   ;;  %v350_v26 = vld [vmem:[#allocation1 + $0x4] ss:$5 sm:%s349_s28]   ;;  %s1998_s4 = smov 86   ;;  %s2001_s0 = smov 83  }
  0x1a   :  { %s416_s11 = smov 3  ;;  %s458_s15 = smov 3  ;;  %v441_v41 = vld [vmem:[#allocation1 + $0x2] ss:$5 sm:$0x7]  }
  0x1b   :  { %v417_v36 = vld [vmem:[#allocation1 + $0x3] ss:$5 sm:%s416_s11]   ;;  %v483_v45 = vld [vmem:[#allocation1 + $0x2] ss:$5 sm:$0x7]   ;;  %s2010_s20 = smov 74  }
  0x1c   :  { %v459_v40 = vld [vmem:[#allocation1 + $0x3] ss:$5 sm:%s458_s15]   ;;  %v32_v47 = vld [vmem:[#allocation1] ss:$5 sm:$0x7]   ;;  %s2013_s24 = smov 71  }
  0x1d   :  { %106 = vrot.lane.b32.xlu2 %v2099_v7, %s1965_s17  ;;  %99 = vrot.lane.b32.xlu1 %v98_v9, %s1966_s18  ;;  %s1987_s17 = smov 99   ;;  %s1988_s18 = smov 100   ;;  %34 = vst.msk [vmem:[#allocation0] ss:$203 sm:$0x3] %vm33_vm0, %v32_v47  }
  0x1e   :  { %89 = vrot.lane.b32.xlu0 %v2101_v8, %s1967_s19  ;;  %s307_s19 = smov 3  ;;  %36 = vst.msk [vmem:[#allocation0 + $0x197] sm:$0x4] %vm33_vm0, %v32_v47   ;;  %v2162_v55 = vld.sshfl [vmem:[#allocation1] sm:$0xff pattern:$0xa5]  }
  0x1f   :  { %v308_v21 = vld [vmem:[#allocation1 + $0x4] ss:$5 sm:%s307_s19]   ;;  %s475_s19 = smov 3  ;;  %s2016_s28 = smov 68  }
  0x20   :  { %v476_v46 = vld [vmem:[#allocation1 + $0x9] ss:$-5 sm:%s475_s19]   ;;  %v525_v56 = vld [vmem:[#allocation1 + $0x2] ss:$5 sm:$0x7]   ;;  %s608_s11 = smov 3 }
  0x21   :  { %s2027_s15 = smov 61   ;;  %s2030_s19 = smov 58  }
  0x25   :  { %131 = vrot.lane.b32.xlu2 %v2101_v8, %s1968_s21  ;;  %124 = vrot.lane.b32.xlu1 %v123_v10, %s1969_s22  ;;  %s1989_s21 = smov 95   ;;  %s1990_s22 = smov 96  }
  0x26   :  { %114 = vrot.lane.b32.xlu0 %v113_v11, %s1970_s23  ;;  %s1991_s23 = smov 97  }
  0x2d   :  { %156 = vrot.lane.b32.xlu2 %v155_v12, %s1971_s25  ;;  %148 = vrot.lane.b32.xlu1 %v2099_v7, %s1972_s26  ;;  %s1992_s25 = smov 92   ;;  %s1993_s26 = smov 93  }
  0x2e   :  { %141 = vrot.lane.b32.xlu0 %v140_v13, %s1973_s27  ;;  %s1994_s27 = smov 94   ;;  %v632_v13 = vld [vmem:[#allocation1 + $0x1] ss:$5 sm:$0x7]  }
  0x35   :  { %183 = vrot.lane.b32.xlu2 %v182_v14, %s1974_s30  ;;  %173 = vrot.lane.b32.xlu1 %v2101_v8, %s1975_s2  ;;  %s1996_s30 = smov 90   ;;  %s1997_s2 = smov 91  }
  0x36   :  { %166 = vrot.lane.b32.xlu0 %v165_v15, %s1976_s3  ;;  %s374_s3 = smov 3 }
  0x37   :  { %v375_v28 = vld [vmem:[#allocation1 + $0x3] ss:$5 sm:%s374_s3]   ;;  %s542_s3 = smov 3 }
  0x38   :  { %v543_v62 = vld [vmem:[#allocation1 + $0x3] ss:$5 sm:%s542_s3]   ;;  %s2037_s3 = smov 47  }
  0x3d   :  { %208 = vrot.lane.b32.xlu2 %v207_v16, %s1977_s5  ;;  %198 = vrot.lane.b32.xlu1 %v2110_v17, %s1978_s6  ;;  %s1999_s5 = smov 87   ;;  %s2000_s6 = smov 88  }
  0x3e   :  { %190 = vrot.lane.b32.xlu0 %v2099_v7, %s1979_s7  ;;  %s391_s7 = smov 3 }
  0x3f   :  { %v392_v31 = vld [vmem:[#allocation1 + $0x4] ss:$5 sm:%s391_s7]   ;;  %s583_s7 = smov 3 }
  0x40   :  { %v584_v2 = vld [vmem:[#allocation1 + $0x3] ss:$5 sm:%s583_s7]   ;;  %s723_s7 = smov 3 }
  0x45   :  { %232 = vrot.lane.b32.xlu2 %v2099_v7, %s1980_s8  ;;  %225 = vrot.lane.b32.xlu1 %v224_v18, %s1981_s9  ;;  %s2002_s8 = smov 84   ;;  %s2003_s9 = smov 85  }
  0x46   :  { %215 = vrot.lane.b32.xlu0 %v2101_v8, %s1982_s10  ;;  %s433_s10 = smov 3 }
  0x47   :  { %v434_v35 = vld [vmem:[#allocation1 + $0x9] ss:$-5 sm:%s433_s10]   ;;  %s2024_s10 = smov 64  }
  0x4d   :  { %257 = vrot.lane.b32.xlu2 %v2101_v8, %s1983_s12  ;;  %250 = vrot.lane.b32.xlu1 %v249_v19, %s1984_s13  ;;  %s2004_s12 = smov 80   ;;  %s2005_s13 = smov 81  }
  0x4e   :  { %240 = vrot.lane.b32.xlu0 %v2110_v17, %s1985_s14  ;;  %s2006_s14 = smov 82  }
  0x55   :  { %282 = vrot.lane.b32.xlu2 %v2110_v17, %s1986_s16  ;;  %274 = vrot.lane.b32.xlu1 %v2099_v7, %s1987_s17  ;;  %s2007_s16 = smov 77   ;;  %s2008_s17 = smov 78  }
  0x56   :  { %267 = vrot.lane.b32.xlu0 %v266_v20, %s1988_s18  ;;  %s2009_s18 = smov 79  }
  0x5d   :  { %309 = vrot.lane.b32.xlu2 %v308_v21, %s1989_s21  ;;  %299 = vrot.lane.b32.xlu1 %v2120_v22, %s1990_s22  ;;  %s2011_s21 = smov 75   ;;  %s2012_s22 = smov 76  }
  0x5e   :  { %292 = vrot.lane.b32.xlu0 %v291_v23, %s1991_s23  ;;  %s500_s23 = smov 3 }
  0x5f   :  { %v501_v51 = vld [vmem:[#allocation1 + $0x3] ss:$5 sm:%s500_s23]   ;;  %s2032_s23 = smov 54  }
  0x65   :  { %334 = vrot.lane.b32.xlu2 %v333_v24, %s1992_s25  ;;  %324 = vrot.lane.b32.xlu1 %v2110_v17, %s1993_s26  ;;  %s2014_s25 = smov 72   ;;  %s2015_s26 = smov 73   ;;  %v673_v24 = vld [vmem:[#allocation1 + $0x1] ss:$5 sm:$0x7]  }
  0x66   :  { %316 = vrot.lane.b32.xlu0 %v2099_v7, %s1994_s27  ;;  %s517_s27 = smov 3 }
  0x67   :  { %v73_v25 = vpop.permute.xlu2 %72   ;;  %v518_v57 = vld [vmem:[#allocation1 + $0x9] ss:$-5 sm:%s517_s27]   ;;  %s2034_s27 = smov 50  }
  0x68   :  { %76 = vst.msk [vmem:[#allocation0 + $0x1] ss:$203 sm:$0x3] %vm33_vm0, %v73_v25  }
  0x69   :  { %78 = vst.msk [vmem:[#allocation0 + $0x198] sm:$0x4] %vm33_vm0, %v73_v25  }
  0x6d   :  { %358 = vrot.lane.b32.xlu2 %v2099_v7, %s1995_s29  ;;  %351 = vrot.lane.b32.xlu1 %v350_v26, %s1996_s30  ;;  %s2017_s29 = smov 69   ;;  %s2018_s30 = smov 70   ;;  %v609_v7 = vld [vmem:[#allocation1 + $0x2] ss:$5 sm:%s608_s11]  }
  0x6e   :  { %341 = vrot.lane.b32.xlu0 %v2120_v22, %s1997_s2  ;;  %s559_s2 = smov 3  ;;  %s2043_s11 = smov 41  }
  0x6f   :  { %v83_v27 = vpop.permute.xlu2 %82   ;;  %v560_v61 = vld [vmem:[#allocation1 + $0x9] ss:$-5 sm:%s559_s2]   ;;  %s690_s2 = smov 3 }
  0x70   :  { %86 = vst.msk [vmem:[#allocation0 + $0x149] ss:$-206 sm:$0x3] %vm33_vm0, %v83_v27  }
  0x75   :  { %383 = vrot.lane.b32.xlu2 %v2120_v22, %s1998_s4  ;;  %376 = vrot.lane.b32.xlu1 %v375_v28, %s1999_s5  ;;  %s2019_s4 = smov 65   ;;  %s2020_s5 = smov 66  }
  0x76   :  { %366 = vrot.lane.b32.xlu0 %v2110_v17, %s2000_s6  ;;  %s2021_s6 = smov 67  }
  0x77   :  { %v107_v29 = vpop.permute.xlu2 %106  }
  0x78   :  { %110 = vst.msk [vmem:[#allocation0 + $0x121] ss:$203 sm:$0x3] %vm33_vm0, %v107_v29  }
  0x79   :  { %112 = vst.msk [vmem:[#allocation0 + $0x51] sm:$0x4] %vm33_vm0, %v107_v29  }
  0x7d   :  { %408 = vrot.lane.b32.xlu2 %v2110_v17, %s2001_s0  ;;  %400 = vrot.lane.b32.xlu1 %v399_v30, %s2002_s8  ;;  %s567_s0 = smov 3  ;;  %s2022_s8 = smov 62   ;;  %v691_v30 = vld [vmem:[#allocation1 + $0x2] ss:$5 sm:%s690_s2]  }
  0x7e   :  { %393 = vrot.lane.b32.xlu0 %v392_v31, %s2003_s9  ;;  %v568_v3 = vld [vmem:[#allocation1 + $0x2] ss:$5 sm:%s567_s0]   ;;  %s2023_s9 = smov 63   ;;  %s2040_s0 = smov 44  }
  0x7f   :  { %v132_v32 = vpop.permute.xlu2 %131   ;;  %v58_v33 = vpop.permute.xlu1 %57   ;;  %s854_s2 = smov 3 }
  0x80   :  { %135 = vst.msk [vmem:[#allocation0 + $0x1c4] ss:$-409 sm:$0x3] %vm33_vm0, %v132_v32   ;;  %v41_v34 = vpop.permute.xlu0 %40  }
  0x81   :  { %137 = vst.msk [vmem:[#allocation0 + $0xf7] sm:$0x4] %vm33_vm0, %v132_v32  }
  0x82   :  { %61 = vst.msk [vmem:[#allocation0 + $0xa3] ss:$206 sm:$0x3] %vm33_vm0, %v58_v33  }
  0x83   :  { %44 = vst.msk [vmem:[#allocation0 + $0x148] ss:$-206 sm:$0x3] %vm33_vm0, %v41_v34  }
  0x85   :  { %435 = vrot.lane.b32.xlu2 %v434_v35, %s2004_s12  ;;  %425 = vrot.lane.b32.xlu1 %v2120_v22, %s2005_s13  ;;  %s600_s12 = smov 3  ;;  %s2025_s13 = smov 59   ;;  %v724_v35 = vld [vmem:[#allocation1 + $0x9] ss:$-5 sm:%s723_s7]  }
  0x86   :  { %418 = vrot.lane.b32.xlu0 %v417_v36, %s2006_s14  ;;  %v601_v9 = vld [vmem:[#allocation1 + $0x9] ss:$-5 sm:%s600_s12]   ;;  %s2026_s14 = smov 60   ;;  %s2044_s12 = smov 42  }
  0x87   :  { %v157_v37 = vpop.permute.xlu2 %156   ;;  %v65_v38 = vpop.permute.xlu1 %64   ;;  %v714_v36 = vld [vmem:[#allocation1 + $0x1] ss:$5 sm:$0x7]   ;;  %s1051_s7 = smov 3 }
  0x88   :  { %160 = vst.msk [vmem:[#allocation0 + $0x3] ss:$206 sm:$0x3] %vm33_vm0, %v157_v37   ;;  %v48_v39 = vpop.permute.xlu0 %47  }
  0x89   :  { %162 = vst.msk [vmem:[#allocation0 + $0x19a] sm:$0x4] %vm33_vm0, %v157_v37  }
  0x8a   :  { %68 = vst.msk [vmem:[#allocation0 + $0x120] ss:$203 sm:$0x3] %vm33_vm0, %v65_v38  }
  0x8b   :  { %70 = vst.msk [vmem:[#allocation0 + $0x50] sm:$0x4] %vm33_vm0, %v65_v38  }
  0x8c   :  { %51 = vst.msk [vmem:[#allocation0 + $0x1c2] ss:$-409 sm:$0x3] %vm33_vm0, %v48_v39  }
  0x8d   :  { %53 = vst.msk [vmem:[#allocation0 + $0xf2] sm:$0x4] %vm33_vm0, %v48_v39   ;;  %460 = vrot.lane.b32.xlu2 %v459_v40, %s2007_s16  ;;  %450 = vrot.lane.b32.xlu1 %v2110_v17, %s2008_s17  ;;  %s624_s16 = smov 3  ;;  %s2028_s17 = smov 56  }
  0x8e   :  { %442 = vrot.lane.b32.xlu0 %v441_v41, %s2009_s18  ;;  %v625_v14 = vld [vmem:[#allocation1 + $0x3] ss:$5 sm:%s624_s16]   ;;  %s2029_s18 = smov 57   ;;  %s2061_s16 = smov 23  }
  0x8f   :  { %v184_v42 = vpop.permute.xlu2 %183   ;;  %v100_v43 = vpop.permute.xlu1 %99   ;;  %v755_v40 = vld [vmem:[#allocation1 + $0x1] ss:$5 sm:$0x7]  }
  0x90   :  { %187 = vst.msk [vmem:[#allocation0 + $0xa9] ss:$203 sm:$0x3] %vm33_vm0, %v184_v42   ;;  %v90_v44 = vpop.permute.xlu0 %89  }
  0x91   :  { %103 = vst.msk [vmem:[#allocation0 + $0xa4] ss:$206 sm:$0x3] %vm33_vm0, %v100_v43  }
  0x92   :  { %93 = vst.msk [vmem:[#allocation0 + $0x1c3] ss:$-409 sm:$0x3] %vm33_vm0, %v90_v44  }
  0x93   :  { %95 = vst.msk [vmem:[#allocation0 + $0xf6] sm:$0x4] %vm33_vm0, %v90_v44  }
  0x95   :  { %484 = vrot.lane.b32.xlu2 %v483_v45, %s2010_s20  ;;  %477 = vrot.lane.b32.xlu1 %v476_v46, %s2011_s21  ;;  %s649_s20 = smov 3  ;;  %s641_s21 = smov 3 }
  0x96   :  { %467 = vrot.lane.b32.xlu0 %v2120_v22, %s2012_s22  ;;  %v650_v18 = vld [vmem:[#allocation1 + $0x2] ss:$5 sm:%s649_s20]   ;;  %v642_v19 = vld [vmem:[#allocation1 + $0x9] ss:$-5 sm:%s641_s21]   ;;  %s2031_s22 = smov 53   ;;  %s2048_s20 = smov 40  }
  0x97   :  { %v209_v48 = vpop.permute.xlu2 %208   ;;  %v125_v49 = vpop.permute.xlu1 %124   ;;  %s805_s21 = smov 3 }
  0x98   :  { %212 = vst.msk [vmem:[#allocation0 + $0x81] ss:$203 sm:$0x3] %vm33_vm0, %v209_v48   ;;  %v115_v50 = vpop.permute.xlu0 %114  }
  0x99   :  { %128 = vst.msk [vmem:[#allocation0 + $0x14a] ss:$-206 sm:$0x3] %vm33_vm0, %v125_v49  }
  0x9a   :  { %118 = vst.msk [vmem:[#allocation0 + $0x2] ss:$206 sm:$0x3] %vm33_vm0, %v115_v50  }
  0x9b   :  { %120 = vst.msk [vmem:[#allocation0 + $0x199] sm:$0x4] %vm33_vm0, %v115_v50  }
  0x9d   :  { %509 = vrot.lane.b32.xlu2 %v2120_v22, %s2013_s24  ;;  %502 = vrot.lane.b32.xlu1 %v501_v51, %s2014_s25  ;;  %s2033_s24 = smov 55   ;;  %s682_s25 = smov 3 }
  0x9e   :  { %492 = vrot.lane.b32.xlu0 %v2110_v17, %s2015_s26  ;;  %s665_s26 = smov 3  ;;  %v683_v23 = vld [vmem:[#allocation1 + $0x9] ss:$-5 sm:%s682_s25]   ;;  %s2051_s25 = smov 37  }
  0x9f   :  { %v233_v52 = vpop.permute.xlu2 %232   ;;  %v149_v53 = vpop.permute.xlu1 %148   ;;  %v666_v25 = vld [vmem:[#allocation1 + $0x8] ss:$-5 sm:%s665_s26]   ;;  %s829_s26 = smov 3 }
  0xa0   :  { %236 = vst.msk [vmem:[#allocation0 + $0x124] ss:$206 sm:$0x3] %vm33_vm0, %v233_v52   ;;  %v142_v54 = vpop.permute.xlu0 %141  }
  0xa1   :  { %238 = vst.msk [vmem:[#allocation0 + $0x57] sm:$0x4] %vm33_vm0, %v233_v52  }
  0xa2   :  { %152 = vst.msk [vmem:[#allocation0 + $0x122] ss:$206 sm:$0x3] %vm33_vm0, %v149_v53  }
  0xa3   :  { %154 = vst.msk [vmem:[#allocation0 + $0x52] sm:$0x4] %vm33_vm0, %v149_v53   ;;  %v806_v53 = vld [vmem:[#allocation1 + $0x4] ss:$5 sm:%s805_s21]  }
  0xa4   :  { %145 = vst.msk [vmem:[#allocation0 + $0xa8] ss:$203 sm:$0x3] %vm33_vm0, %v142_v54  }
  0xa5   :  { %534 = vrot.lane.b32.xlu2 %v2162_v55, %s2016_s28  ;;  %526 = vrot.lane.b32.xlu1 %v525_v56, %s2017_s29  ;;  %s2035_s28 = smov 51   ;;  %s2036_s29 = smov 52  }
  0xa6   :  { %519 = vrot.lane.b32.xlu0 %v518_v57, %s2018_s30  ;;  %s706_s30 = smov 3 }
  0xa7   :  { %v258_v58 = vpop.permute.xlu2 %257   ;;  %v174_v59 = vpop.permute.xlu1 %173   ;;  %v707_v29 = vld [vmem:[#allocation1 + $0x8] ss:$-5 sm:%s706_s30]   ;;  %s2054_s30 = smov 34  }
  0xa8   :  { %261 = vst.msk [vmem:[#allocation0 + $0x1ca] ss:$-409 sm:$0x3] %vm33_vm0, %v258_v58   ;;  %v167_v60 = vpop.permute.xlu0 %166  }
  0xa9   :  { %263 = vst.msk [vmem:[#allocation0 + $0xfa] sm:$0x4] %vm33_vm0, %v258_v58  }
  0xaa   :  { %177 = vst.msk [vmem:[#allocation0 + $0x1c8] ss:$-412 sm:$0x3] %vm33_vm0, %v174_v59  }
  0xab   :  { %179 = vst.msk [vmem:[#allocation0 + $0xf8] sm:$0x4] %vm33_vm0, %v174_v59   ;;  %v830_v59 = vld [vmem:[#allocation1 + $0x8] ss:$-5 sm:%s829_s26]   ;;  %s952_s26 = smov 3 }
  0xac   :  { %170 = vst.msk [vmem:[#allocation0 + $0x80] ss:$203 sm:$0x3] %vm33_vm0, %v167_v60  }
  0xad   :  { %561 = vrot.lane.b32.xlu2 %v560_v61, %s2019_s4  ;;  %551 = vrot.lane.b32.xlu1 %v2120_v22, %s2020_s5  ;;  %s2038_s4 = smov 48   ;;  %s2039_s5 = smov 49  }
  0xae   :  { %544 = vrot.lane.b32.xlu0 %v543_v62, %s2021_s6  ;;  %s731_s6 = smov 3 }
  0xaf   :  { %v283_v63 = vpop.permute.xlu2 %282   ;;  %v199_v0 = vpop.permute.xlu1 %198   ;;  %v732_v34 = vld [vmem:[#allocation1 + $0x2] ss:$5 sm:%s731_s6]   ;;  %s2084_s6 = smov 8  }
  0xb0   :  { %286 = vst.msk [vmem:[#allocation0 + $0x1a2] ss:$-409 sm:$0x3] %vm33_vm0, %v283_v63   ;;  %v191_v1 = vpop.permute.xlu0 %190  }
  0xb1   :  { %288 = vst.msk [vmem:[#allocation0 + $0xd2] sm:$0x4] %vm33_vm0, %v283_v63   ;;  %v855_v63 = vld [vmem:[#allocation1 + $0x2] ss:$5 sm:%s854_s2]   ;;  %s2067_s2 = smov 17  }
  0xb2   :  { %202 = vst.msk [vmem:[#allocation0 + $0x1a0] ss:$-412 sm:$0x3] %vm33_vm0, %v199_v0  }
  0xb3   :  { %204 = vst.msk [vmem:[#allocation0 + $0xd0] sm:$0x4] %vm33_vm0, %v199_v0  }
  0xb4   :  { %194 = vst.msk [vmem:[#allocation0 + $0x123] ss:$206 sm:$0x3] %vm33_vm0, %v191_v1  }
  0xb5   :  { %196 = vst.msk [vmem:[#allocation0 + $0x56] sm:$0x4] %vm33_vm0, %v191_v1   ;;  %585 = vrot.lane.b32.xlu2 %v584_v2, %s2022_s8  ;;  %575 = vrot.lane.b32.xlu1 %v2162_v55, %s2023_s9  ;;  %s2041_s8 = smov 45   ;;  %s2042_s9 = smov 46  }
  0xb6   :  { %569 = vrot.lane.b32.xlu0 %v568_v3, %s2024_s10  ;;  %s747_s10 = smov 3 }
  0xb7   :  { %v310_v4 = vpop.permute.xlu2 %309   ;;  %v226_v5 = vpop.permute.xlu1 %225   ;;  %v748_v41 = vld [vmem:[#allocation1 + $0x8] ss:$-5 sm:%s747_s10]   ;;  %s2059_s10 = smov 27  }
  0xb8   :  { %313 = vst.msk [vmem:[#allocation0 + $0xac] ss:$206 sm:$0x3] %vm33_vm0, %v310_v4   ;;  %v216_v6 = vpop.permute.xlu0 %215  }
  0xb9   :  { %229 = vst.msk [vmem:[#allocation0 + $0xaa] ss:$206 sm:$0x3] %vm33_vm0, %v226_v5   ;;  %v1127_v45 = vld [vmem:[#allocation0] sm:$0xff] }
  0xba   :  { %219 = vst.msk [vmem:[#allocation0 + $0x1c9] ss:$-409 sm:$0x3] %vm33_vm0, %v216_v6  }
  0xbb   :  { %221 = vst.msk [vmem:[#allocation0 + $0xf9] sm:$0x4] %vm33_vm0, %v216_v6   ;;  %v1378_v1 = vld [vmem:[#allocation0 + $0x120] sm:$0xff] }
  0xbd   :  { %610 = vrot.lane.b32.xlu2 %v609_v7, %s2025_s13  ;;  %602 = vrot.lane.b32.xlu1 %v601_v9, %s2026_s14  ;;  %s2045_s13 = smov 43   ;;  %s772_s14 = smov 3  ;;  %v861_v9 = vld [vmem:[#allocation1] ss:$5 sm:$0x7]  }
  0xbe   :  { %592 = vrot.lane.b32.xlu0 %v2120_v22, %s2027_s15  ;;  %s764_s15 = smov 3  ;;  %v773_v48 = vld [vmem:[#allocation1 + $0x2] ss:$5 sm:%s772_s14]  }
  0xbf   :  { %v335_v10 = vpop.permute.xlu2 %334   ;;  %v251_v11 = vpop.permute.xlu1 %250   ;;  %v765_v49 = vld [vmem:[#allocation1 + $0x4] ss:$5 sm:%s764_s15]   ;;  %s2073_s15 = smov 16  }
  0xc0   :  { %338 = vst.msk [vmem:[#allocation0 + $0x84] ss:$206 sm:$0x3] %vm33_vm0, %v335_v10   ;;  %v241_v12 = vpop.permute.xlu0 %240  }
  0xc1   :  { %254 = vst.msk [vmem:[#allocation0 + $0x82] ss:$206 sm:$0x3] %vm33_vm0, %v251_v11  }
  0xc2   :  { %244 = vst.msk [vmem:[#allocation0 + $0x1a1] ss:$-409 sm:$0x3] %vm33_vm0, %v241_v12  }
  0xc3   :  { %246 = vst.msk [vmem:[#allocation0 + $0xd1] sm:$0x4] %vm33_vm0, %v241_v12   ;;  %v902_v12 = vld [vmem:[#allocation1] ss:$5 sm:$0x7]  }
  0xc5   :  { %633 = vrot.lane.b32.xlu2 %v632_v13, %s2028_s17  ;;  %626 = vrot.lane.b32.xlu1 %v625_v14, %s2029_s18  ;;  %s2046_s18 = smov 38   ;;  %s2062_s17 = smov 24  }
  0xc6   :  { %616 = vrot.lane.b32.xlu0 %v2162_v55, %s2030_s19  ;;  %s2047_s19 = smov 39  }
  0xc7   :  { %v359_v15 = vpop.permute.xlu2 %358   ;;  %v275_v16 = vpop.permute.xlu1 %274  }
  0xc8   :  { %362 = vst.msk [vmem:[#allocation0 + $0x12a] ss:$206 sm:$0x3] %vm33_vm0, %v359_v15   ;;  %v268_v17 = vpop.permute.xlu0 %267  }
  0xc9   :  { %364 = vst.msk [vmem:[#allocation0 + $0x5a] sm:$0x4] %vm33_vm0, %v359_v15  }
  0xca   :  { %278 = vst.msk [vmem:[#allocation0 + $0x128] ss:$203 sm:$0x3] %vm33_vm0, %v275_v16   ;;  %v1308_v13 = vld [vmem:[#allocation0 + $0xd0] sm:$0xff] }
  0xcb   :  { %280 = vst.msk [vmem:[#allocation0 + $0x58] sm:$0x4] %vm33_vm0, %v275_v16  }
  0xcc   :  { %271 = vst.msk [vmem:[#allocation0 + $0xab] ss:$206 sm:$0x3] %vm33_vm0, %v268_v17  }
  0xcd   :  { %657 = vrot.lane.b32.xlu2 %v2162_v55, %s2031_s22  ;;  %651 = vrot.lane.b32.xlu1 %v650_v18, %s2032_s23  ;;  %s788_s22 = smov 3  ;;  %s2049_s23 = smov 35  }
  0xce   :  { %643 = vrot.lane.b32.xlu0 %v642_v19, %s2033_s24  ;;  %v789_v54 = vld [vmem:[#allocation1 + $0x8] ss:$-5 sm:%s788_s22]   ;;  %s2050_s24 = smov 36   ;;  %s2076_s22 = smov 13  }
  0xcf   :  { %v384_v20 = vpop.permute.xlu2 %383   ;;  %v300_v21 = vpop.permute.xlu1 %299  }
  0xd0   :  { %387 = vst.msk [vmem:[#allocation0 + $0x102] ss:$206 sm:$0x3] %vm33_vm0, %v384_v20   ;;  %v293_v22 = vpop.permute.xlu0 %292  }
  0xd1   :  { %389 = vst.msk [vmem:[#allocation0 + $0x32] sm:$0x4] %vm33_vm0, %v384_v20  }
  0xd2   :  { %303 = vst.msk [vmem:[#allocation0 + $0x100] ss:$203 sm:$0x3] %vm33_vm0, %v300_v21  }
  0xd3   :  { %305 = vst.msk [vmem:[#allocation0 + $0x30] sm:$0x4] %vm33_vm0, %v300_v21  }
  0xd4   :  { %296 = vst.msk [vmem:[#allocation0 + $0x83] ss:$206 sm:$0x3] %vm33_vm0, %v293_v22  }
  0xd5   :  { %684 = vrot.lane.b32.xlu2 %v683_v23, %s2034_s27  ;;  %674 = vrot.lane.b32.xlu1 %v673_v24, %s2035_s28  ;;  %s813_s27 = smov 3  ;;  %s2052_s28 = smov 32  }
  0xd6   :  { %667 = vrot.lane.b32.xlu0 %v666_v25, %s2036_s29  ;;  %v814_v60 = vld [vmem:[#allocation1 + $0x2] ss:$5 sm:%s813_s27]   ;;  %s2053_s29 = smov 33   ;;  %v2263_v25 = vld.sshfl [vmem:[#allocation1 + $0x1] sm:$0xff pattern:$0x5555550a]  }
  0xd7   :  { %v409_v26 = vpop.permute.xlu2 %408   ;;  %v325_v27 = vpop.permute.xlu1 %324   ;;  %s936_s27 = smov 3 }
  0xd8   :  { %412 = vst.msk [vmem:[#allocation0 + $0x1a8] ss:$-412 sm:$0x3] %vm33_vm0, %v409_v26   ;;  %v317_v28 = vpop.permute.xlu0 %316  }
  0xd9   :  { %414 = vst.msk [vmem:[#allocation0 + $0xd8] sm:$0x4] %vm33_vm0, %v409_v26  }
  0xda   :  { %328 = vst.msk [vmem:[#allocation0 + $0x1a3] ss:$-409 sm:$0x3] %vm33_vm0, %v325_v27  }
  0xdb   :  { %330 = vst.msk [vmem:[#allocation0 + $0xd6] sm:$0x4] %vm33_vm0, %v325_v27  }
  0xdc   :  { %320 = vst.msk [vmem:[#allocation0 + $0x129] ss:$203 sm:$0x3] %vm33_vm0, %v317_v28  }
  0xdd   :  { %322 = vst.msk [vmem:[#allocation0 + $0x59] sm:$0x4] %vm33_vm0, %v317_v28   ;;  %708 = vrot.lane.b32.xlu2 %v707_v29, %s2037_s3  ;;  %698 = vrot.lane.b32.xlu1 %v2162_v55, %s2038_s4  ;;  %s846_s3 = smov 3  ;;  %s2055_s4 = smov 29  }
  0xde   :  { %692 = vrot.lane.b32.xlu0 %v691_v30, %s2039_s5  ;;  %v847_v0 = vld [vmem:[#allocation1 + $0x4] ss:$5 sm:%s846_s3]   ;;  %s2056_s5 = smov 30   ;;  %v953_v30 = vld [vmem:[#allocation1 + $0x8] ss:$-5 sm:%s952_s26]   ;;  %s2068_s3 = smov 18  }
  0xdf   :  { %v436_v31 = vpop.permute.xlu2 %435   ;;  %v352_v32 = vpop.permute.xlu1 %351   ;;  %s1018_s26 = smov 3 }
  0xe0   :  { %439 = vst.msk [vmem:[#allocation0 + $0x180] ss:$-206 sm:$0x3] %vm33_vm0, %v436_v31   ;;  %v342_v33 = vpop.permute.xlu0 %341   ;;  %v943_v31 = vld [vmem:[#allocation1] ss:$5 sm:$0x7]  }
  0xe1   :  { %355 = vst.msk [vmem:[#allocation0 + $0xb0] ss:$203 sm:$0x3] %vm33_vm0, %v352_v32   ;;  %v937_v32 = vld [vmem:[#allocation1 + $0x7] ss:$-5 sm:%s936_s27]   ;;  %s2079_s27 = smov 10  }
  0xe2   :  { %345 = vst.msk [vmem:[#allocation0 + $0x101] ss:$203 sm:$0x3] %vm33_vm0, %v342_v33  }
  0xe3   :  { %347 = vst.msk [vmem:[#allocation0 + $0x31] sm:$0x4] %vm33_vm0, %v342_v33   ;;  %v1560_v21 = vld [vmem:[#allocation0 + $0x1f0] sm:$0xff]  ;;  %v1238_v33 = vld [vmem:[#allocation0 + $0x80] sm:$0xff] }
  0xe5   :  { %733 = vrot.lane.b32.xlu2 %v732_v34, %s2040_s0  ;;  %725 = vrot.lane.b32.xlu1 %v724_v35, %s2041_s8  ;;  %s2057_s0 = smov 31   ;;  %s870_s8 = smov 3 }
  0xe6   :  { %715 = vrot.lane.b32.xlu0 %v714_v36, %s2042_s9  ;;  %v871_v7 = vld [vmem:[#allocation1 + $0x8] ss:$-5 sm:%s870_s8]   ;;  %s2058_s9 = smov 26  }
  0xe7   :  { %v461_v37 = vpop.permute.xlu2 %460   ;;  %v377_v38 = vpop.permute.xlu1 %376  }
  0xe8   :  { %464 = vst.msk [vmem:[#allocation0 + $0x8a] ss:$206 sm:$0x3] %vm33_vm0, %v461_v37   ;;  %v367_v39 = vpop.permute.xlu0 %366  }
  0xe9   :  { %380 = vst.msk [vmem:[#allocation0 + $0x88] ss:$203 sm:$0x3] %vm33_vm0, %v377_v38  }
  0xea   :  { %370 = vst.msk [vmem:[#allocation0 + $0x1a4] ss:$-409 sm:$0x3] %vm33_vm0, %v367_v39  }
  0xeb   :  { %372 = vst.msk [vmem:[#allocation0 + $0xd7] sm:$0x4] %vm33_vm0, %v367_v39  }
  0xed   :  { %756 = vrot.lane.b32.xlu2 %v755_v40, %s2043_s11  ;;  %749 = vrot.lane.b32.xlu1 %v748_v41, %s2044_s12  ;;  %s2060_s11 = smov 28   ;;  %s895_s12 = smov 3  ;;  %v2279_v40 = vld.sshfl [vmem:[#allocation1] sm:$0xff pattern:$0x5555550a]  }
  0xee   :  { %739 = vrot.lane.b32.xlu0 %v2162_v55, %s2045_s13  ;;  %s887_s13 = smov 3  ;;  %v896_v15 = vld [vmem:[#allocation1 + $0x7] ss:$-5 sm:%s895_s12]   ;;  %s969_s12 = smov 3 }
  0xef   :  { %v485_v42 = vpop.permute.xlu2 %484   ;;  %v401_v43 = vpop.permute.xlu1 %400   ;;  %v888_v17 = vld [vmem:[#allocation1 + $0x4] ss:$5 sm:%s887_s13]  }
  0xf0   :  { %488 = vst.msk [vmem:[#allocation0 + $0x62] ss:$206 sm:$0x3] %vm33_vm0, %v485_v42   ;;  %v394_v44 = vpop.permute.xlu0 %393  }
  0xf1   :  { %v1133_v46 = vld [vmem:[#allocation0 + $0x8] sm:$0xff]  ;;  %490 = vst.msk [vmem:[#allocation0 + $0x1f9] sm:$0x4] %vm33_vm0, %v485_v42  }
  0xf2   :  { %v1644_v47 = vpack.c.bf16 %v1133_v46, %v1127_v45  ;;  %404 = vst.msk [vmem:[#allocation0 + $0x60] ss:$203 sm:$0x3] %vm33_vm0, %v401_v43  }
  0xf3   :  { %406 = vst.msk [vmem:[#allocation0 + $0x1f7] sm:$0x4] %vm33_vm0, %v401_v43  }
  0xf4   :  { %1645 = vst [vmem:[%s2447_s1] sm:$0xff] %v1644_v47  }
  0xf5   :  { %397 = vst.msk [vmem:[#allocation0 + $0xb1] ss:$203 sm:$0x3] %vm33_vm0, %v394_v44   ;;  %780 = vrot.lane.b32.xlu2 %v2162_v55, %s2046_s18  ;;  %774 = vrot.lane.b32.xlu1 %v773_v48, %s2047_s19  ;;  %s2063_s18 = smov 25   ;;  %s928_s19 = smov 3  ;;  %v1490_v44 = vld [vmem:[#allocation0 + $0x1a0] sm:$0xff]  ;;  %v1078_v48 = vsel %vm1077_vm2, %v2263_v25, %v2279_v40 }
  0xf6   :  { %766 = vrot.lane.b32.xlu0 %v765_v49, %s2048_s20  ;;  %s911_s20 = smov 3  ;;  %v929_v23 = vld [vmem:[#allocation1 + $0x4] ss:$5 sm:%s928_s19]   ;;  %s977_s19 = smov 3 }
  0xf7   :  { %v510_v50 = vpop.permute.xlu2 %509   ;;  %v426_v51 = vpop.permute.xlu1 %425   ;;  %v912_v26 = vld [vmem:[#allocation1 + $0x8] ss:$-5 sm:%s911_s20]  }
  0xf8   :  { %513 = vst.msk [vmem:[#allocation0 + $0x108] ss:$203 sm:$0x3] %vm33_vm0, %v510_v50   ;;  %v419_v52 = vpop.permute.xlu0 %418  }
  0xf9   :  { %515 = vst.msk [vmem:[#allocation0 + $0x38] sm:$0x4] %vm33_vm0, %v510_v50  }
  0xfa   :  { %429 = vst.msk [vmem:[#allocation0 + $0x103] ss:$206 sm:$0x3] %vm33_vm0, %v426_v51  }
  0xfb   :  { %431 = vst.msk [vmem:[#allocation0 + $0x36] sm:$0x4] %vm33_vm0, %v426_v51  }
  0xfc   :  { %422 = vst.msk [vmem:[#allocation0 + $0x89] ss:$203 sm:$0x3] %vm33_vm0, %v419_v52   ;;  %v1110_v52 = vld.sshfl [vmem:[#allocation1 + $0x2] sm:$0xff pattern:$0x5555550a]  }
  0xfd   :  { %807 = vrot.lane.b32.xlu2 %v806_v53, %s2049_s23  ;;  %797 = vrot.lane.b32.xlu1 %v2101_v8, %s2050_s24  ;;  %s2064_s23 = smov 20   ;;  %s2065_s24 = smov 21  }
  0xfe   :  { %790 = vrot.lane.b32.xlu0 %v789_v54, %s2051_s25  ;;  %s2066_s25 = smov 22   ;;  %v1168_v54 = vld [vmem:[#allocation0 + $0x30] sm:$0xff] }
  0xff   :  { %v535_v56 = vpop.permute.xlu2 %534   ;;  %v451_v57 = vpop.permute.xlu1 %450  }
 0x100   :  { %538 = vst.msk [vmem:[#allocation0 + $0xe0] ss:$203 sm:$0x3] %vm33_vm0, %v535_v56   ;;  %v443_v58 = vpop.permute.xlu0 %442  }
 0x101   :  { %540 = vst.msk [vmem:[#allocation0 + $0x10] sm:$0x4] %vm33_vm0, %v535_v56  }
 0x102   :  { %454 = vst.msk [vmem:[#allocation0 + $0x1a9] ss:$-409 sm:$0x3] %vm33_vm0, %v451_v57  }
 0x103   :  { %456 = vst.msk [vmem:[#allocation0 + $0xd9] sm:$0x4] %vm33_vm0, %v451_v57   ;;  %v970_v57 = vld [vmem:[#allocation1 + $0x4] ss:$5 sm:%s969_s12]  }
 0x104   :  { %446 = vst.msk [vmem:[#allocation0 + $0x61] ss:$203 sm:$0x3] %vm33_vm0, %v443_v58  }
 0x105   :  { %448 = vst.msk [vmem:[#allocation0 + $0x1f8] sm:$0x4] %vm33_vm0, %v443_v58   ;;  %831 = vrot.lane.b32.xlu2 %v830_v59, %s2052_s28  ;;  %821 = vrot.lane.b32.xlu1 %v2162_v55, %s2053_s29  ;;  %s1092_s28 = smov 3  ;;  %s1095_s29 = smov 3  ;;  %v1112_v59 = vsel %vm1111_vm4, %v1110_v52, %v2263_v25 }
 0x106   :  { %815 = vrot.lane.b32.xlu0 %v814_v60, %s2054_s30  ;;  %s1059_s30 = smov 3  ;;  %v1093_v36 = vld [vmem:[#allocation1 + $0x3] ss:$5 sm:%s1092_s28]   ;;  %v1096_v37 = vld [vmem:[#allocation1 + $0x4] ss:$5 sm:%s1095_s29]   ;;  %s2080_s28 = smov 9  }
 0x107   :  { %v562_v55 = vpop.permute.xlu2 %561   ;;  %v478_v61 = vpop.permute.xlu1 %477   ;;  %v1060_v41 = vld [vmem:[#allocation1 + $0x7] ss:$-5 sm:%s1059_s30]   ;;  %v1098_v47 = vsel %vm1097_vm1, %v1096_v37, %v1093_v36  ;;  %s2081_s29 = smov 11   ;;  %s1034_s30 = smov 3 }
 0x108   :  { %565 = vst.msk [vmem:[#allocation0 + $0x183] ss:$-203 sm:$0x3] %vm33_vm0, %v562_v55   ;;  %v468_v62 = vpop.permute.xlu0 %467  }
 0x109   :  { %481 = vst.msk [vmem:[#allocation0 + $0x181] ss:$-206 sm:$0x3] %vm33_vm0, %v478_v61   ;;  %v1420_v61 = vld [vmem:[#allocation0 + $0x150] sm:$0xff] }
 0x10a   :  { %471 = vst.msk [vmem:[#allocation0 + $0x104] ss:$206 sm:$0x3] %vm33_vm0, %v468_v62  }
 0x10b   :  { %v1385_v2 = vld [vmem:[#allocation0 + $0x128] sm:$0xff]  ;;  %473 = vst.msk [vmem:[#allocation0 + $0x37] sm:$0x4] %vm33_vm0, %v468_v62  }
 0x10c   :  { %v1734_v3 = vpack.c.bf16 %v1385_v2, %v1378_v1  ;;  %v984_v1 = vld [vmem:[#allocation1] ss:$5 sm:$0x7]  }
 0x10d   :  { %856 = vrot.lane.b32.xlu2 %v855_v63, %s2055_s4  ;;  %848 = vrot.lane.b32.xlu1 %v847_v0, %s2056_s5  ;;  %s1062_s4 = smov 3  ;;  %s2069_s5 = smov 19  }
 0x10e   :  { %1818 = vst [vmem:[%s2447_s1 + $0x90] sm:$0xff] %v1734_v3   ;;  %838 = vrot.lane.b32.xlu0 %v2101_v8, %s2057_s0  ;;  %v1063_v43 = vld [vmem:[#allocation1 + $0x8] ss:$-5 sm:%s1062_s4]   ;;  %v978_v3 = vld [vmem:[#allocation1 + $0x7] ss:$-5 sm:%s977_s19]   ;;  %s2082_s4 = smov 7  }
 0x10f   :  { %v586_v4 = vpop.permute.xlu2 %585   ;;  %v503_v5 = vpop.permute.xlu1 %502   ;;  %v1065_v49 = vsel %vm1064_vm3, %v1063_v43, %v1060_v41  ;;  %s2085_s0 = smov 5  }
 0x110   :  { %589 = vst.msk [vmem:[#allocation0 + $0x90] ss:$203 sm:$0x3] %vm33_vm0, %v586_v4   ;;  %v493_v6 = vpop.permute.xlu0 %492  }
 0x111   :  { %506 = vst.msk [vmem:[#allocation0 + $0x8b] ss:$206 sm:$0x3] %vm33_vm0, %v503_v5  }
 0x112   :  { %496 = vst.msk [vmem:[#allocation0 + $0x1aa] ss:$-409 sm:$0x3] %vm33_vm0, %v493_v6  }
 0x113   :  { %498 = vst.msk [vmem:[#allocation0 + $0xda] sm:$0x4] %vm33_vm0, %v493_v6  }
 0x115   :  { %879 = vrot.lane.b32.xlu2 %v2101_v8, %s2058_s9  ;;  %872 = vrot.lane.b32.xlu1 %v871_v7, %s2059_s10  ;;  %s2070_s9 = smov 2   ;;  %s2071_s10 = smov 3  }
 0x116   :  { %862 = vrot.lane.b32.xlu0 %v861_v9, %s2060_s11  ;;  %s2072_s11 = smov 4   ;;  %v1019_v9 = vld [vmem:[#allocation1 + $0x7] ss:$-5 sm:%s1018_s26]  }
 0x117   :  { %v611_v8 = vpop.permute.xlu2 %610   ;;  %v527_v10 = vpop.permute.xlu1 %526  }
 0x118   :  { %614 = vst.msk [vmem:[#allocation0 + $0x68] ss:$203 sm:$0x3] %vm33_vm0, %v611_v8   ;;  %v520_v11 = vpop.permute.xlu0 %519  }
 0x119   :  { %530 = vst.msk [vmem:[#allocation0 + $0x63] ss:$206 sm:$0x3] %vm33_vm0, %v527_v10  }
 0x11a   :  { %v1315_v14 = vld [vmem:[#allocation0 + $0xd8] sm:$0xff]  ;;  %532 = vst.msk [vmem:[#allocation0 + $0x1fa] sm:$0x4] %vm33_vm0, %v527_v10  }
 0x11b   :  { %v1709_v16 = vpack.c.bf16 %v1315_v14, %v1308_v13  ;;  %523 = vst.msk [vmem:[#allocation0 + $0x182] ss:$-206 sm:$0x3] %vm33_vm0, %v520_v11  }
 0x11d   :  { %1813 = vst [vmem:[%s2447_s1 + $0x68] sm:$0xff] %v1709_v16   ;;  %903 = vrot.lane.b32.xlu2 %v902_v12, %s2061_s16  ;;  %897 = vrot.lane.b32.xlu1 %v896_v15, %s2062_s17  ;;  %s2074_s16 = smov 15   ;;  %s2075_s17 = smov 1   ;;  %v1350_v12 = vld [vmem:[#allocation0 + $0x100] sm:$0xff] }
 0x11e   :  { %889 = vrot.lane.b32.xlu0 %v888_v17, %s2063_s18  ;;  %s993_s18 = smov 3  ;;  %v1035_v15 = vld [vmem:[#allocation1 + $0x3] ss:$5 sm:%s1034_s30]  }
 0x11f   :  { %v634_v18 = vpop.permute.xlu2 %633   ;;  %v552_v19 = vpop.permute.xlu1 %551   ;;  %v994_v2 = vld [vmem:[#allocation1 + $0x3] ss:$5 sm:%s993_s18]  }
 0x120   :  { %637 = vst.msk [vmem:[#allocation0 + $0x40] ss:$203 sm:$0x3] %vm33_vm0, %v634_v18   ;;  %v545_v20 = vpop.permute.xlu0 %544  }
 0x121   :  { %v1567_v22 = vld [vmem:[#allocation0 + $0x1f8] sm:$0xff]  ;;  %639 = vst.msk [vmem:[#allocation0 + $0x1d7] sm:$0x4] %vm33_vm0, %v634_v18  }
 0x122   :  { %v1799_v24 = vpack.c.bf16 %v1567_v22, %v1560_v21  ;;  %555 = vst.msk [vmem:[#allocation0 + $0x109] ss:$203 sm:$0x3] %vm33_vm0, %v552_v19   ;;  %v1280_v22 = vld [vmem:[#allocation0 + $0xb0] sm:$0xff] }
 0x123   :  { %557 = vst.msk [vmem:[#allocation0 + $0x39] sm:$0x4] %vm33_vm0, %v552_v19   ;;  %v1052_v19 = vld [vmem:[#allocation1 + $0x4] ss:$5 sm:%s1051_s7]  }
 0x124   :  { %1831 = vst [vmem:[%s2447_s1 + $0xf8] sm:$0xff] %v1799_v24  }
 0x125   :  { %548 = vst.msk [vmem:[#allocation0 + $0x8c] ss:$206 sm:$0x3] %vm33_vm0, %v545_v20   ;;  %930 = vrot.lane.b32.xlu2 %v929_v23, %s2064_s23  ;;  %920 = vrot.lane.b32.xlu1 %v2263_v25, %s2065_s24  ;;  %s2077_s23 = smov 12   ;;  %s2078_s24 = smov 14  }
 0x126   :  { %913 = vrot.lane.b32.xlu0 %v912_v26, %s2066_s25  ;;  %s1010_s25 = smov 3 }
 0x127   :  { %v658_v27 = vpop.permute.xlu2 %657   ;;  %v576_v28 = vpop.permute.xlu1 %575   ;;  %v1011_v7 = vld [vmem:[#allocation1 + $0x4] ss:$5 sm:%s1010_s25]  }
 0x128   :  { %661 = vst.msk [vmem:[#allocation0 + $0xe3] ss:$206 sm:$0x3] %vm33_vm0, %v658_v27   ;;  %v570_v29 = vpop.permute.xlu0 %569  }
 0x129   :  { %663 = vst.msk [vmem:[#allocation0 + $0x16] sm:$0x4] %vm33_vm0, %v658_v27   ;;  %v1532_v26 = vld [vmem:[#allocation0 + $0x1d0] sm:$0xff] }
 0x12a   :  { %579 = vst.msk [vmem:[#allocation0 + $0xe1] ss:$203 sm:$0x3] %vm33_vm0, %v576_v28  }
 0x12b   :  { %581 = vst.msk [vmem:[#allocation0 + $0x11] sm:$0x4] %vm33_vm0, %v576_v28  }
 0x12c   :  { %v1245_v34 = vld [vmem:[#allocation0 + $0x88] sm:$0xff]  ;;  %573 = vst.msk [vmem:[#allocation0 + $0x64] ss:$206 sm:$0x3] %vm33_vm0, %v570_v29  }
 0x12d   :  { %v1684_v35 = vpack.c.bf16 %v1245_v34, %v1238_v33  ;;  %954 = vrot.lane.b32.xlu2 %v953_v30, %s2067_s2  ;;  %944 = vrot.lane.b32.xlu1 %v943_v31, %s2068_s3 }
 0x12e   :  { %938 = vrot.lane.b32.xlu0 %v937_v32, %s2069_s5  ;;  %s2083_s5 = smov 6  }
 0x12f   :  { %1808 = vst [vmem:[%s2447_s1 + $0x40] sm:$0xff] %v1684_v35   ;;  %v685_v38 = vpop.permute.xlu2 %684   ;;  %v603_v39 = vpop.permute.xlu1 %602  }
 0x130   :  { %688 = vst.msk [vmem:[#allocation0 + $0x189] ss:$-206 sm:$0x3] %vm33_vm0, %v685_v38   ;;  %v593_v42 = vpop.permute.xlu0 %592  }
 0x131   :  { %v1497_v45 = vld [vmem:[#allocation0 + $0x1a8] sm:$0xff]  ;;  %606 = vst.msk [vmem:[#allocation0 + $0x184] ss:$-203 sm:$0x3] %vm33_vm0, %v603_v39  }
 0x132   :  { %v1774_v46 = vpack.c.bf16 %v1497_v45, %v1490_v44  ;;  %596 = vst.msk [vmem:[#allocation0 + $0x10a] ss:$206 sm:$0x3] %vm33_vm0, %v593_v42  }
 0x133   :  { %598 = vst.msk [vmem:[#allocation0 + $0x3a] sm:$0x4] %vm33_vm0, %v593_v42   ;;  %v1210_v34 = vld [vmem:[#allocation0 + $0x60] sm:$0xff] }
 0x134   :  { %1826 = vst [vmem:[%s2447_s1 + $0xd0] sm:$0xff] %v1774_v46  }
 0x135   :  { %1099 = vrot.lane.b32.xlu2 %v1098_v47, %s2070_s9  ;;  %1079 = vrot.lane.b32.xlu1 %v1078_v48, %s2071_s10 }
 0x136   :  { %1066 = vrot.lane.b32.xlu0 %v1065_v49, %s2072_s11 }
 0x137   :  { %v709_v50 = vpop.permute.xlu2 %708   ;;  %v627_v51 = vpop.permute.xlu1 %626  }
 0x138   :  { %712 = vst.msk [vmem:[#allocation0 + $0x161] ss:$-206 sm:$0x3] %vm33_vm0, %v709_v50   ;;  %v617_v53 = vpop.permute.xlu0 %616   ;;  %v1462_v37 = vld [vmem:[#allocation0 + $0x180] sm:$0xff] }
 0x139   :  { %630 = vst.msk [vmem:[#allocation0 + $0x91] ss:$203 sm:$0x3] %vm33_vm0, %v627_v51  }
 0x13a   :  { %v1175_v56 = vld [vmem:[#allocation0 + $0x38] sm:$0xff]  ;;  %620 = vst.msk [vmem:[#allocation0 + $0xe2] ss:$206 sm:$0x3] %vm33_vm0, %v617_v53  }
 0x13b   :  { %v1659_v58 = vpack.c.bf16 %v1175_v56, %v1168_v54  ;;  %622 = vst.msk [vmem:[#allocation0 + $0x12] sm:$0x4] %vm33_vm0, %v617_v53  }
 0x13d   :  { %1803 = vst [vmem:[%s2447_s1 + $0x18] sm:$0xff] %v1659_v58   ;;  %961 = vrot.lane.b32.xlu1 %v2263_v25, %s2073_s15  ;;  %971 = vrot.lane.b32.xlu2 %v970_v57, %s2074_s16 }
 0x13e   :  { %1113 = vrot.lane.b32.xlu0 %v1112_v59, %s2075_s17 }
 0x13f   :  { %v734_v60 = vpop.permute.xlu2 %733   ;;  %v652_v55 = vpop.permute.xlu1 %651  }
 0x140   :  { %v1427_v62 = vld [vmem:[#allocation0 + $0x158] sm:$0xff]  ;;  %737 = vst.msk [vmem:[#allocation0 + $0x6b] ss:$206 sm:$0x3] %vm33_vm0, %v734_v60   ;;  %v644_v63 = vpop.permute.xlu0 %643  }
 0x141   :  { %v1749_v0 = vpack.c.bf16 %v1427_v62, %v1420_v61  ;;  %655 = vst.msk [vmem:[#allocation0 + $0x69] ss:$203 sm:$0x3] %vm33_vm0, %v652_v55  }
 0x142   :  { %647 = vst.msk [vmem:[#allocation0 + $0x188] ss:$-206 sm:$0x3] %vm33_vm0, %v644_v63   ;;  %v1140_v47 = vld [vmem:[#allocation0 + $0x10] sm:$0xff] }
 0x143   :  { %1821 = vst [vmem:[%s2447_s1 + $0xa8] sm:$0xff] %v1749_v0   ;;  %v1455_v0 = vld [vmem:[#allocation0 + $0x178] sm:$0xff] }
 0x145   :  { %985 = vrot.lane.b32.xlu1 %v984_v1, %s2076_s22  ;;  %995 = vrot.lane.b32.xlu2 %v994_v2, %s2077_s23 }
 0x146   :  { %979 = vrot.lane.b32.xlu0 %v978_v3, %s2078_s24 }
 0x147   :  { %v757_v4 = vpop.permute.xlu2 %756   ;;  %v675_v5 = vpop.permute.xlu1 %674  }
 0x148   :  { %760 = vst.msk [vmem:[#allocation0 + $0x43] ss:$206 sm:$0x3] %vm33_vm0, %v757_v4   ;;  %v668_v6 = vpop.permute.xlu0 %667   ;;  %v1392_v49 = vld [vmem:[#allocation0 + $0x130] sm:$0xff] }
 0x149   :  { %762 = vst.msk [vmem:[#allocation0 + $0x1da] sm:$0x4] %vm33_vm0, %v757_v4  }
 0x14a   :  { %678 = vst.msk [vmem:[#allocation0 + $0x41] ss:$203 sm:$0x3] %vm33_vm0, %v675_v5  }
 0x14b   :  { %680 = vst.msk [vmem:[#allocation0 + $0x1d8] sm:$0x4] %vm33_vm0, %v675_v5  }
 0x14c   :  { %671 = vst.msk [vmem:[#allocation0 + $0x160] ss:$-206 sm:$0x3] %vm33_vm0, %v668_v6  }
 0x14d   :  { %1012 = vrot.lane.b32.xlu1 %v1011_v7, %s2079_s27  ;;  %1020 = vrot.lane.b32.xlu2 %v1019_v9, %s2080_s28 }
 0x14e   :  { %1002 = vrot.lane.b32.xlu0 %v2263_v25, %s2081_s29 }
 0x14f   :  { %v781_v8 = vpop.permute.xlu2 %780   ;;  %v699_v10 = vpop.permute.xlu1 %698  }
 0x150   :  { %784 = vst.msk [vmem:[#allocation0 + $0xe9] ss:$203 sm:$0x3] %vm33_vm0, %v781_v8   ;;  %v693_v11 = vpop.permute.xlu0 %692  }
 0x151   :  { %v1357_v13 = vld [vmem:[#allocation0 + $0x108] sm:$0xff]  ;;  %786 = vst.msk [vmem:[#allocation0 + $0x19] sm:$0x4] %vm33_vm0, %v781_v8  }
 0x152   :  { %v1724_v14 = vpack.c.bf16 %v1357_v13, %v1350_v12  ;;  %702 = vst.msk [vmem:[#allocation0 + $0xe4] ss:$206 sm:$0x3] %vm33_vm0, %v699_v10  }
 0x153   :  { %704 = vst.msk [vmem:[#allocation0 + $0x17] sm:$0x4] %vm33_vm0, %v699_v10  }
 0x154   :  { %1816 = vst [vmem:[%s2447_s1 + $0x80] sm:$0xff] %v1724_v14  }
 0x155   :  { %696 = vst.msk [vmem:[#allocation0 + $0x6a] ss:$206 sm:$0x3] %vm33_vm0, %v693_v11   ;;  %1036 = vrot.lane.b32.xlu1 %v1035_v15, %s2082_s4  ;;  %1043 = vrot.lane.b32.xlu2 %v2263_v25, %s2083_s5 }
 0x156   :  { %1026 = vrot.lane.b32.xlu0 %v2279_v40, %s2084_s6 }
 0x157   :  { %v808_v16 = vpop.permute.xlu2 %807   ;;  %v726_v17 = vpop.permute.xlu1 %725  }
 0x158   :  { %811 = vst.msk [vmem:[#allocation0 + $0xc1] ss:$203 sm:$0x3] %vm33_vm0, %v808_v16   ;;  %v716_v18 = vpop.permute.xlu0 %715  }
 0x159   :  { %729 = vst.msk [vmem:[#allocation0 + $0x18a] ss:$-206 sm:$0x3] %vm33_vm0, %v726_v17   ;;  %v1322_v60 = vld [vmem:[#allocation0 + $0xe0] sm:$0xff] }
 0x15a   :  { %719 = vst.msk [vmem:[#allocation0 + $0x42] ss:$206 sm:$0x3] %vm33_vm0, %v716_v18  }
 0x15b   :  { %721 = vst.msk [vmem:[#allocation0 + $0x1d9] sm:$0x4] %vm33_vm0, %v716_v18   ;;  %v1203_v18 = vld [vmem:[#allocation0 + $0x58] sm:$0xff] }
 0x15e   :  { %1053 = vrot.lane.b32.xlu0 %v1052_v19, %s2085_s0 }
 0x15f   :  { %v832_v20 = vpop.permute.xlu2 %831   ;;  %v750_v21 = vpop.permute.xlu1 %749  }
 0x160   :  { %v1287_v23 = vld [vmem:[#allocation0 + $0xb8] sm:$0xff]  ;;  %835 = vst.msk [vmem:[#allocation0 + $0x164] ss:$-203 sm:$0x3] %vm33_vm0, %v832_v20   ;;  %v740_v24 = vpop.permute.xlu0 %739  }
 0x161   :  { %v1699_v25 = vpack.c.bf16 %v1287_v23, %v1280_v22  ;;  %753 = vst.msk [vmem:[#allocation0 + $0x162] ss:$-206 sm:$0x3] %vm33_vm0, %v750_v21   ;;  %v1413_v22 = vld [vmem:[#allocation0 + $0x148] sm:$0xff] }
 0x162   :  { %v1539_v27 = vld [vmem:[#allocation0 + $0x1d8] sm:$0xff]  ;;  %743 = vst.msk [vmem:[#allocation0 + $0xe8] ss:$203 sm:$0x3] %vm33_vm0, %v740_v24  }
 0x163   :  { %1811 = vst [vmem:[%s2447_s1 + $0x58] sm:$0xff] %v1699_v25   ;;  %v1789_v28 = vpack.c.bf16 %v1539_v27, %v1532_v26 }
 0x164   :  { %745 = vst.msk [vmem:[#allocation0 + $0x18] sm:$0x4] %vm33_vm0, %v740_v24  }
 0x165   :  { %1829 = vst [vmem:[%s2447_s1 + $0xe8] sm:$0xff] %v1789_v28  }
 0x167   :  { %v857_v29 = vpop.permute.xlu2 %856   ;;  %v775_v30 = vpop.permute.xlu1 %774  }
 0x168   :  { %860 = vst.msk [vmem:[#allocation0 + $0x71] ss:$203 sm:$0x3] %vm33_vm0, %v857_v29   ;;  %v767_v31 = vpop.permute.xlu0 %766   ;;  %v1252_v7 = vld [vmem:[#allocation0 + $0x90] sm:$0xff] }
 0x169   :  { %778 = vst.msk [vmem:[#allocation0 + $0x6c] ss:$206 sm:$0x3] %vm33_vm0, %v775_v30   ;;  %v1504_v23 = vld [vmem:[#allocation0 + $0x1b0] sm:$0xff] }
 0x16a   :  { %770 = vst.msk [vmem:[#allocation0 + $0xc0] ss:$203 sm:$0x3] %vm33_vm0, %v767_v31  }
 0x16f   :  { %v880_v32 = vpop.permute.xlu2 %879   ;;  %v798_v33 = vpop.permute.xlu1 %797  }
 0x170   :  { %v1217_v35 = vld [vmem:[#allocation0 + $0x68] sm:$0xff]  ;;  %883 = vst.msk [vmem:[#allocation0 + $0x1e2] ss:$-409 sm:$0x3] %vm33_vm0, %v880_v32   ;;  %v791_v36 = vpop.permute.xlu0 %790  }
 0x171   :  { %v1674_v38 = vpack.c.bf16 %v1217_v35, %v1210_v34  ;;  %v1469_v39 = vld [vmem:[#allocation0 + $0x188] sm:$0xff]  ;;  %885 = vst.msk [vmem:[#allocation0 + $0x112] sm:$0x4] %vm33_vm0, %v880_v32  }
 0x172   :  { %v1764_v40 = vpack.c.bf16 %v1469_v39, %v1462_v37  ;;  %801 = vst.msk [vmem:[#allocation0 + $0x1e0] ss:$-412 sm:$0x3] %vm33_vm0, %v798_v33  }
 0x173   :  { %1806 = vst [vmem:[%s2447_s1 + $0x30] sm:$0xff] %v1674_v38  }
 0x174   :  { %803 = vst.msk [vmem:[#allocation0 + $0x110] sm:$0x4] %vm33_vm0, %v798_v33  }
 0x175   :  { %1824 = vst [vmem:[%s2447_s1 + $0xc0] sm:$0xff] %v1764_v40  }
 0x176   :  { %794 = vst.msk [vmem:[#allocation0 + $0x163] ss:$-203 sm:$0x3] %vm33_vm0, %v791_v36  }
 0x177   :  { %v904_v41 = vpop.permute.xlu2 %903   ;;  %v822_v42 = vpop.permute.xlu1 %821  }
 0x178   :  { %907 = vst.msk [vmem:[#allocation0 + $0x21] ss:$203 sm:$0x3] %vm33_vm0, %v904_v41   ;;  %v816_v43 = vpop.permute.xlu0 %815  }
 0x179   :  { %909 = vst.msk [vmem:[#allocation0 + $0x1b8] sm:$0x4] %vm33_vm0, %v904_v41   ;;  %v1182_v33 = vld [vmem:[#allocation0 + $0x40] sm:$0xff] }
 0x17a   :  { %825 = vst.msk [vmem:[#allocation0 + $0xea] ss:$206 sm:$0x3] %vm33_vm0, %v822_v42  }
 0x17b   :  { %827 = vst.msk [vmem:[#allocation0 + $0x1a] sm:$0x4] %vm33_vm0, %v822_v42  }
 0x17c   :  { %819 = vst.msk [vmem:[#allocation0 + $0x70] ss:$203 sm:$0x3] %vm33_vm0, %v816_v43   ;;  %v1273_v43 = vld [vmem:[#allocation0 + $0xa8] sm:$0xff] }
 0x17f   :  { %v931_v44 = vpop.permute.xlu2 %930   ;;  %v849_v45 = vpop.permute.xlu1 %848  }
 0x180   :  { %934 = vst.msk [vmem:[#allocation0 + $0xc4] ss:$206 sm:$0x3] %vm33_vm0, %v931_v44   ;;  %v839_v46 = vpop.permute.xlu0 %838   ;;  %v1434_v44 = vld [vmem:[#allocation0 + $0x160] sm:$0xff] }
 0x181   :  { %852 = vst.msk [vmem:[#allocation0 + $0xc2] ss:$206 sm:$0x3] %vm33_vm0, %v849_v45  }
 0x182   :  { %v1147_v48 = vld [vmem:[#allocation0 + $0x18] sm:$0xff]  ;;  %842 = vst.msk [vmem:[#allocation0 + $0x1e1] ss:$-409 sm:$0x3] %vm33_vm0, %v839_v46  }
 0x183   :  { %v1649_v50 = vpack.c.bf16 %v1147_v48, %v1140_v47  ;;  %v1399_v51 = vld [vmem:[#allocation0 + $0x138] sm:$0xff]  ;;  %844 = vst.msk [vmem:[#allocation0 + $0x111] sm:$0x4] %vm33_vm0, %v839_v46  }
 0x184   :  { %v1739_v52 = vpack.c.bf16 %v1399_v51, %v1392_v49 }
 0x185   :  { %1801 = vst [vmem:[%s2447_s1 + $0x8] sm:$0xff] %v1649_v50  }
 0x186   :  { %1819 = vst [vmem:[%s2447_s1 + $0x98] sm:$0xff] %v1739_v52   ;;  %v1343_v52 = vld [vmem:[#allocation0 + $0xf8] sm:$0xff] }
 0x187   :  { %v955_v53 = vpop.permute.xlu2 %954   ;;  %v873_v54 = vpop.permute.xlu1 %872  }
 0x188   :  { %958 = vst.msk [vmem:[#allocation0 + $0x16a] ss:$-206 sm:$0x3] %vm33_vm0, %v955_v53   ;;  %v863_v56 = vpop.permute.xlu0 %862   ;;  %v1525_v53 = vld [vmem:[#allocation0 + $0x1c8] sm:$0xff] }
 0x189   :  { %876 = vst.msk [vmem:[#allocation0 + $0x168] ss:$-206 sm:$0x3] %vm33_vm0, %v873_v54  }
 0x18a   :  { %866 = vst.msk [vmem:[#allocation0 + $0x20] ss:$203 sm:$0x3] %vm33_vm0, %v863_v56   ;;  %v1364_v40 = vld [vmem:[#allocation0 + $0x110] sm:$0xff] }
 0x18b   :  { %868 = vst.msk [vmem:[#allocation0 + $0x1b7] sm:$0x4] %vm33_vm0, %v863_v56  }
 0x18f   :  { %v1100_v57 = vpop.permute.xlu2 %1099   ;;  %v898_v58 = vpop.permute.xlu1 %897  }
 0x190   :  { %1103 = vst.msk [vmem:[#allocation0 + $0xa2] ss:$206 sm:$0x3] %vm1101_vm5, %v1100_v57   ;;  %v890_v59 = vpop.permute.xlu0 %889  }
 0x191   :  { %v1329_v55 = vld [vmem:[#allocation0 + $0xe8] sm:$0xff]  ;;  %1106 = vst.msk [vmem:[#allocation0 + $0xa2] ss:$206 sm:$0x3] %vm1104_vm6, %v1100_v57  }
 0x192   :  { %v1714_v61 = vpack.c.bf16 %v1329_v55, %v1322_v60  ;;  %901 = vst.msk [vmem:[#allocation0 + $0x140] ss:$-206 sm:$0x3] %vm33_vm0, %v898_v58  }
 0x193   :  { %893 = vst.msk [vmem:[#allocation0 + $0xc3] ss:$206 sm:$0x3] %vm33_vm0, %v890_v59  }
 0x194   :  { %1814 = vst [vmem:[%s2447_s1 + $0x70] sm:$0xff] %v1714_v61  }
 0x197   :  { %v921_v62 = vpop.permute.xlu1 %920   ;;  %v972_v63 = vpop.permute.xlu2 %971  }
 0x198   :  { %v1448_v1 = vld [vmem:[#allocation0 + $0x170] sm:$0xff]  ;;  %924 = vst.msk [vmem:[#allocation0 + $0x1e3] ss:$-409 sm:$0x3] %vm33_vm0, %v921_v62   ;;  %v914_v2 = vpop.permute.xlu0 %913  }
 0x199   :  { %v1759_v3 = vpack.c.bf16 %v1455_v0, %v1448_v1  ;;  %926 = vst.msk [vmem:[#allocation0 + $0x116] sm:$0x4] %vm33_vm0, %v921_v62  }
 0x19a   :  { %917 = vst.msk [vmem:[#allocation0 + $0x169] ss:$-206 sm:$0x3] %vm33_vm0, %v914_v2   ;;  %v1294_v60 = vld [vmem:[#allocation0 + $0xc0] sm:$0xff] }
 0x19b   :  { %1823 = vst [vmem:[%s2447_s1 + $0xb8] sm:$0xff] %v1759_v3  }
 0x19c   :  { %975 = vst.msk [vmem:[#allocation0 + $0xc8] ss:$203 sm:$0x3] %vm33_vm0, %v972_v63  }
 0x19f   :  { %v945_v4 = vpop.permute.xlu1 %944   ;;  %v996_v5 = vpop.permute.xlu2 %995  }
 0x1a0   :  { %948 = vst.msk [vmem:[#allocation0 + $0x22] ss:$206 sm:$0x3] %vm33_vm0, %v945_v4   ;;  %v939_v6 = vpop.permute.xlu0 %938  }
 0x1a1   :  { %v1259_v9 = vld [vmem:[#allocation0 + $0x98] sm:$0xff]  ;;  %950 = vst.msk [vmem:[#allocation0 + $0x1b9] sm:$0x4] %vm33_vm0, %v945_v4  }
 0x1a2   :  { %v1689_v8 = vpack.c.bf16 %v1259_v9, %v1252_v7  ;;  %942 = vst.msk [vmem:[#allocation0 + $0x141] ss:$-206 sm:$0x3] %vm33_vm0, %v939_v6  }
 0x1a3   :  { %999 = vst.msk [vmem:[#allocation0 + $0xa0] ss:$203 sm:$0x3] %vm33_vm0, %v996_v5  }
 0x1a4   :  { %1809 = vst [vmem:[%s2447_s1 + $0x48] sm:$0xff] %v1689_v8  }
 0x1a7   :  { %v1080_v10 = vpop.permute.xlu1 %1079   ;;  %v1021_v11 = vpop.permute.xlu2 %1020  }
 0x1a8   :  { %1083 = vst.msk [vmem:[#allocation0 + $0x1c1] ss:$-409 sm:$0x3] %vm1081_vm7, %v1080_v10   ;;  %v1067_v12 = vpop.permute.xlu0 %1066  }
 0x1a9   :  { %1085 = vst.msk [vmem:[#allocation0 + $0xf1] sm:$0x4] %vm1081_vm7, %v1080_v10  }
 0x1aa   :  { %1088 = vst.msk [vmem:[#allocation0 + $0x1c1] ss:$-409 sm:$0x3] %vm1086_vm8, %v1080_v10  }
 0x1ab   :  { %1090 = vst.msk [vmem:[#allocation0 + $0xf1] sm:$0x4] %vm1086_vm8, %v1080_v10  }
 0x1ac   :  { %1070 = vst.msk [vmem:[#allocation0 + $0x144] ss:$-203 sm:$0x3] %vm1068_vm9, %v1067_v12  }
 0x1ad   :  { %1073 = vst.msk [vmem:[#allocation0 + $0x144] ss:$-203 sm:$0x3] %vm1071_vm10, %v1067_v12  }
 0x1ae   :  { %1024 = vst.msk [vmem:[#allocation0 + $0x143] ss:$-203 sm:$0x3] %vm33_vm0, %v1021_v11  }
 0x1af   :  { %v962_v13 = vpop.permute.xlu1 %961   ;;  %v1044_v14 = vpop.permute.xlu2 %1043  }
 0x1b0   :  { %965 = vst.msk [vmem:[#allocation0 + $0x1e4] ss:$-409 sm:$0x3] %vm33_vm0, %v962_v13   ;;  %v1114_v15 = vpop.permute.xlu0 %1113  }
 0x1b1   :  { %967 = vst.msk [vmem:[#allocation0 + $0x117] sm:$0x4] %vm33_vm0, %v962_v13   ;;  %v1161_v47 = vld [vmem:[#allocation0 + $0x28] sm:$0xff] }
 0x1b2   :  { %1117 = vst.msk [vmem:[#allocation0 + $0x1ea] ss:$-409 sm:$0x3] %vm1115_vm11, %v1114_v15  }
 0x1b3   :  { %1119 = vst.msk [vmem:[#allocation0 + $0x11a] sm:$0x4] %vm1115_vm11, %v1114_v15  }
 0x1b4   :  { %1122 = vst.msk [vmem:[#allocation0 + $0x1ea] ss:$-409 sm:$0x3] %vm1120_vm12, %v1114_v15  }
 0x1b5   :  { %1124 = vst.msk [vmem:[#allocation0 + $0x11a] sm:$0x4] %vm1120_vm12, %v1114_v15   ;;  %v1231_v26 = vld [vmem:[#allocation0 + $0x78] sm:$0xff] }
 0x1b6   :  { %1047 = vst.msk [vmem:[#allocation0 + $0x1e9] ss:$-409 sm:$0x3] %vm33_vm0, %v1044_v14  }
 0x1b7   :  { %1049 = vst.msk [vmem:[#allocation0 + $0x119] sm:$0x4] %vm33_vm0, %v1044_v14   ;;  %v986_v16 = vpop.permute.xlu1 %985   ;;  %v1546_v35 = vld [vmem:[#allocation0 + $0x1e0] sm:$0xff] }
 0x1b8   :  { %989 = vst.msk [vmem:[#allocation0 + $0x23] ss:$206 sm:$0x3] %vm33_vm0, %v986_v16   ;;  %v980_v17 = vpop.permute.xlu0 %979  }
 0x1b9   :  { %991 = vst.msk [vmem:[#allocation0 + $0x1ba] sm:$0x4] %vm33_vm0, %v986_v16  }
 0x1ba   :  { %983 = vst.msk [vmem:[#allocation0 + $0x142] ss:$-206 sm:$0x3] %vm33_vm0, %v980_v17  }
 0x1bd   :  { %v1196_v19 = vld [vmem:[#allocation0 + $0x50] sm:$0xff] }
 0x1be   :  { %v1669_v20 = vpack.c.bf16 %v1203_v18, %v1196_v19 }
 0x1bf   :  { %v1013_v21 = vpop.permute.xlu1 %1012  }
 0x1c0   :  { %1805 = vst [vmem:[%s2447_s1 + $0x28] sm:$0xff] %v1669_v20   ;;  %v1511_v24 = vld [vmem:[#allocation0 + $0x1b8] sm:$0xff]  ;;  %v1003_v25 = vpop.permute.xlu0 %1002  }
 0x1c1   :  { %v1224_v27 = vld [vmem:[#allocation0 + $0x70] sm:$0xff]  ;;  %v1406_v28 = vld [vmem:[#allocation0 + $0x140] sm:$0xff]  ;;  %v1779_v29 = vpack.c.bf16 %v1511_v24, %v1504_v23  ;;  %1016 = vst.msk [vmem:[#allocation0 + $0xc9] ss:$203 sm:$0x3] %vm33_vm0, %v1013_v21  }
 0x1c2   :  { %v1679_v30 = vpack.c.bf16 %v1231_v26, %v1224_v27  ;;  %v1744_v31 = vpack.c.bf16 %v1413_v22, %v1406_v28  ;;  %1006 = vst.msk [vmem:[#allocation0 + $0x1e8] ss:$-412 sm:$0x3] %vm33_vm0, %v1003_v25  }
 0x1c3   :  { %1827 = vst [vmem:[%s2447_s1 + $0xd8] sm:$0xff] %v1779_v29  }
 0x1c4   :  { %1008 = vst.msk [vmem:[#allocation0 + $0x118] sm:$0x4] %vm33_vm0, %v1003_v25  }
 0x1c5   :  { %1807 = vst [vmem:[%s2447_s1 + $0x38] sm:$0xff] %v1679_v30  }
 0x1c6   :  { %1820 = vst [vmem:[%s2447_s1 + $0xa0] sm:$0xff] %v1744_v31  }
 0x1c7   :  { %v1037_v32 = vpop.permute.xlu1 %1036  }
 0x1c8   :  { %1040 = vst.msk [vmem:[#allocation0 + $0xa1] ss:$203 sm:$0x3] %vm33_vm0, %v1037_v32   ;;  %v1027_v34 = vpop.permute.xlu0 %1026   ;;  %v1476_v55 = vld [vmem:[#allocation0 + $0x190] sm:$0xff] }
 0x1c9   :  { %v1189_v36 = vld [vmem:[#allocation0 + $0x48] sm:$0xff]  ;;  %1030 = vst.msk [vmem:[#allocation0 + $0x1c0] ss:$-412 sm:$0x3] %vm33_vm0, %v1027_v34  }
 0x1ca   :  { %v1553_v37 = vld [vmem:[#allocation0 + $0x1e8] sm:$0xff]  ;;  %v1664_v38 = vpack.c.bf16 %v1189_v36, %v1182_v33  ;;  %1032 = vst.msk [vmem:[#allocation0 + $0xf0] sm:$0x4] %vm33_vm0, %v1027_v34  }
 0x1cb   :  { %v1794_v39 = vpack.c.bf16 %v1553_v37, %v1546_v35  ;;  %v1371_v41 = vld [vmem:[#allocation0 + $0x118] sm:$0xff] }
 0x1cc   :  { %v1729_v42 = vpack.c.bf16 %v1371_v41, %v1364_v40  ;;  %1804 = vst [vmem:[%s2447_s1 + $0x20] sm:$0xff] %v1664_v38  }
 0x1cd   :  { %1830 = vst [vmem:[%s2447_s1 + $0xf0] sm:$0xff] %v1794_v39  }
 0x1ce   :  { %1817 = vst [vmem:[%s2447_s1 + $0x88] sm:$0xff] %v1729_v42  }
 0x1cf   :  { %v1266_v45 = vld [vmem:[#allocation0 + $0xa0] sm:$0xff]  ;;  %v1441_v46 = vld [vmem:[#allocation0 + $0x168] sm:$0xff] }
 0x1d0   :  { %v1154_v48 = vld [vmem:[#allocation0 + $0x20] sm:$0xff]  ;;  %v1694_v49 = vpack.c.bf16 %v1273_v43, %v1266_v45  ;;  %v1054_v51 = vpop.permute.xlu0 %1053   ;;  %v1754_v57 = vpack.c.bf16 %v1441_v46, %v1434_v44 }
 0x1d1   :  { %v1518_v50 = vld [vmem:[#allocation0 + $0x1c0] sm:$0xff]  ;;  %v1654_v54 = vpack.c.bf16 %v1161_v47, %v1154_v48  ;;  %v1336_v56 = vld [vmem:[#allocation0 + $0xf0] sm:$0xff]  ;;  %1057 = vst.msk [vmem:[#allocation0 + $0xca] ss:$206 sm:$0x3] %vm33_vm0, %v1054_v51  }
 0x1d2   :  { %v1719_v58 = vpack.c.bf16 %v1343_v52, %v1336_v56  ;;  %1810 = vst [vmem:[%s2447_s1 + $0x50] sm:$0xff] %v1694_v49   ;;  %v1784_v59 = vpack.c.bf16 %v1525_v53, %v1518_v50 }
 0x1d3   :  { %1802 = vst [vmem:[%s2447_s1 + $0x10] sm:$0xff] %v1654_v54  }
 0x1d4   :  { %1815 = vst [vmem:[%s2447_s1 + $0x78] sm:$0xff] %v1719_v58  }
 0x1d5   :  { %1822 = vst [vmem:[%s2447_s1 + $0xb0] sm:$0xff] %v1754_v57  }
 0x1d6   :  { %1828 = vst [vmem:[%s2447_s1 + $0xe0] sm:$0xff] %v1784_v59  }
 0x1d8   :  { %v1483_v61 = vld [vmem:[#allocation0 + $0x198] sm:$0xff]  ;;  %v1301_v62 = vld [vmem:[#allocation0 + $0xc8] sm:$0xff] }
 0x1d9   :  { %v1769_v63 = vpack.c.bf16 %v1483_v61, %v1476_v55  ;;  %v1704_v0 = vpack.c.bf16 %v1301_v62, %v1294_v60 }
 0x1db   :  { %1825 = vst [vmem:[%s2447_s1 + $0xc8] sm:$0xff] %v1769_v63  }
 0x1dc   :  { %1812 = vst [vmem:[%s2447_s1 + $0x60] sm:$0xff] %v1704_v0  }

// kernel: forward.9
= control target key start
LH: loop header
LB: loop body
LE: loop exit
PB: predicated region body
PF: predicated region fallthrough
CT: control target
= control target key end

     0   :  { %v939_v20 = vmov 0   ;;  %s1182_s1 = inlined_call_operand.vmem [shape: bf16[896,128], index: 1, kind: input, shape index: {}]   ;;  %s1183_s2 = inlined_call_operand.vmem [shape: f32[10,1], index: 2, kind: input, shape index: {}]   ;;  %s1184_s0 = inlined_call_operand.vmem [shape: bf16[10,896], index: 0, kind: input, shape index: {}]   ;;  %s1185_s3 = inlined_call_operand.vmem [shape: f32[10,128], index: 3, kind: output, shape index: {}]  }
   0x1   :  { %v888_v0 = vld [vmem:[%s1182_s1 + $0x38] sm:$0xff]  ;;  %v887_v3 = vld [vmem:[%s1182_s1 + $0x30] sm:$0xff]  ;;  %v886_v8 = vld [vmem:[%s1182_s1 + $0x28] sm:$0xff]  ;;  %938 = vset.pattern.permute.xlu0 %v939_v20 }
   0x2   :  { %v896_v1 = vld [vmem:[%s1182_s1 + $0x78] sm:$0xff]  ;;  %518 = vmatpush.bf16.msra.mxu0 %v888_v0  ;;  %v895_v4 = vld [vmem:[%s1182_s1 + $0x70] sm:$0xff]  ;;  %v894_v9 = vld [vmem:[%s1182_s1 + $0x68] sm:$0xff] }
   0x3   :  { %v904_v2 = vld [vmem:[%s1182_s1 + $0xb8] sm:$0xff]  ;;  %532 = vmatpush.bf16.msra.mxu1 %v896_v1  ;;  %v903_v6 = vld [vmem:[%s1182_s1 + $0xb0] sm:$0xff]  ;;  %v902_v10 = vld [vmem:[%s1182_s1 + $0xa8] sm:$0xff] }
   0x4   :  { %v912_v5 = vld [vmem:[%s1182_s1 + $0xf8] sm:$0xff]  ;;  %546 = vmatpush.bf16.msra.mxu2 %v904_v2  ;;  %v911_v7 = vld [vmem:[%s1182_s1 + $0xf0] sm:$0xff]  ;;  %v910_v11 = vld [vmem:[%s1182_s1 + $0xe8] sm:$0xff] }
   0x5   :  { %560 = vmatpush.bf16.msra.mxu3 %v912_v5  ;;  %v885_v12 = vld [vmem:[%s1182_s1 + $0x20] sm:$0xff]  ;;  %v884_v16 = vld [vmem:[%s1182_s1 + $0x18] sm:$0xff]  ;;  %v883_v21 = vld [vmem:[%s1182_s1 + $0x10] sm:$0xff] }
   0x6   :  { %519 = vmatpush.bf16.msra.mxu0 %v887_v3  ;;  %v893_v13 = vld [vmem:[%s1182_s1 + $0x60] sm:$0xff]  ;;  %v892_v17 = vld [vmem:[%s1182_s1 + $0x58] sm:$0xff]  ;;  %v891_v22 = vld [vmem:[%s1182_s1 + $0x50] sm:$0xff] }
   0x7   :  { %533 = vmatpush.bf16.msra.mxu1 %v895_v4  ;;  %v901_v14 = vld [vmem:[%s1182_s1 + $0xa0] sm:$0xff]  ;;  %v900_v18 = vld [vmem:[%s1182_s1 + $0x98] sm:$0xff]  ;;  %v899_v24 = vld [vmem:[%s1182_s1 + $0x90] sm:$0xff] }
   0x8   :  { %547 = vmatpush.bf16.msra.mxu2 %v903_v6  ;;  %v909_v15 = vld [vmem:[%s1182_s1 + $0xe0] sm:$0xff]  ;;  %v908_v19 = vld [vmem:[%s1182_s1 + $0xd8] sm:$0xff]  ;;  %v907_v25 = vld [vmem:[%s1182_s1 + $0xd0] sm:$0xff] }
   0x9   :  { %561 = vmatpush.bf16.msra.mxu3 %v911_v7  ;;  %v134_v23 = vld [vmem:[%s1183_s2] sm:$0xff]  ;;  %v882_v26 = vld [vmem:[%s1182_s1 + $0x8] sm:$0xff]  ;;  %v920_v34 = vld [vmem:[%s1182_s1 + $0x138] sm:$0xff] }
   0xa   :  { %520 = vmatpush.bf16.msra.mxu0 %v886_v8  ;;  %138 = vperm.xlu0 %938, %v134_v23   ;;  %v890_v27 = vld [vmem:[%s1182_s1 + $0x48] sm:$0xff]  ;;  %v881_v29 = vld [vmem:[%s1182_s1] sm:$0xff]  ;;  %v877_v37 = vld [vmem:[%s1184_s0 + $0x18] sm:$0x10] }
   0xb   :  { %534 = vmatpush.bf16.msra.mxu1 %v894_v9  ;;  %v898_v28 = vld [vmem:[%s1182_s1 + $0x88] sm:$0xff]  ;;  %v889_v32 = vld [vmem:[%s1182_s1 + $0x40] sm:$0xff]  ;;  %v928_v41 = vld [vmem:[%s1182_s1 + $0x178] sm:$0xff] }
   0xc   :  { %548 = vmatpush.bf16.msra.mxu2 %v902_v10  ;;  %v906_v30 = vld [vmem:[%s1182_s1 + $0xc8] sm:$0xff]  ;;  %v897_v33 = vld [vmem:[%s1182_s1 + $0x80] sm:$0xff]  ;;  %v936_v42 = vld [vmem:[%s1182_s1 + $0x1b8] sm:$0xff] }
   0xd   :  { %562 = vmatpush.bf16.msra.mxu3 %v910_v11  ;;  %v135_v31 = vld [vmem:[%s1183_s2 + $0x8] sm:$0x3]  ;;  %v624_v36 = vld [vmem:[%s1184_s0] sm:$0xf]  ;;  %v878_v38 = vld [vmem:[%s1184_s0 + $0x20] sm:$0x10] }
   0xe   :  { %521 = vmatpush.bf16.msra.mxu0 %v885_v12  ;;  %v632_v35 = vld [vmem:[%s1184_s0 + $0x8] sm:$0xf]  ;;  %v874_v39 = vld [vmem:[%s1184_s0 + $0x4] sm:$0xf]  ;;  %v626_v40 = vld [vmem:[%s1184_s0 + $0x1c] sm:$0x10]  ;;  %v625_v44 = vor.u32 %v877_v37, %v624_v36 }
   0xf   :  { %535 = vmatpush.bf16.msra.mxu1 %v893_v13  ;;  %v905_v43 = vld [vmem:[%s1182_s1 + $0xc0] sm:$0xff]  ;;  %v633_v45 = vor.u32 %v878_v38, %v632_v35  ;;  %v875_v46 = vld [vmem:[%s1184_s0 + $0xc] sm:$0xf]  ;;  %v634_v47 = vld [vmem:[%s1184_s0 + $0x24] sm:$0x10]  ;;  %v629_v48 = vor.u32 %v874_v39, %v626_v40 }
  0x10   :  { %549 = vmatpush.bf16.msra.mxu2 %v901_v14  ;;  %v919_v49 = vld [vmem:[%s1182_s1 + $0x130] sm:$0xff]  ;;  %v637_v52 = vor.u32 %v875_v46, %v634_v47  ;;  %v918_v53 = vld [vmem:[%s1182_s1 + $0x128] sm:$0xff]  ;;  %v917_v56 = vld [vmem:[%s1182_s1 + $0x120] sm:$0xff] }
  0x11   :  { %563 = vmatpush.bf16.msra.mxu3 %v909_v15  ;;  %v927_v50 = vld [vmem:[%s1182_s1 + $0x170] sm:$0xff]  ;;  %v926_v54 = vld [vmem:[%s1182_s1 + $0x168] sm:$0xff]  ;;  %v925_v57 = vld [vmem:[%s1182_s1 + $0x160] sm:$0xff] }
  0x12   :  { %522 = vmatpush.bf16.msra.mxu0 %v884_v16  ;;  %143 = vperm.xlu0 %938, %v135_v31   ;;  %v935_v51 = vld [vmem:[%s1182_s1 + $0x1b0] sm:$0xff]  ;;  %v934_v55 = vld [vmem:[%s1182_s1 + $0x1a8] sm:$0xff]  ;;  %v933_v58 = vld [vmem:[%s1182_s1 + $0x1a0] sm:$0xff] }
  0x13   :  { %536 = vmatpush.bf16.msra.mxu1 %v892_v17  ;;  %v916_v59 = vld [vmem:[%s1182_s1 + $0x118] sm:$0xff]  ;;  %v915_v62 = vld [vmem:[%s1182_s1 + $0x110] sm:$0xff]  ;;  %v914_v1 = vld [vmem:[%s1182_s1 + $0x108] sm:$0xff] }
  0x14   :  { %550 = vmatpush.bf16.msra.mxu2 %v900_v18  ;;  %v924_v60 = vld [vmem:[%s1182_s1 + $0x158] sm:$0xff]  ;;  %v923_v63 = vld [vmem:[%s1182_s1 + $0x150] sm:$0xff]  ;;  %v922_v2 = vld [vmem:[%s1182_s1 + $0x148] sm:$0xff] }
  0x15   :  { %564 = vmatpush.bf16.msra.mxu3 %v908_v19  ;;  %v932_v61 = vld [vmem:[%s1182_s1 + $0x198] sm:$0xff]  ;;  %v931_v0 = vld [vmem:[%s1182_s1 + $0x190] sm:$0xff]  ;;  %v930_v3 = vld [vmem:[%s1182_s1 + $0x188] sm:$0xff] }
  0x16   :  { %523 = vmatpush.bf16.msra.mxu0 %v883_v21  ;;  %v913_v4 = vld [vmem:[%s1182_s1 + $0x100] sm:$0xff]  ;;  %v640_v7 = vld [vmem:[%s1184_s0 + $0x10] sm:$0xf]  ;;  %v879_v8 = vld [vmem:[%s1184_s0 + $0x28] sm:$0x10] }
  0x17   :  { %537 = vmatpush.bf16.msra.mxu1 %v891_v22  ;;  %v921_v5 = vld [vmem:[%s1182_s1 + $0x140] sm:$0xff]  ;;  %v876_v9 = vld [vmem:[%s1184_s0 + $0x14] sm:$0xf]  ;;  %v642_v10 = vld [vmem:[%s1184_s0 + $0x2c] sm:$0x10]  ;;  %v641_v13 = vor.u32 %v879_v8, %v640_v7 }
  0x18   :  { %551 = vmatpush.bf16.msra.mxu2 %v899_v24  ;;  %v929_v6 = vld [vmem:[%s1182_s1 + $0x180] sm:$0xff]  ;;  %v648_v11 = vld [vmem:[%s1184_s0 + $0x18] sm:$0xf]  ;;  %v880_v12 = vld [vmem:[%s1184_s0 + $0x30] sm:$0x10]  ;;  %v645_v14 = vor.u32 %v876_v9, %v642_v10 }
  0x19   :  { %565 = vmatpush.bf16.msra.mxu3 %v907_v25  ;;  %v649_v15 = vor.u32 %v880_v12, %v648_v11 }
  0x1a   :  { %524 = vmatpush.bf16.msra.mxu0 %v882_v26 }
  0x1b   :  { %538 = vmatpush.bf16.msra.mxu1 %v890_v27 }
  0x1c   :  { %552 = vmatpush.bf16.msra.mxu2 %v898_v28 }
  0x1d   :  { %566 = vmatpush.bf16.msra.mxu3 %v906_v30 }
  0x1e   :  { %525 = vmatpush.bf16.msra.mxu0 %v881_v29 }
  0x1f   :  { %539 = vmatpush.bf16.msra.mxu1 %v889_v32 }
  0x20   :  { %553 = vmatpush.bf16.msra.mxu2 %v897_v33 }
  0x21   :  { %567 = vmatpush.bf16.msra.mxu3 %v905_v43  ;;  %526 = vmatmul.bf16.vlgmr.msra.gmra.mxu0 %v625_v44 }
  0x22   :  { %574 = vmatpush.bf16.msrb.mxu0 %v920_v34  ;;  %540 = vmatmul.bf16.vlgmr.msra.gmra.mxu1 %v629_v48 }
  0x23   :  { %588 = vmatpush.bf16.msrb.mxu1 %v928_v41  ;;  %554 = vmatmul.bf16.vlgmr.msra.gmra.mxu2 %v633_v45 }
  0x24   :  { %602 = vmatpush.bf16.msrb.mxu2 %v936_v42  ;;  %568 = vmatmul.bf16.vlgmr.msra.gmra.mxu3 %v637_v52 }
  0x26   :  { %575 = vmatpush.bf16.msrb.mxu0 %v919_v49 }
  0x27   :  { %589 = vmatpush.bf16.msrb.mxu1 %v927_v50 }
  0x28   :  { %603 = vmatpush.bf16.msrb.mxu2 %v935_v51 }
  0x2a   :  { %576 = vmatpush.bf16.msrb.mxu0 %v918_v53 }
  0x2b   :  { %590 = vmatpush.bf16.msrb.mxu1 %v926_v54 }
  0x2c   :  { %604 = vmatpush.bf16.msrb.mxu2 %v934_v55 }
  0x2e   :  { %577 = vmatpush.bf16.msrb.mxu0 %v917_v56 }
  0x2f   :  { %591 = vmatpush.bf16.msrb.mxu1 %v925_v57 }
  0x30   :  { %605 = vmatpush.bf16.msrb.mxu2 %v933_v58 }
  0x32   :  { %578 = vmatpush.bf16.msrb.mxu0 %v916_v59 }
  0x33   :  { %592 = vmatpush.bf16.msrb.mxu1 %v924_v60 }
  0x34   :  { %606 = vmatpush.bf16.msrb.mxu2 %v932_v61 }
  0x36   :  { %579 = vmatpush.bf16.msrb.mxu0 %v915_v62 }
  0x37   :  { %593 = vmatpush.bf16.msrb.mxu1 %v923_v63 }
  0x38   :  { %607 = vmatpush.bf16.msrb.mxu2 %v931_v0 }
  0x3a   :  { %580 = vmatpush.bf16.msrb.mxu0 %v914_v1 }
  0x3b   :  { %594 = vmatpush.bf16.msrb.mxu1 %v922_v2 }
  0x3c   :  { %608 = vmatpush.bf16.msrb.mxu2 %v930_v3 }
  0x3e   :  { %581 = vmatpush.bf16.msrb.mxu0 %v913_v4 }
  0x3f   :  { %595 = vmatpush.bf16.msrb.mxu1 %v921_v5 }
  0x40   :  { %609 = vmatpush.bf16.msrb.mxu2 %v929_v6 }
  0x41   :  { %582 = vmatmul.bf16.vlgmr.msrb.gmra.mxu0 %v641_v13 }
  0x42   :  { %596 = vmatmul.bf16.vlgmr.msrb.gmra.mxu1 %v645_v14 }
  0x43   :  { %610 = vmatmul.bf16.vlgmr.msrb.gmra.mxu2 %v649_v15 }
  0x7c   :  { %v139_v17 = vpop.permute.xlu0 %138 }
  0x84   :  { %v144_v23 = vpop.permute.xlu0 %143 }
  0x9e   :  { %v527_v16 = vpop.f32.mrf.mxu0 }
  0x9f   :  { %v541_v18 = vpop.f32.mrf.mxu1  ;;  %v528_v19 = vadd.f32 %v527_v16, %v139_v17 }
  0xa1   :  { %v542_v21 = vadd.f32 %v541_v18, %v528_v19 }
  0xa6   :  { %v555_v20 = vpop.f32.mrf.mxu2  ;;  %v529_v22 = vpop.f32.mrf.mxu0 }
  0xa7   :  { %v569_v24 = vpop.f32.mrf.mxu3  ;;  %v543_v25 = vpop.f32.mrf.mxu1  ;;  %v556_v26 = vadd.f32 %v555_v20, %v542_v21  ;;  %v530_v27 = vadd.f32 %v529_v22, %v144_v23 }
  0xa9   :  { %v570_v29 = vadd.f32 %v569_v24, %v556_v26  ;;  %v544_v30 = vadd.f32 %v543_v25, %v530_v27 }
  0xae   :  { %v557_v28 = vpop.f32.mrf.mxu2 }
  0xaf   :  { %v558_v34 = vadd.f32 %v557_v28, %v544_v30  ;;  %v571_v35 = vpop.f32.mrf.mxu3 }
  0xb1   :  { %v572_v38 = vadd.f32 %v571_v35, %v558_v34 }
  0xbe   :  { %v583_v31 = vpop.f32.mrf.mxu0 }
  0xbf   :  { %v584_v32 = vadd.f32 %v583_v31, %v570_v29  ;;  %v597_v33 = vpop.f32.mrf.mxu1 }
  0xc1   :  { %v598_v36 = vadd.f32 %v597_v33, %v584_v32 }
  0xc6   :  { %v611_v37 = vpop.f32.mrf.mxu2  ;;  %v585_v40 = vpop.f32.mrf.mxu0 }
  0xc7   :  { %v612_v39 = vadd.f32 %v611_v37, %v598_v36  ;;  %v586_v41 = vadd.f32 %v585_v40, %v572_v38  ;;  %v599_v42 = vpop.f32.mrf.mxu1 }
  0xc9   :  { %616 = vst [vmem:[%s1185_s3] sm:$0xff] %v612_v39  ;;  %v600_v43 = vadd.f32 %v599_v42, %v586_v41 }
  0xce   :  { %v613_v44 = vpop.f32.mrf.mxu2 }
  0xcf   :  { %v614_v45 = vadd.f32 %v613_v44, %v600_v43 }
  0xd1   :  { %617 = vst [vmem:[%s1185_s3 + $0x8] sm:$0x3] %v614_v45 }

</bundles_post_ra>
